<compile_context>
chip_gen: v6e
topology: v6e:2x2x1
jax: 0.10.0
libtpu: 0.0.40
codegen_flags: <defaults>
</compile_context>

<pallas_src>
import functools
import math

import jax
import jax.numpy as jnp
from jax import lax
from jax.experimental import pallas as pl
from jax.experimental.pallas import tpu as pltpu


_EPS = 1e-5
_NEG_SLOPE = 0.1
_VMEM_LIMIT = 32 * 1024 * 1024


def _round_up(x, m):
    return (x + m - 1) // m * m


def _pick_divisor_tile(n, candidates):
    for t in candidates:
        if t <= n and n % t == 0:
            return t
    return n


# ----------------------------------------------------------------------------
# Tiled matmul kernel (bf16 MXU operands, f32 accumulator scratch)
# Optionally fuses a per-K-column BatchNorm-apply + LeakyReLU on the A operand.
# ----------------------------------------------------------------------------
def _matmul_kernel(*refs, n_k, k_total, tk, norm):
    idx = 0
    a_ref = refs[idx]; idx += 1
    b_ref = refs[idx]; idx += 1
    if norm:
        scale_ref = refs[idx]
        shift_ref = refs[idx + 1]
        idx += 2
    o_ref = refs[idx]
    acc_ref = refs[idx + 1]

    k = pl.program_id(2)

    @pl.when(k == 0)
    def _():
        acc_ref[...] = jnp.zeros_like(acc_ref)

    a = a_ref[...]
    b = b_ref[...]
    if norm:
        af = a.astype(jnp.float32) * scale_ref[...] + shift_ref[...]
        a = jnp.where(af >= 0, af, _NEG_SLOPE * af)
    if k_total % tk != 0:
        # Edge K block: out-of-bounds reads are undefined -> select them to zero.
        col = lax.broadcasted_iota(jnp.int32, a.shape, 1) + k * tk
        a = jnp.where(col < k_total, a, jnp.zeros_like(a))
        row = lax.broadcasted_iota(jnp.int32, b.shape, 0) + k * tk
        b = jnp.where(row < k_total, b, jnp.zeros_like(b))

    acc_ref[...] += jnp.dot(a.astype(jnp.bfloat16), b.astype(jnp.bfloat16),
                            preferred_element_type=jnp.float32)

    @pl.when(k == n_k - 1)
    def _():
        o_ref[...] = acc_ref[...].astype(o_ref.dtype)


def pallas_matmul(a, b, scale=None, shift=None, out_dtype=jnp.bfloat16,
                  tm=256, tn=128, tk=1024):
    """a: (M, K), b: (K, N).  Optional fused BN-apply+LeakyReLU on `a` columns."""
    M, K = a.shape
    K2, N = b.shape
    assert K == K2
    norm = scale is not None

    tm_b = tm if M > tm else M          # 256 (mult of 8) or full M
    tn_b = tn if N > tn else N          # 128 or full N
    tk_b = tk if K > tk else K          # 1024 (mult of 128) or full K
    grid = (pl.cdiv(M, tm_b), pl.cdiv(N, tn_b), pl.cdiv(K, tk_b))

    in_specs = [pl.BlockSpec((tm_b, tk_b), lambda i, j, k: (i, k)),
                pl.BlockSpec((tk_b, tn_b), lambda i, j, k: (k, j))]
    operands = [a, b]
    if norm:
        in_specs += [pl.BlockSpec((1, tk_b), lambda i, j, k: (0, k)),
                     pl.BlockSpec((1, tk_b), lambda i, j, k: (0, k))]
        operands += [scale.reshape(1, K).astype(jnp.float32),
                     shift.reshape(1, K).astype(jnp.float32)]

    kernel = functools.partial(_matmul_kernel, n_k=grid[2], k_total=K,
                               tk=tk_b, norm=norm)
    return pl.pallas_call(
        kernel,
        out_shape=jax.ShapeDtypeStruct((M, N), out_dtype),
        grid=grid,
        in_specs=in_specs,
        out_specs=pl.BlockSpec((tm_b, tn_b), lambda i, j, k: (i, j)),
        scratch_shapes=[pltpu.VMEM((tm_b, tn_b), jnp.float32)],
        compiler_params=pltpu.CompilerParams(
            dimension_semantics=("parallel", "parallel", "arbitrary"),
            vmem_limit_bytes=_VMEM_LIMIT),
    )(*operands)


# ----------------------------------------------------------------------------
# Fused 3x3 stride-1 conv kernel (no im2col in HBM).
# Optional prologue: BN-apply + LeakyReLU (with re-zeroing of the padding ring).
# Optional epilogue: residual add.
# ----------------------------------------------------------------------------
def _conv3x3_kernel(*refs, nb, Ho, Wo, cin, cout, norm, add_res):
    idx = 0
    x_ref = refs[idx]; idx += 1
    w_ref = refs[idx]; idx += 1
    if norm:
        scale_ref = refs[idx]
        shift_ref = refs[idx + 1]
        mask_ref = refs[idx + 2]
        idx += 3
    if add_res:
        res_ref = refs[idx]; idx += 1
    o_ref = refs[idx]

    x = x_ref[...]                                     # (nb, Ho+2, Wo+2, cin) bf16
    if norm:
        xf = x.astype(jnp.float32)
        xf = xf * scale_ref[...].reshape(1, 1, 1, cin) \
            + shift_ref[...].reshape(1, 1, 1, cin)
        xf = jnp.where(xf >= 0, xf, _NEG_SLOPE * xf)
        xf = xf * mask_ref[...]                        # padding must be zero post-BN
        x = xf.astype(jnp.bfloat16)

    acc = jnp.zeros((nb * Ho * Wo, cout), jnp.float32)
    for t in range(9):                                 # static unrolled tap loop
        di, dj = t // 3, t % 3
        xt = x[:, di:di + Ho, dj:dj + Wo, :].reshape(nb * Ho * Wo, cin)
        acc = acc + jnp.dot(xt, w_ref[t], preferred_element_type=jnp.float32)

    if add_res:
        acc = acc + res_ref[...].astype(jnp.float32).reshape(nb * Ho * Wo, cout)
    o_ref[...] = acc.reshape(nb, Ho, Wo, cout).astype(o_ref.dtype)


def conv3x3_s1(x, w, scale=None, shift=None, residual=None, out_dtype=jnp.bfloat16):
    """3x3 / stride-1 / pad-1 conv.  x: (N,H,W,Cin) NHWC; w: OIHW (Cout,Cin,3,3)."""
    N, H, W, cin = x.shape
    cout = w.shape[0]
    norm = scale is not None
    add_res = residual is not None

    xp = jnp.pad(x, ((0, 0), (1, 1), (1, 1), (0, 0))).astype(jnp.bfloat16)
    Hp, Wp = H + 2, W + 2
    wk = jnp.transpose(w, (2, 3, 1, 0)).reshape(9, cin, cout).astype(jnp.bfloat16)

    # batch-block size: keep the halo tile around ~1 MiB so it pipelines cleanly
    per_img = Hp * Wp * cin * 2
    nb = max(1, min(N, (1024 * 1024) // max(per_img, 1)))
    while N % nb:
        nb -= 1

    in_specs = [pl.BlockSpec((nb, Hp, Wp, cin), lambda i: (i, 0, 0, 0)),
                pl.BlockSpec((9, cin, cout), lambda i: (0, 0, 0))]
    operands = [xp, wk]
    if norm:
        ring = jnp.zeros((1, Hp, Wp, 1), jnp.float32).at[:, 1:-1, 1:-1, :].set(1.0)
        in_specs += [pl.BlockSpec((1, cin), lambda i: (0, 0)),
                     pl.BlockSpec((1, cin), lambda i: (0, 0)),
                     pl.BlockSpec((1, Hp, Wp, 1), lambda i: (0, 0, 0, 0))]
        operands += [scale.reshape(1, cin).astype(jnp.float32),
                     shift.reshape(1, cin).astype(jnp.float32),
                     ring]
    if add_res:
        in_specs.append(pl.BlockSpec((nb, H, W, cout), lambda i: (i, 0, 0, 0)))
        operands.append(residual.astype(jnp.bfloat16))

    kernel = functools.partial(_conv3x3_kernel, nb=nb, Ho=H, Wo=W,
                               cin=cin, cout=cout, norm=norm, add_res=add_res)
    return pl.pallas_call(
        kernel,
        out_shape=jax.ShapeDtypeStruct((N, H, W, cout), out_dtype),
        grid=(N // nb,),
        in_specs=in_specs,
        out_specs=pl.BlockSpec((nb, H, W, cout), lambda i: (i, 0, 0, 0)),
        compiler_params=pltpu.CompilerParams(
            dimension_semantics=("parallel",),
            vmem_limit_bytes=_VMEM_LIMIT),
    )(*operands)


# ----------------------------------------------------------------------------
# BatchNorm batch statistics -> per-channel (scale, shift)   [tiled reduction]
# ----------------------------------------------------------------------------
def _bn_stats_kernel(x_ref, gamma_ref, beta_ref, scale_ref, shift_ref,
                     sum_ref, sq_ref, *, m_total):
    i = pl.program_id(0)

    @pl.when(i == 0)
    def _():
        sum_ref[...] = jnp.zeros_like(sum_ref)
        sq_ref[...] = jnp.zeros_like(sq_ref)

    x = x_ref[...].astype(jnp.float32)
    sum_ref[...] += jnp.sum(x, axis=0, keepdims=True)
    sq_ref[...] += jnp.sum(x * x, axis=0, keepdims=True)

    @pl.when(i == pl.num_programs(0) - 1)
    def _():
        mean = sum_ref[...] * (1.0 / m_total)
        var = sq_ref[...] * (1.0 / m_total) - mean * mean   # biased var (train mode)
        s = gamma_ref[...] * lax.rsqrt(var + _EPS)
        scale_ref[...] = s
        shift_ref[...] = beta_ref[...] - mean * s


def bn_scale_shift(x, gamma, beta):
    """y = x*scale + shift  ==  gamma*(x-mean)/sqrt(var+eps) + beta  (batch stats)."""
    N, H, W, C = x.shape
    M = N * H * W
    x2 = x.reshape(M, C)
    tm = _pick_divisor_tile(M, (2048, 1024, 512, 256, 128, 64, 32, 16, 8))
    kernel = functools.partial(_bn_stats_kernel, m_total=float(M))
    scale, shift = pl.pallas_call(
        kernel,
        out_shape=(jax.ShapeDtypeStruct((1, C), jnp.float32),
                   jax.ShapeDtypeStruct((1, C), jnp.float32)),
        grid=(M // tm,),
        in_specs=[pl.BlockSpec((tm, C), lambda i: (i, 0)),
                  pl.BlockSpec((1, C), lambda i: (0, 0)),
                  pl.BlockSpec((1, C), lambda i: (0, 0))],
        out_specs=(pl.BlockSpec((1, C), lambda i: (0, 0)),
                   pl.BlockSpec((1, C), lambda i: (0, 0))),
        scratch_shapes=[pltpu.VMEM((1, C), jnp.float32),
                        pltpu.VMEM((1, C), jnp.float32)],
        compiler_params=pltpu.CompilerParams(
            dimension_semantics=("arbitrary",),
            vmem_limit_bytes=_VMEM_LIMIT),
    )(x2, gamma.reshape(1, C), beta.reshape(1, C))
    return scale, shift


# ----------------------------------------------------------------------------
# Fused tail: final BN-apply + LeakyReLU + global average pool + FC
# ----------------------------------------------------------------------------
def _tail_kernel(x_ref, scale_ref, shift_ref, w_ref, b_ref, o_ref, *, hw):
    xf = x_ref[...].astype(jnp.float32)                # (nb, H*W, C)
    c = xf.shape[-1]
    xf = xf * scale_ref[...].reshape(1, 1, c) + shift_ref[...].reshape(1, 1, c)
    xf = jnp.where(xf >= 0, xf, _NEG_SLOPE * xf)
    feat = jnp.sum(xf, axis=1) * (1.0 / hw)            # (nb, C) global average pool
    out = jnp.dot(feat, w_ref[...], preferred_element_type=jnp.float32) + b_ref[...]
    o_ref[...] = out.astype(o_ref.dtype)


def bn_pool_fc(x, gamma, beta, fc_w, fc_b):
    N, H, W, C = x.shape
    nc = fc_w.shape[0]
    scale, shift = bn_scale_shift(x, gamma, beta)
    x3 = x.reshape(N, H * W, C)
    nb = _pick_divisor_tile(N, (64, 32, 16, 8))        # multiple-of-8 divisor, else N
    kernel = functools.partial(_tail_kernel, hw=float(H * W))
    return pl.pallas_call(
        kernel,
        out_shape=jax.ShapeDtypeStruct((N, nc), jnp.float32),
        grid=(N // nb,),
        in_specs=[pl.BlockSpec((nb, H * W, C), lambda i: (i, 0, 0)),
                  pl.BlockSpec((1, C), lambda i: (0, 0)),
                  pl.BlockSpec((1, C), lambda i: (0, 0)),
                  pl.BlockSpec((C, nc), lambda i: (0, 0)),
                  pl.BlockSpec((1, nc), lambda i: (0, 0))],
        out_specs=pl.BlockSpec((nb, nc), lambda i: (i, 0)),
        compiler_params=pltpu.CompilerParams(
            dimension_semantics=("parallel",),
            vmem_limit_bytes=_VMEM_LIMIT),
    )(x3, scale, shift,
      jnp.transpose(fc_w).astype(jnp.float32), fc_b.reshape(1, nc).astype(jnp.float32))


# ----------------------------------------------------------------------------
# Remaining conv flavours (stride-2 3x3 via im2col, 1x1 shortcuts via matmul)
# ----------------------------------------------------------------------------
def _im2col(x, kh, kw, stride, padding):
    N, H, W, C = x.shape
    xp = jnp.pad(x, ((0, 0), (padding, padding), (padding, padding), (0, 0)))
    Ho = (H + 2 * padding - kh) // stride + 1
    Wo = (W + 2 * padding - kw) // stride + 1
    cols = []
    for i in range(kh):
        for j in range(kw):
            cols.append(xp[:, i:i + stride * Ho:stride, j:j + stride * Wo:stride, :])
    patches = jnp.concatenate(cols, axis=-1)
    return patches.reshape(N * Ho * Wo, kh * kw * C), Ho, Wo


def conv3x3_s2(x, w):
    # TODO(synk): the two stride-2 3x3 convs still use a JAX-side im2col (only a
    # 2.25x inflation at stride 2); a fully fused strided conv kernel would remove it.
    cout, cin, kh, kw = w.shape
    patches, Ho, Wo = _im2col(x, kh, kw, 2, 1)
    wmat = jnp.transpose(w, (2, 3, 1, 0)).reshape(kh * kw * cin, cout).astype(jnp.bfloat16)
    out = pallas_matmul(patches.astype(jnp.bfloat16), wmat)
    return out.reshape(x.shape[0], Ho, Wo, cout)


def conv1x1(x, w, stride=1, scale=None, shift=None):
    cout, cin = w.shape[0], w.shape[1]
    if stride > 1:
        x = x[:, ::stride, ::stride, :]
    N, Ho, Wo, _ = x.shape
    wmat = w.reshape(cout, cin).T.astype(jnp.bfloat16)
    out = pallas_matmul(x.reshape(N * Ho * Wo, cin).astype(jnp.bfloat16), wmat,
                        scale=scale, shift=shift)
    return out.reshape(N, Ho, Wo, cout)


# ----------------------------------------------------------------------------
# Parameter initialization (mirrors the PyTorch __init__ shapes, proj=False path)
# ----------------------------------------------------------------------------
def _kaiming_conv(key, cout, cin, kh, kw):
    fan_out = cout * kh * kw
    gain = math.sqrt(2.0 / (1.0 + 0.01 ** 2))  # leaky_relu nonlinearity, default slope
    std = gain / math.sqrt(fan_out)
    return std * jax.random.normal(key, (cout, cin, kh, kw), jnp.float32)


def _make_block_params(key, in_planes, out_planes, n_layers, stride, abr):
    layers = []
    for i in range(n_layers):
        inp = in_planes if i == 0 else out_planes
        st = stride if i == 0 else 1
        key, k1, k2, k3 = jax.random.split(key, 4)
        layer = dict(
            equal=(inp == out_planes),
            stride=st,
            abr=abr,
            bn1_gamma=jnp.ones((inp,), jnp.float32),
            bn1_beta=jnp.zeros((inp,), jnp.float32),
            conv1_w=_kaiming_conv(k1, out_planes, inp, 3, 3),
            bn2_gamma=jnp.ones((out_planes,), jnp.float32),
            bn2_beta=jnp.zeros((out_planes,), jnp.float32),
            conv2_w=_kaiming_conv(k2, out_planes, out_planes, 3, 3),
        )
        if inp != out_planes:
            layer["short_w"] = _kaiming_conv(k3, out_planes, inp, 1, 1)
        layers.append(layer)
    return key, layers


def init_wideresnet(key, num_classes, depth=10, widen_factor=2):
    assert (depth - 4) % 6 == 0, "depth should be 6*k+4"
    n = (depth - 4) // 6
    ch = [16, 16 * widen_factor, 32 * widen_factor, 64 * widen_factor]
    params = {}
    key, k0 = jax.random.split(key)
    params["conv"] = _kaiming_conv(k0, ch[0], 3, 3, 3)
    key, params["block1"] = _make_block_params(key, ch[0], ch[1], n, 1, True)
    key, params["block2"] = _make_block_params(key, ch[1], ch[2], n, 2, False)
    key, params["block3"] = _make_block_params(key, ch[2], ch[3], n, 2, False)
    params["bn_gamma"] = jnp.ones((ch[3],), jnp.float32)
    params["bn_beta"] = jnp.zeros((ch[3],), jnp.float32)
    key, kf = jax.random.split(key)
    std = math.sqrt(2.0 / (ch[3] + num_classes))  # xavier_normal
    params["fc_w"] = std * jax.random.normal(kf, (num_classes, ch[3]), jnp.float32)
    params["fc_b"] = jnp.zeros((num_classes,), jnp.float32)
    return params


# ----------------------------------------------------------------------------
# Forward pass (mirrors the PyTorch module, proj=False / drop_rate=0.0)
# ----------------------------------------------------------------------------
def basic_block(x, p):
    equal, abr, stride = p["equal"], p["abr"], p["stride"]
    use_norm1 = equal or abr
    assert stride == 1 or not use_norm1  # holds for this architecture
    if use_norm1:
        scale1, shift1 = bn_scale_shift(x, p["bn1_gamma"], p["bn1_beta"])
    else:
        # Reference computes relu1(bn1(x)) here but never uses it; skip the dead work.
        scale1 = shift1 = None

    # conv1 (bn1 + LeakyReLU fused into the prologue when live)
    if stride == 1:
        out = conv3x3_s1(x, p["conv1_w"], scale=scale1, shift=shift1)
    else:
        out = conv3x3_s2(x, p["conv1_w"])              # raw x input (bn1 is dead here)

    # residual path
    if equal:
        res = x                                        # raw x
    elif abr:
        res = conv1x1(x, p["short_w"], stride, scale=scale1, shift=shift1)
    else:
        res = conv1x1(x, p["short_w"], stride)

    # bn2 + LeakyReLU fused into conv2's prologue; residual add fused into its epilogue
    scale2, shift2 = bn_scale_shift(out, p["bn2_gamma"], p["bn2_beta"])
    # TODO(synk): F.dropout for drop_rate > 0 not implemented (drop_rate=0.0 here).
    return conv3x3_s1(out, p["conv2_w"], scale=scale2, shift=shift2, residual=res)


def wideresnet_forward(x_nchw, params):
    # layout: NCHW (PyTorch) -> NHWC once; activations flow in bf16 between kernels,
    # all matmul/conv accumulation and BN statistics are f32.
    x = jnp.transpose(x_nchw, (0, 2, 3, 1)).astype(jnp.bfloat16)
    x = conv3x3_s1(x, params["conv"])
    for blk in ("block1", "block2", "block3"):
        for layer in params[blk]:
            x = basic_block(x, layer)
    return bn_pool_fc(x, params["bn_gamma"], params["bn_beta"],
                      params["fc_w"], params["fc_b"])


if __name__ == "__main__":
    key = jax.random.PRNGKey(0)
    kx, kp = jax.random.split(key)
    num_classes = 10
    x = jax.random.normal(kx, (2, 3, 16, 16), jnp.float32)  # NCHW, 3-channel input
    params = init_wideresnet(kp, num_classes=num_classes, depth=10, widen_factor=2)
    out = wideresnet_forward(x, params)
    jax.block_until_ready(out)
    assert out.shape == (2, num_classes), out.shape
    assert bool(jnp.all(jnp.isfinite(out)))
    print("KERNEL_OK")
</pallas_src>

<mosaic_0001>
module attributes {stable_mosaic.version = 11 : i64} {
  func.func @_conv3x3_kernel(%arg0: i32, %arg1: memref<2x18x18x3xbf16, #tpu.memory_space<vmem>>, %arg2: memref<9x3x16xbf16, #tpu.memory_space<vmem>>, %arg3: memref<2x16x16x16xbf16, #tpu.memory_space<vmem>>) attributes {dimension_semantics = [#tpu.dimension_semantics<parallel>], iteration_bounds = array<i64: 1>, scalar_prefetch = 0 : i64, scratch_operands = 0 : i64, tpu.core_type = #tpu.core_type<tc>, window_params = [{transform_indices = @transform_0, window_bounds = array<i64: 2, 18, 18, 3>}, {pipeline_mode = #tpu.pipeline_mode<synchronous>, transform_indices = @transform_1, window_bounds = array<i64: 9, 3, 16>}, {transform_indices = @transform_2, window_bounds = array<i64: 2, 16, 16, 16>}]} {
    %c0 = arith.constant 0 : index
    %c0_0 = arith.constant 0 : index
    %c0_1 = arith.constant 0 : index
    %c0_2 = arith.constant 0 : index
    %0 = vector.load %arg1[%c0, %c0_0, %c0_1, %c0_2] : memref<2x18x18x3xbf16, #tpu.memory_space<vmem>>, vector<2x18x18x3xbf16>
    %cst = arith.constant 0.000000e+00 : f32
    %1 = vector.broadcast %cst : f32 to vector<512x16xf32>
    %2 = vector.extract_strided_slice %0 {offsets = [0, 0, 0, 0], sizes = [2, 16, 16, 3], strides = [1, 1, 1, 1]} : vector<2x18x18x3xbf16> to vector<2x16x16x3xbf16>
    %3 = vector.shape_cast %2 : vector<2x16x16x3xbf16> to vector<512x3xbf16>
    %c0_3 = arith.constant 0 : index
    %c0_4 = arith.constant 0 : index
    %c0_5 = arith.constant 0 : index
    %4 = vector.load %arg2[%c0_3, %c0_4, %c0_5] : memref<9x3x16xbf16, #tpu.memory_space<vmem>>, vector<1x3x16xbf16>
    %5 = vector.shape_cast %4 : vector<1x3x16xbf16> to vector<3x16xbf16>
    %cst_6 = arith.constant dense<0.000000e+00> : vector<512x16xf32>
    %6 = tpu.matmul %3, %5, %cst_6 {dimension_numbers = #tpu.dot_dimension_numbers<[1], [0], [0], [1], [0, 0, 1, 1], [], []>} : vector<512x3xbf16>, vector<3x16xbf16>, vector<512x16xf32> -> vector<512x16xf32>
    %7 = arith.addf %1, %6 : vector<512x16xf32>
    %8 = vector.extract_strided_slice %0 {offsets = [0, 0, 1, 0], sizes = [2, 16, 16, 3], strides = [1, 1, 1, 1]} : vector<2x18x18x3xbf16> to vector<2x16x16x3xbf16>
    %9 = vector.shape_cast %8 : vector<2x16x16x3xbf16> to vector<512x3xbf16>
    %c1 = arith.constant 1 : index
    %c0_7 = arith.constant 0 : index
    %c0_8 = arith.constant 0 : index
    %10 = vector.load %arg2[%c1, %c0_7, %c0_8] : memref<9x3x16xbf16, #tpu.memory_space<vmem>>, vector<1x3x16xbf16>
    %11 = vector.shape_cast %10 : vector<1x3x16xbf16> to vector<3x16xbf16>
    %cst_9 = arith.constant dense<0.000000e+00> : vector<512x16xf32>
    %12 = tpu.matmul %9, %11, %cst_9 {dimension_numbers = #tpu.dot_dimension_numbers<[1], [0], [0], [1], [0, 0, 1, 1], [], []>} : vector<512x3xbf16>, vector<3x16xbf16>, vector<512x16xf32> -> vector<512x16xf32>
    %13 = arith.addf %7, %12 : vector<512x16xf32>
    %14 = vector.extract_strided_slice %0 {offsets = [0, 0, 2, 0], sizes = [2, 16, 16, 3], strides = [1, 1, 1, 1]} : vector<2x18x18x3xbf16> to vector<2x16x16x3xbf16>
    %15 = vector.shape_cast %14 : vector<2x16x16x3xbf16> to vector<512x3xbf16>
    %c2 = arith.constant 2 : index
    %c0_10 = arith.constant 0 : index
    %c0_11 = arith.constant 0 : index
    %16 = vector.load %arg2[%c2, %c0_10, %c0_11] : memref<9x3x16xbf16, #tpu.memory_space<vmem>>, vector<1x3x16xbf16>
    %17 = vector.shape_cast %16 : vector<1x3x16xbf16> to vector<3x16xbf16>
    %cst_12 = arith.constant dense<0.000000e+00> : vector<512x16xf32>
    %18 = tpu.matmul %15, %17, %cst_12 {dimension_numbers = #tpu.dot_dimension_numbers<[1], [0], [0], [1], [0, 0, 1, 1], [], []>} : vector<512x3xbf16>, vector<3x16xbf16>, vector<512x16xf32> -> vector<512x16xf32>
    %19 = arith.addf %13, %18 : vector<512x16xf32>
    %20 = vector.extract_strided_slice %0 {offsets = [0, 1, 0, 0], sizes = [2, 16, 16, 3], strides = [1, 1, 1, 1]} : vector<2x18x18x3xbf16> to vector<2x16x16x3xbf16>
    %21 = vector.shape_cast %20 : vector<2x16x16x3xbf16> to vector<512x3xbf16>
    %c3 = arith.constant 3 : index
    %c0_13 = arith.constant 0 : index
    %c0_14 = arith.constant 0 : index
    %22 = vector.load %arg2[%c3, %c0_13, %c0_14] : memref<9x3x16xbf16, #tpu.memory_space<vmem>>, vector<1x3x16xbf16>
    %23 = vector.shape_cast %22 : vector<1x3x16xbf16> to vector<3x16xbf16>
    %cst_15 = arith.constant dense<0.000000e+00> : vector<512x16xf32>
    %24 = tpu.matmul %21, %23, %cst_15 {dimension_numbers = #tpu.dot_dimension_numbers<[1], [0], [0], [1], [0, 0, 1, 1], [], []>} : vector<512x3xbf16>, vector<3x16xbf16>, vector<512x16xf32> -> vector<512x16xf32>
    %25 = arith.addf %19, %24 : vector<512x16xf32>
    %26 = vector.extract_strided_slice %0 {offsets = [0, 1, 1, 0], sizes = [2, 16, 16, 3], strides = [1, 1, 1, 1]} : vector<2x18x18x3xbf16> to vector<2x16x16x3xbf16>
    %27 = vector.shape_cast %26 : vector<2x16x16x3xbf16> to vector<512x3xbf16>
    %c4 = arith.constant 4 : index
    %c0_16 = arith.constant 0 : index
    %c0_17 = arith.constant 0 : index
    %28 = vector.load %arg2[%c4, %c0_16, %c0_17] : memref<9x3x16xbf16, #tpu.memory_space<vmem>>, vector<1x3x16xbf16>
    %29 = vector.shape_cast %28 : vector<1x3x16xbf16> to vector<3x16xbf16>
    %cst_18 = arith.constant dense<0.000000e+00> : vector<512x16xf32>
    %30 = tpu.matmul %27, %29, %cst_18 {dimension_numbers = #tpu.dot_dimension_numbers<[1], [0], [0], [1], [0, 0, 1, 1], [], []>} : vector<512x3xbf16>, vector<3x16xbf16>, vector<512x16xf32> -> vector<512x16xf32>
    %31 = arith.addf %25, %30 : vector<512x16xf32>
    %32 = vector.extract_strided_slice %0 {offsets = [0, 1, 2, 0], sizes = [2, 16, 16, 3], strides = [1, 1, 1, 1]} : vector<2x18x18x3xbf16> to vector<2x16x16x3xbf16>
    %33 = vector.shape_cast %32 : vector<2x16x16x3xbf16> to vector<512x3xbf16>
    %c5 = arith.constant 5 : index
    %c0_19 = arith.constant 0 : index
    %c0_20 = arith.constant 0 : index
    %34 = vector.load %arg2[%c5, %c0_19, %c0_20] : memref<9x3x16xbf16, #tpu.memory_space<vmem>>, vector<1x3x16xbf16>
    %35 = vector.shape_cast %34 : vector<1x3x16xbf16> to vector<3x16xbf16>
    %cst_21 = arith.constant dense<0.000000e+00> : vector<512x16xf32>
    %36 = tpu.matmul %33, %35, %cst_21 {dimension_numbers = #tpu.dot_dimension_numbers<[1], [0], [0], [1], [0, 0, 1, 1], [], []>} : vector<512x3xbf16>, vector<3x16xbf16>, vector<512x16xf32> -> vector<512x16xf32>
    %37 = arith.addf %31, %36 : vector<512x16xf32>
    %38 = vector.extract_strided_slice %0 {offsets = [0, 2, 0, 0], sizes = [2, 16, 16, 3], strides = [1, 1, 1, 1]} : vector<2x18x18x3xbf16> to vector<2x16x16x3xbf16>
    %39 = vector.shape_cast %38 : vector<2x16x16x3xbf16> to vector<512x3xbf16>
    %c6 = arith.constant 6 : index
    %c0_22 = arith.constant 0 : index
    %c0_23 = arith.constant 0 : index
    %40 = vector.load %arg2[%c6, %c0_22, %c0_23] : memref<9x3x16xbf16, #tpu.memory_space<vmem>>, vector<1x3x16xbf16>
    %41 = vector.shape_cast %40 : vector<1x3x16xbf16> to vector<3x16xbf16>
    %cst_24 = arith.constant dense<0.000000e+00> : vector<512x16xf32>
    %42 = tpu.matmul %39, %41, %cst_24 {dimension_numbers = #tpu.dot_dimension_numbers<[1], [0], [0], [1], [0, 0, 1, 1], [], []>} : vector<512x3xbf16>, vector<3x16xbf16>, vector<512x16xf32> -> vector<512x16xf32>
    %43 = arith.addf %37, %42 : vector<512x16xf32>
    %44 = vector.extract_strided_slice %0 {offsets = [0, 2, 1, 0], sizes = [2, 16, 16, 3], strides = [1, 1, 1, 1]} : vector<2x18x18x3xbf16> to vector<2x16x16x3xbf16>
    %45 = vector.shape_cast %44 : vector<2x16x16x3xbf16> to vector<512x3xbf16>
    %c7 = arith.constant 7 : index
    %c0_25 = arith.constant 0 : index
    %c0_26 = arith.constant 0 : index
    %46 = vector.load %arg2[%c7, %c0_25, %c0_26] : memref<9x3x16xbf16, #tpu.memory_space<vmem>>, vector<1x3x16xbf16>
    %47 = vector.shape_cast %46 : vector<1x3x16xbf16> to vector<3x16xbf16>
    %cst_27 = arith.constant dense<0.000000e+00> : vector<512x16xf32>
    %48 = tpu.matmul %45, %47, %cst_27 {dimension_numbers = #tpu.dot_dimension_numbers<[1], [0], [0], [1], [0, 0, 1, 1], [], []>} : vector<512x3xbf16>, vector<3x16xbf16>, vector<512x16xf32> -> vector<512x16xf32>
    %49 = arith.addf %43, %48 : vector<512x16xf32>
    %50 = vector.extract_strided_slice %0 {offsets = [0, 2, 2, 0], sizes = [2, 16, 16, 3], strides = [1, 1, 1, 1]} : vector<2x18x18x3xbf16> to vector<2x16x16x3xbf16>
    %51 = vector.shape_cast %50 : vector<2x16x16x3xbf16> to vector<512x3xbf16>
    %c8 = arith.constant 8 : index
    %c0_28 = arith.constant 0 : index
    %c0_29 = arith.constant 0 : index
    %52 = vector.load %arg2[%c8, %c0_28, %c0_29] : memref<9x3x16xbf16, #tpu.memory_space<vmem>>, vector<1x3x16xbf16>
    %53 = vector.shape_cast %52 : vector<1x3x16xbf16> to vector<3x16xbf16>
    %cst_30 = arith.constant dense<0.000000e+00> : vector<512x16xf32>
    %54 = tpu.matmul %51, %53, %cst_30 {dimension_numbers = #tpu.dot_dimension_numbers<[1], [0], [0], [1], [0, 0, 1, 1], [], []>} : vector<512x3xbf16>, vector<3x16xbf16>, vector<512x16xf32> -> vector<512x16xf32>
    %55 = arith.addf %49, %54 : vector<512x16xf32>
    %56 = vector.shape_cast %55 : vector<512x16xf32> to vector<2x16x16x16xf32>
    %57 = arith.truncf %56 : vector<2x16x16x16xf32> to vector<2x16x16x16xbf16>
    %c0_31 = arith.constant 0 : index
    %c0_32 = arith.constant 0 : index
    %c0_33 = arith.constant 0 : index
    %c0_34 = arith.constant 0 : index
    %58 = vector.load %arg3[%c0_31, %c0_32, %c0_33, %c0_34] : memref<2x16x16x16xbf16, #tpu.memory_space<vmem>>, vector<2x16x16x16xbf16>
    tpu.vector_store %arg3[%c0_31, %c0_32, %c0_33, %c0_34], %57 {strides = array<i32>} : memref<2x16x16x16xbf16, #tpu.memory_space<vmem>>, vector<2x16x16x16xbf16>,
    return
  }
  func.func @transform_0(%arg0: i32) -> (i32, i32, i32, i32) {
    %c0_i32 = arith.constant 0 : i32
    %c0_i32_0 = arith.constant 0 : i32
    %c0_i32_1 = arith.constant 0 : i32
    %c0_i32_2 = arith.constant 0 : i32
    return %arg0, %c0_i32, %c0_i32_0, %c0_i32_1 : i32, i32, i32, i32
  }
  func.func @transform_1(%arg0: i32) -> (i32, i32, i32) {
    %c0_i32 = arith.constant 0 : i32
    %c0_i32_0 = arith.constant 0 : i32
    %c0_i32_1 = arith.constant 0 : i32
    %c0_i32_2 = arith.constant 0 : i32
    return %c0_i32, %c0_i32_0, %c0_i32_1 : i32, i32, i32
  }
  func.func @transform_2(%arg0: i32) -> (i32, i32, i32, i32) {
    %c0_i32 = arith.constant 0 : i32
    %c0_i32_0 = arith.constant 0 : i32
    %c0_i32_1 = arith.constant 0 : i32
    %c0_i32_2 = arith.constant 0 : i32
    return %arg0, %c0_i32, %c0_i32_0, %c0_i32_1 : i32, i32, i32, i32
  }
}

</mosaic_0001>

<bundles_post_ra>
// kernel: tpu_custom_call.1
= control target key start
LH: loop header
LB: loop body
LE: loop exit
PB: predicated region body
PF: predicated region fallthrough
CT: control target
= control target key end

     0   :  { %vm1088_vm0 = vcmask 1040384   ;;  %vm1089_vm1 = vcmask 1041408   ;;  %v7012_v1 = vmov 65535   ;;  %vm122_vm2 = vsmask.f32 3328  ;;  %s9785_s0 = inlined_call_operand.vmem [shape: bf16[2,18,18,3], index: 0, kind: input, shape index: {}]   ;;  %s9786_s1 = inlined_call_operand.vmem [shape: bf16[9,3,16], index: 1, kind: input, shape index: {}]   ;;  %s9787_s2 = inlined_call_operand.hbm [shape: bf16[2,16,16,16], index: 2, kind: output, shape index: {}]  }
   0x1   :  { %v5434_v0 = vld [vmem:[%s9786_s1 + $0x2] sm:$0x3]  ;;  %v1090_v2 = vsel %vm1088_vm0, 4294967295, %v7012_v1  ;;  %v14_v4 = vld [vmem:[%s9785_s0 + $0x4] sm:$0xf]  ;;  %vm991_vm4 = vcmask 23552  }
   0x2   :  { %v13_v3 = vld [vmem:[%s9785_s0] sm:$0xf]  ;;  %v7040_v5 = vsel %vm1089_vm1, %v1090_v2, 0  ;;  %v7045_v6 = vld [vmem:[%s9785_s0 + $0x8] sm:$0x1]  ;;  %v135_v10 = vshll.u32 %v14_v4, 16 }
   0x3   :  { %v126_v7 = vshrl.u32 %v13_v3, 16  ;;  %v1093_v8 = vand.u32 %v5434_v0, %v7040_v5  ;;  %vm123_vm3 = vsmask.f32 7440  ;;  %v129_v9 = vshll.u32 %v13_v3, 16  ;;  %v67_v11 = vld [vmem:[%s9785_s0 + $0xd8] sm:$0xf] }
   0x4   :  { %v139_v13 = vshrl.u32 %v14_v4, 16  ;;  %v145_v14 = vshll.u32 %v7045_v6, 16  ;;  %v68_v15 = vld [vmem:[%s9785_s0 + $0xdc] sm:$0xf]  ;;  %v137_v17 = vrot.slane %v135_v10, 5  ;;  %v510_v19 = vshrl.u32 %v67_v11, 16  ;;  %vm7066_vm5 = vmor %vm122_vm2, %vm123_vm3 }
   0x5   :  { %v128_v12 = vrot.slane %v126_v7, 4  ;;  %6893 = vmatprep.subr.bf16.mxu1 %v1093_v8  ;;  %6299 = vmatprep.subr.bf16.mxu0 %v1093_v8  ;;  %v131_v16 = vrot.slane %v129_v9, 5  ;;  %v69_v18 = vld [vmem:[%s9785_s0 + $0xe0] sm:$0x1]  ;;  %v513_v20 = vshll.u32 %v67_v11, 16  ;;  %v519_v22 = vshll.u32 %v68_v15, 16 }
   0x6   :  { %6894 = vmatpush3.bf16.msra.mxu1 %v1093_v8  ;;  %6300 = vmatpush3.bf16.msra.mxu0 %v1093_v8  ;;  %v141_v21 = vrot.slane %v139_v13, 4  ;;  %v523_v23 = vshrl.u32 %v68_v15, 16  ;;  %v121_v24 = vld [vmem:[%s9786_s1] sm:$0x3]  ;;  %v512_v26 = vrot.slane %v510_v19, 4  ;;  %v529_v28 = vshll.u32 %v69_v18, 16 }
   0x7   :  { %v132_v25 = vor.u32 %v131_v16, %v128_v12  ;;  %v515_v27 = vrot.slane %v513_v20, 5  ;;  %v16_v29 = vld [vmem:[%s9785_s0 + $0xc] sm:$0xf]  ;;  %v9950_v30 = vmov 0  ;;  %v147_v32 = vrot.slane %v145_v14, 5 }
   0x8   :  { %v9951_v30 = vsel %vm7066_vm5, 4294967295, %v9950_v30  ;;  %v142_v31 = vor.u32 %v141_v21, %v137_v17  ;;  %v521_v33 = vrot.slane %v519_v22, 5  ;;  %v525_v34 = vrot.slane %v523_v23, 4  ;;  %v7073_v35 = vld [vmem:[%s9785_s0 + $0x10] sm:$0xf] }
   0x9   :  { %9952 = vst [vmem:[#allocation5_spill] sm:$0xff] %v9951_v30  ;;  %v133_v36 = vrot.slane %v132_v25, 4  ;;  %v516_v37 = vor.u32 %v515_v27, %v512_v26  ;;  %v531_v38 = vrot.slane %v529_v28, 5  ;;  %v7076_v39 = vand.u32 %v7040_v5, %v121_v24  ;;  %v18_v46 = vld [vmem:[%s9785_s0 + $0x14] sm:$0x1] }
   0xa   :  { %v143_v40 = vrot.slane %v142_v31, 4  ;;  %v526_v41 = vor.u32 %v525_v34, %v521_v33  ;;  %v150_v42 = vshrl.u32 %v16_v29, 16  ;;  %v153_v43 = vshll.u32 %v16_v29, 16  ;;  %v70_v53 = vld [vmem:[%s9785_s0 + $0xe4] sm:$0xf] }
   0xb   :  { %v138_v44 = vsel %vm7066_vm5, %v133_v36, %v137_v17  ;;  %v517_v45 = vrot.slane %v516_v37, 4  ;;  %6365 = vmatprep.subr.bf16.mxu1 %v7076_v39  ;;  %v159_v47 = vshll.u32 %v7073_v35, 16  ;;  %v163_v48 = vshrl.u32 %v7073_v35, 16  ;;  %v71_v58 = vld [vmem:[%s9785_s0 + $0xe8] sm:$0xf] }
   0xc   :  { %v148_v49 = vsel %vm7066_vm5, %v143_v40, %v147_v32  ;;  %v527_v50 = vrot.slane %v526_v41, 4  ;;  %v152_v51 = vrot.slane %v150_v42, 4  ;;  %v155_v52 = vrot.slane %v153_v43, 5  ;;  %v72_v63 = vld [vmem:[%s9785_s0 + $0xec] sm:$0x1] }
   0xd   :  { %v5435_v54 = vcombine.low %v138_v44, %v148_v49  ;;  %v522_v55 = vsel %vm7066_vm5, %v517_v45, %v521_v33  ;;  %v161_v56 = vrot.slane %v159_v47, 5  ;;  %v165_v57 = vrot.slane %v163_v48, 4  ;;  %v5595_v4 = vld [vmem:[%s9786_s1 + $0x4] sm:$0x3]  ;;  %v19_v11 = vld [vmem:[%s9785_s0 + $0x18] sm:$0xf] }
   0xe   :  { %v532_v60 = vsel %vm7066_vm5, %v527_v50, %v531_v38  ;;  %v156_v61 = vor.u32 %v155_v52, %v152_v51  ;;  %v169_v62 = vshll.u32 %v18_v46, 16  ;;  %v534_v3 = vshrl.u32 %v70_v53, 16  ;;  %v20_v16 = vld [vmem:[%s9785_s0 + $0x1c] sm:$0xf]  ;;  %v21_v21 = vld [vmem:[%s9785_s0 + $0x20] sm:$0x1] }
   0xf   :  { %6301 = vmatprep.mubr.msk.bf16.mxu0 %vm991_vm4, %v5435_v54  ;;  %v5451_v0 = vcombine.low %v522_v55, %v532_v60  ;;  %v166_v1 = vor.u32 %v165_v57, %v161_v56  ;;  %v537_v9 = vshll.u32 %v70_v53, 16  ;;  %v543_v10 = vshll.u32 %v71_v58, 16  ;;  %v73_v26 = vld [vmem:[%s9785_s0 + $0xf0] sm:$0xf]  ;;  %v74_v37 = vld [vmem:[%s9785_s0 + $0xf4] sm:$0xf] }
  0x10   :  { %v157_v7 = vrot.slane %v156_v61, 4  ;;  %v171_v8 = vrot.slane %v169_v62, 5  ;;  %v536_v13 = vrot.slane %v534_v3, 4  ;;  %v547_v14 = vshrl.u32 %v71_v58, 16  ;;  %v75_v46 = vld [vmem:[%s9785_s0 + $0xf8] sm:$0x1] }
  0x11   :  { %6333 = vmatprep.mubr.msk.bf16.mxu1 %vm991_vm4, %v5451_v0  ;;  %v167_v12 = vrot.slane %v166_v1, 4  ;;  %v553_v15 = vshll.u32 %v72_v63, 16  ;;  %v539_v18 = vrot.slane %v537_v9, 5  ;;  %v545_v19 = vrot.slane %v543_v10, 5  ;;  %v22_v52 = vld [vmem:[%s9785_s0 + $0x24] sm:$0xf] }
  0x12   :  { %v162_v17 = vsel %vm7066_vm5, %v157_v7, %v161_v56  ;;  %v2386_v20 = vand.u32 %v5595_v4, %v7040_v5  ;;  %v549_v23 = vrot.slane %v547_v14, 4  ;;  %v174_v25 = vshrl.u32 %v19_v11, 16  ;;  %v23_v57 = vld [vmem:[%s9785_s0 + $0x28] sm:$0xf]  ;;  %v24_v3 = vld [vmem:[%s9785_s0 + $0x2c] sm:$0x1] }
  0x13   :  { %v172_v22 = vsel %vm7066_vm5, %v167_v12, %v171_v8  ;;  %v555_v24 = vrot.slane %v553_v15, 5  ;;  %v540_v28 = vor.u32 %v539_v18, %v536_v13  ;;  %v177_v29 = vshll.u32 %v19_v11, 16  ;;  %v76_v11 = vld [vmem:[%s9785_s0 + $0xfc] sm:$0xf] }
  0x14   :  { %v7125_v27 = vcombine.low %v162_v17, %v172_v22  ;;  %6431 = vmatprep.subr.bf16.mxu0 %v2386_v20  ;;  %v183_v31 = vshll.u32 %v20_v16, 16  ;;  %v550_v32 = vor.u32 %v549_v23, %v545_v19  ;;  %v176_v33 = vrot.slane %v174_v25, 4  ;;  %v78_v23 = vld [vmem:[%s9785_s0 + $0x104] sm:$0x1] }
  0x15   :  { %v187_v34 = vshrl.u32 %v20_v16, 16  ;;  %v193_v36 = vshll.u32 %v21_v21, 16  ;;  %v541_v38 = vrot.slane %v540_v28, 4  ;;  %v179_v40 = vrot.slane %v177_v29, 5  ;;  %v77_v16 = vld [vmem:[%s9785_s0 + $0x100] sm:$0xf] }
  0x16   :  { %9953 = vst [vmem:[#allocation6_spill] sm:$0xff] %v7125_v27  ;;  %6302 = vmatmul.mubr.msk.bf16.vlgmr.msra.gmra.mxu0 %vm991_vm4, %v7125_v27  ;;  %v185_v41 = vrot.slane %v183_v31, 5  ;;  %v558_v42 = vshrl.u32 %v73_v26, 16  ;;  %v551_v43 = vrot.slane %v550_v32, 4  ;;  %v561_v47 = vshll.u32 %v73_v26, 16 }
  0x17   :  { %6432 = vmatpush3.bf16.msra.mxu0 %v2386_v20  ;;  %v189_v44 = vrot.slane %v187_v34, 4  ;;  %v195_v45 = vrot.slane %v193_v36, 5  ;;  %v546_v48 = vsel %vm7066_vm5, %v541_v38, %v545_v19  ;;  %v180_v49 = vor.u32 %v179_v40, %v176_v33  ;;  %v25_v31 = vld [vmem:[%s9785_s0 + $0x30] sm:$0xf] }
  0x18   :  { %v560_v50 = vrot.slane %v558_v42, 4  ;;  %v567_v51 = vshll.u32 %v74_v37, 16  ;;  %v556_v53 = vsel %vm7066_vm5, %v551_v43, %v555_v24  ;;  %v563_v55 = vrot.slane %v561_v47, 5  ;;  %v26_v42 = vld [vmem:[%s9785_s0 + $0x34] sm:$0xf] }
  0x19   :  { %v190_v54 = vor.u32 %v189_v44, %v185_v41  ;;  %v571_v56 = vshrl.u32 %v74_v37, 16  ;;  %v7145_v58 = vcombine.low %v546_v48, %v556_v53  ;;  %v181_v60 = vrot.slane %v180_v49, 4 }
  0x1a   :  { %v569_v61 = vrot.slane %v567_v51, 5  ;;  %v577_v62 = vshll.u32 %v75_v46, 16  ;;  %v564_v0 = vor.u32 %v563_v55, %v560_v50  ;;  %v198_v4 = vshrl.u32 %v22_v52, 16  ;;  %v27_v50 = vld [vmem:[%s9785_s0 + $0x38] sm:$0x1] }
  0x1b   :  { %9954 = vst [vmem:[#allocation7_spill] sm:$0xff] %v7145_v58  ;;  %v191_v63 = vrot.slane %v190_v54, 4  ;;  %v573_v1 = vrot.slane %v571_v56, 4  ;;  %6334 = vmatmul.mubr.msk.bf16.vlgmr.msra.gmra.mxu1 %vm991_vm4, %v7145_v58  ;;  %v186_v7 = vsel %vm7066_vm5, %v181_v60, %v185_v41  ;;  %v201_v9 = vshll.u32 %v22_v52, 16  ;;  %v79_v56 = vld [vmem:[%s9785_s0 + $0x108] sm:$0xf] }
  0x1c   :  { %v579_v8 = vrot.slane %v577_v62, 5  ;;  %v207_v10 = vshll.u32 %v23_v57, 16  ;;  %6366 = vmatpush3.bf16.msra.mxu1 %v7076_v39  ;;  %v565_v13 = vrot.slane %v564_v0, 4  ;;  %v200_v15 = vrot.slane %v198_v4, 4 }
  0x1d   :  { %v196_v12 = vsel %vm7066_vm5, %v191_v63, %v195_v45  ;;  %v574_v14 = vor.u32 %v573_v1, %v569_v61  ;;  %v203_v18 = vrot.slane %v201_v9, 5  ;;  %v211_v20 = vshrl.u32 %v23_v57, 16  ;;  %v80_v63 = vld [vmem:[%s9785_s0 + $0x10c] sm:$0xf] }
  0x1e   :  { %v7163_v17 = vcombine.low %v186_v7, %v196_v12  ;;  %v209_v19 = vrot.slane %v207_v10, 5  ;;  %v570_v21 = vsel %vm7066_vm5, %v565_v13, %v569_v61  ;;  %v217_v39 = vshll.u32 %v24_v3, 16  ;;  %v81_v10 = vld [vmem:[%s9785_s0 + $0x110] sm:$0x1] }
  0x1f   :  { %v575_v22 = vrot.slane %v574_v14, 4  ;;  %v582_v24 = vshrl.u32 %v76_v11, 16  ;;  %v204_v25 = vor.u32 %v203_v18, %v200_v15  ;;  %v213_v26 = vrot.slane %v211_v20, 4 }
  0x20   :  { %9955 = vst [vmem:[#allocation8_spill] sm:$0xff] %v7163_v17  ;;  %6305 = vmatprep.mubr.msk.bf16.mxu0 %vm991_vm4, %v7163_v17  ;;  %v585_v28 = vshll.u32 %v76_v11, 16  ;;  %v591_v29 = vshll.u32 %v77_v16, 16  ;;  %v219_v33 = vrot.slane %v217_v39, 5  ;;  %v595_v36 = vshrl.u32 %v77_v16, 16 }
  0x21   :  { %v580_v32 = vsel %vm7066_vm5, %v575_v22, %v579_v8  ;;  %v584_v34 = vrot.slane %v582_v24, 4  ;;  %v205_v38 = vrot.slane %v204_v25, 4  ;;  %v214_v40 = vor.u32 %v213_v26, %v209_v19  ;;  %v28_v16 = vld [vmem:[%s9785_s0 + $0x3c] sm:$0xf]  ;;  %v29_v22 = vld [vmem:[%s9785_s0 + $0x40] sm:$0xf] }
  0x22   :  { %v7177_v37 = vcombine.low %v570_v21, %v580_v32  ;;  %v587_v41 = vrot.slane %v585_v28, 5  ;;  %v593_v43 = vrot.slane %v591_v29, 5  ;;  %v597_v44 = vrot.slane %v595_v36, 4  ;;  %v30_v29 = vld [vmem:[%s9785_s0 + $0x44] sm:$0x1] }
  0x23   :  { %v601_v45 = vshll.u32 %v78_v23, 16  ;;  %v222_v46 = vshrl.u32 %v25_v31, 16  ;;  %v210_v47 = vsel %vm7066_vm5, %v205_v38, %v209_v19  ;;  %v215_v48 = vrot.slane %v214_v40, 4  ;;  %v82_v40 = vld [vmem:[%s9785_s0 + $0x114] sm:$0xf] }
  0x24   :  { %9956 = vst [vmem:[#allocation9_spill] sm:$0xff] %v7177_v37  ;;  %6337 = vmatprep.mubr.msk.bf16.mxu1 %vm991_vm4, %v7177_v37  ;;  %v588_v49 = vor.u32 %v587_v41, %v584_v34  ;;  %v225_v51 = vshll.u32 %v25_v31, 16  ;;  %v598_v52 = vor.u32 %v597_v44, %v593_v43  ;;  %v231_v55 = vshll.u32 %v26_v42, 16 }
  0x25   :  { %v603_v53 = vrot.slane %v601_v45, 5  ;;  %v224_v54 = vrot.slane %v222_v46, 4  ;;  %v220_v57 = vsel %vm7066_vm5, %v215_v48, %v219_v33  ;;  %v235_v62 = vshrl.u32 %v26_v42, 16  ;;  %v83_v45 = vld [vmem:[%s9785_s0 + $0x118] sm:$0xf] }
  0x26   :  { %v589_v60 = vrot.slane %v588_v49, 4  ;;  %v227_v61 = vrot.slane %v225_v51, 5  ;;  %v7197_v0 = vcombine.low %v210_v47, %v220_v57  ;;  %v599_v1 = vrot.slane %v598_v52, 4 }
  0x27   :  { %v233_v3 = vrot.slane %v231_v55, 5  ;;  %v241_v4 = vshll.u32 %v27_v50, 16  ;;  %v237_v9 = vrot.slane %v235_v62, 4  ;;  %v606_v11 = vshrl.u32 %v79_v56, 16 }
  0x28   :  { %9957 = vst [vmem:[#allocation10_spill] sm:$0xff] %v7197_v0  ;;  %v594_v7 = vsel %vm7066_vm5, %v589_v60, %v593_v43  ;;  %v228_v8 = vor.u32 %v227_v61, %v224_v54  ;;  %6306 = vmatmul.mubr.msk.bf16.gmra.mxu0 %vm991_vm4, %v7197_v0  ;;  %v604_v12 = vsel %vm7066_vm5, %v599_v1, %v603_v53  ;;  %v609_v14 = vshll.u32 %v79_v56, 16  ;;  %v84_v56 = vld [vmem:[%s9785_s0 + $0x11c] sm:$0x1] }
  0x29   :  { %v243_v13 = vrot.slane %v241_v4, 5  ;;  %v615_v15 = vshll.u32 %v80_v63, 16  ;;  %v7211_v18 = vcombine.low %v594_v7, %v604_v12  ;;  %v238_v20 = vor.u32 %v237_v9, %v233_v3 }
  0x2a   :  { %v229_v19 = vrot.slane %v228_v8, 4  ;;  %v608_v21 = vrot.slane %v606_v11, 4  ;;  %v611_v39 = vrot.slane %v609_v14, 5  ;;  %v619_v24 = vshrl.u32 %v80_v63, 16 }
  0x2b   :  { %9958 = vst [vmem:[#allocation11_spill] sm:$0xff] %v7211_v18  ;;  %v617_v23 = vrot.slane %v615_v15, 5  ;;  %v625_v25 = vshll.u32 %v81_v10, 16  ;;  %6338 = vmatmul.mubr.msk.bf16.gmra.mxu1 %vm991_vm4, %v7211_v18  ;;  %v239_v28 = vrot.slane %v238_v20, 4  ;;  %v246_v31 = vshrl.u32 %v28_v16, 16 }
  0x2c   :  { %v234_v26 = vsel %vm7066_vm5, %v229_v19, %v233_v3  ;;  %v249_v32 = vshll.u32 %v28_v16, 16  ;;  %v612_v33 = vor.u32 %v611_v39, %v608_v21  ;;  %v621_v34 = vrot.slane %v619_v24, 4  ;;  %v7243_v3 = vld [vmem:[%s9785_s0 + $0x48] sm:$0xf]  ;;  %v7250_v10 = vld [vmem:[%s9785_s0 + $0x4c] sm:$0xf] }
  0x2d   :  { %v627_v36 = vrot.slane %v625_v25, 5  ;;  %v255_v38 = vshll.u32 %v29_v22, 16  ;;  %v244_v41 = vsel %vm7066_vm5, %v239_v28, %v243_v13  ;;  %v248_v42 = vrot.slane %v246_v31, 4  ;;  %v7259_v19 = vld [vmem:[%s9785_s0 + $0x50] sm:$0x1] }
  0x2e   :  { %v251_v43 = vrot.slane %v249_v32, 5  ;;  %v259_v44 = vshrl.u32 %v29_v22, 16  ;;  %v7231_v46 = vcombine.low %v234_v26, %v244_v41  ;;  %v613_v47 = vrot.slane %v612_v33, 4  ;;  %v85_v25 = vld [vmem:[%s9785_s0 + $0x120] sm:$0xf] }
  0x2f   :  { %v622_v48 = vor.u32 %v621_v34, %v617_v23  ;;  %v257_v49 = vrot.slane %v255_v38, 5  ;;  %v265_v52 = vshll.u32 %v30_v29, 16  ;;  %v630_v53 = vshrl.u32 %v82_v40, 16  ;;  %v86_v32 = vld [vmem:[%s9785_s0 + $0x124] sm:$0xf] }
  0x30   :  { %9959 = vst [vmem:[#allocation12_spill] sm:$0xff] %v7231_v46  ;;  %v252_v50 = vor.u32 %v251_v43, %v248_v42  ;;  %v261_v51 = vrot.slane %v259_v44, 4  ;;  %6309 = vmatprep.mubr.msk.bf16.mxu0 %vm991_vm4, %v7231_v46  ;;  %v618_v54 = vsel %vm7066_vm5, %v613_v47, %v617_v23  ;;  %v633_v57 = vshll.u32 %v82_v40, 16 }
  0x31   :  { %v623_v55 = vrot.slane %v622_v48, 4  ;;  %v639_v60 = vshll.u32 %v83_v45, 16  ;;  %v267_v63 = vrot.slane %v265_v52, 5  ;;  %v632_v1 = vrot.slane %v630_v53, 4  ;;  %v87_v48 = vld [vmem:[%s9785_s0 + $0x128] sm:$0x1] }
  0x32   :  { %v253_v61 = vrot.slane %v252_v50, 4  ;;  %v262_v62 = vor.u32 %v261_v51, %v257_v49  ;;  %v635_v7 = vrot.slane %v633_v57, 5  ;;  %v643_v9 = vshrl.u32 %v83_v45, 16  ;;  %v7288_v50 = vld [vmem:[%s9785_s0 + $0x54] sm:$0xf] }
  0x33   :  { %v628_v4 = vsel %vm7066_vm5, %v623_v55, %v627_v36  ;;  %v641_v8 = vrot.slane %v639_v60, 5  ;;  %v649_v14 = vshll.u32 %v84_v56, 16  ;;  %v270_v20 = vshrl.u32 %v7243_v3, 16  ;;  %v7295_v55 = vld [vmem:[%s9785_s0 + $0x58] sm:$0xf] }
  0x34   :  { %v7252_v11 = vcombine.low %v618_v54, %v628_v4  ;;  %v258_v12 = vsel %vm7066_vm5, %v253_v61, %v257_v49  ;;  %v263_v13 = vrot.slane %v262_v62, 4  ;;  %v636_v15 = vor.u32 %v635_v7, %v632_v1 }
  0x35   :  { %v645_v16 = vrot.slane %v643_v9, 4  ;;  %v273_v21 = vshll.u32 %v7243_v3, 16  ;;  %v651_v39 = vrot.slane %v649_v14, 5  ;;  %v279_v23 = vshll.u32 %v7250_v10, 16  ;;  %v7309_v9 = vld [vmem:[%s9785_s0 + $0x5c] sm:$0x1] }
  0x36   :  { %9960 = vst [vmem:[#allocation13_spill] sm:$0xff] %v7252_v11  ;;  %6341 = vmatprep.mubr.msk.bf16.mxu1 %vm991_vm4, %v7252_v11  ;;  %v268_v22 = vsel %vm7066_vm5, %v263_v13, %v267_v63  ;;  %v283_v24 = vshrl.u32 %v7250_v10, 16  ;;  %v637_v28 = vrot.slane %v636_v15, 4  ;;  %v272_v31 = vrot.slane %v270_v20, 4  ;;  %v88_v14 = vld [vmem:[%s9785_s0 + $0x12c] sm:$0xf] }
  0x37   :  { %v7272_v26 = vcombine.low %v258_v12, %v268_v22  ;;  %v646_v29 = vor.u32 %v645_v16, %v641_v8  ;;  %v275_v33 = vrot.slane %v273_v21, 5  ;;  %v281_v34 = vrot.slane %v279_v23, 5  ;;  %v89_v22 = vld [vmem:[%s9785_s0 + $0x130] sm:$0xf] }
  0x38   :  { %v285_v36 = vrot.slane %v283_v24, 4  ;;  %v289_v38 = vshll.u32 %v7259_v19, 16  ;;  %v642_v40 = vsel %vm7066_vm5, %v637_v28, %v641_v8  ;;  %v654_v42 = vshrl.u32 %v85_v25, 16 }
  0x39   :  { %9961 = vst [vmem:[#allocation14_spill] sm:$0xff] %v7272_v26  ;;  %6310 = vmatmul.mubr.msk.bf16.gmra.mxu0 %vm991_vm4, %v7272_v26  ;;  %v647_v41 = vrot.slane %v646_v29, 4  ;;  %v657_v43 = vshll.u32 %v85_v25, 16  ;;  %v276_v44 = vor.u32 %v275_v33, %v272_v31  ;;  %v663_v49 = vshll.u32 %v86_v32, 16 }
  0x3a   :  { %v286_v45 = vor.u32 %v285_v36, %v281_v34  ;;  %v291_v47 = vrot.slane %v289_v38, 5  ;;  %v656_v52 = vrot.slane %v654_v42, 4  ;;  %v667_v54 = vshrl.u32 %v86_v32, 16  ;;  %v90_v32 = vld [vmem:[%s9785_s0 + $0x134] sm:$0x1] }
  0x3b   :  { %v652_v51 = vsel %vm7066_vm5, %v647_v41, %v651_v39  ;;  %v659_v53 = vrot.slane %v657_v43, 5  ;;  %v277_v57 = vrot.slane %v276_v44, 4  ;;  %v665_v61 = vrot.slane %v663_v49, 5  ;;  %v7333_v41 = vld [vmem:[%s9785_s0 + $0x60] sm:$0xf] }
  0x3c   :  { %v7297_v56 = vcombine.low %v642_v40, %v652_v51  ;;  %v287_v60 = vrot.slane %v286_v45, 4  ;;  %v669_v63 = vrot.slane %v667_v54, 4  ;;  %v673_v1 = vshll.u32 %v87_v48, 16 }
  0x3d   :  { %v660_v62 = vor.u32 %v659_v53, %v656_v52  ;;  %v294_v4 = vshrl.u32 %v7288_v50, 16  ;;  %v282_v7 = vsel %vm7066_vm5, %v277_v57, %v281_v34  ;;  %v297_v12 = vshll.u32 %v7288_v50, 16  ;;  %v7342_v52 = vld [vmem:[%s9785_s0 + $0x64] sm:$0xf] }
  0x3e   :  { %9962 = vst [vmem:[#allocation15_spill] sm:$0xff] %v7297_v56  ;;  %6342 = vmatmul.mubr.msk.bf16.gmra.mxu1 %vm991_vm4, %v7297_v56  ;;  %v292_v8 = vsel %vm7066_vm5, %v287_v60, %v291_v47  ;;  %v303_v13 = vshll.u32 %v7295_v55, 16  ;;  %v670_v20 = vor.u32 %v669_v63, %v665_v61  ;;  %v675_v21 = vrot.slane %v673_v1, 5  ;;  %v7352_v1 = vld [vmem:[%s9785_s0 + $0x68] sm:$0x1] }
  0x3f   :  { %v7316_v15 = vcombine.low %v282_v7, %v292_v8  ;;  %v661_v16 = vrot.slane %v660_v62, 4  ;;  %v296_v39 = vrot.slane %v294_v4, 4  ;;  %v299_v23 = vrot.slane %v297_v12, 5 }
  0x40   :  { %v305_v24 = vrot.slane %v303_v13, 5  ;;  %v307_v25 = vshrl.u32 %v7295_v55, 16  ;;  %v671_v29 = vrot.slane %v670_v20, 4  ;;  %v313_v31 = vshll.u32 %v7309_v9, 16 }
  0x41   :  { %9963 = vst [vmem:[#allocation16_spill] sm:$0xff] %v7316_v15  ;;  %6313 = vmatprep.mubr.msk.bf16.mxu0 %vm991_vm4, %v7316_v15  ;;  %v666_v28 = vsel %vm7066_vm5, %v661_v16, %v665_v61  ;;  %v678_v33 = vshrl.u32 %v88_v14, 16  ;;  %v300_v34 = vor.u32 %v299_v23, %v296_v39  ;;  %v681_v38 = vshll.u32 %v88_v14, 16  ;;  %v91_v14 = vld [vmem:[%s9785_s0 + $0x138] sm:$0xf] }
  0x42   :  { %v309_v36 = vrot.slane %v307_v25, 4  ;;  %v687_v40 = vshll.u32 %v89_v22, 16  ;;  %v676_v42 = vsel %vm7066_vm5, %v671_v29, %v675_v21  ;;  %v315_v43 = vrot.slane %v313_v31, 5  ;;  %v92_v39 = vld [vmem:[%s9785_s0 + $0x13c] sm:$0xf] }
  0x43   :  { %v680_v44 = vrot.slane %v678_v33, 4  ;;  %v691_v45 = vshrl.u32 %v89_v22, 16  ;;  %v7337_v47 = vcombine.low %v666_v28, %v676_v42  ;;  %v301_v48 = vrot.slane %v300_v34, 4  ;;  %v93_v33 = vld [vmem:[%s9785_s0 + $0x140] sm:$0x1] }
  0x44   :  { %v310_v49 = vor.u32 %v309_v36, %v305_v24  ;;  %v683_v51 = vrot.slane %v681_v38, 5  ;;  %v689_v53 = vrot.slane %v687_v40, 5  ;;  %v697_v57 = vshll.u32 %v90_v32, 16 }
  0x45   :  { %9964 = vst [vmem:[#allocation17_spill] sm:$0xff] %v7337_v47  ;;  %v693_v54 = vrot.slane %v691_v45, 4  ;;  %v318_v60 = vshrl.u32 %v7333_v41, 16  ;;  %6345 = vmatprep.mubr.msk.bf16.mxu1 %vm991_vm4, %v7337_v47  ;;  %v306_v61 = vsel %vm7066_vm5, %v301_v48, %v305_v24  ;;  %v321_v4 = vshll.u32 %v7333_v41, 16 }
  0x46   :  { %v311_v62 = vrot.slane %v310_v49, 4  ;;  %v684_v63 = vor.u32 %v683_v51, %v680_v44  ;;  %v699_v8 = vrot.slane %v697_v57, 5  ;;  %v327_v13 = vshll.u32 %v7342_v52, 16  ;;  %v7387_v51 = vld [vmem:[%s9785_s0 + $0x70] sm:$0xf] }
  0x47   :  { %v694_v7 = vor.u32 %v693_v54, %v689_v53  ;;  %v320_v12 = vrot.slane %v318_v60, 4  ;;  %v323_v21 = vrot.slane %v321_v4, 5  ;;  %v331_v22 = vshrl.u32 %v7342_v52, 16 }
  0x48   :  { %v316_v16 = vsel %vm7066_vm5, %v311_v62, %v315_v43  ;;  %v685_v20 = vrot.slane %v684_v63, 4  ;;  %v329_v25 = vrot.slane %v327_v13, 5  ;;  %v337_v28 = vshll.u32 %v7352_v1, 16  ;;  %v7380_v43 = vld [vmem:[%s9785_s0 + $0x6c] sm:$0xf] }
  0x49   :  { %v7365_v23 = vcombine.low %v306_v61, %v316_v16  ;;  %v695_v24 = vrot.slane %v694_v7, 4  ;;  %v324_v31 = vor.u32 %v323_v21, %v320_v12  ;;  %v333_v32 = vrot.slane %v331_v22, 4 }
  0x4a   :  { %v690_v29 = vsel %vm7066_vm5, %v685_v20, %v689_v53  ;;  %v702_v34 = vshrl.u32 %v91_v14, 16  ;;  %v339_v38 = vrot.slane %v337_v28, 5  ;;  %v705_v40 = vshll.u32 %v91_v14, 16 }
  0x4b   :  { %9965 = vst [vmem:[#allocation18_spill] sm:$0xff] %v7365_v23  ;;  %6314 = vmatmul.mubr.msk.bf16.gmra.mxu0 %vm991_vm4, %v7365_v23  ;;  %v700_v36 = vsel %vm7066_vm5, %v695_v24, %v699_v8  ;;  %v711_v42 = vshll.u32 %v92_v39, 16  ;;  %v325_v45 = vrot.slane %v324_v31, 4  ;;  %v334_v48 = vor.u32 %v333_v32, %v329_v25 }
  0x4c   :  { %v7382_v44 = vcombine.low %v690_v29, %v700_v36  ;;  %v704_v49 = vrot.slane %v702_v34, 4  ;;  %v707_v53 = vrot.slane %v705_v40, 5  ;;  %v715_v57 = vshrl.u32 %v92_v39, 16 }
  0x4d   :  { %v713_v54 = vrot.slane %v711_v42, 5  ;;  %v721_v60 = vshll.u32 %v93_v33, 16 }
  0x4e   :  { %9966 = vst [vmem:[#allocation19_spill] sm:$0xff] %v7382_v44 }
  0x4f   :  { %7 = vsyncpa [#allocation3], 0  ;;  %6346 = vmatmul.mubr.msk.bf16.gmra.mxu1 %vm991_vm4, %v7382_v44  ;;  %v330_v61 = vsel %vm7066_vm5, %v325_v45, %v329_v25  ;;  %v335_v62 = vrot.slane %v334_v48, 4  ;;  %v7396_v63 = vld [vmem:[%s9785_s0 + $0x74] sm:$0x1]  ;;  %v342_v4 = vshrl.u32 %v7380_v43, 16  ;;  %v708_v8 = vor.u32 %v707_v53, %v704_v49 }
  0x50   :  { %v345_v7 = vshll.u32 %v7380_v43, 16  ;;  %v717_v12 = vrot.slane %v715_v57, 4  ;;  %v723_v13 = vrot.slane %v721_v60, 5  ;;  %v351_v14 = vshll.u32 %v7387_v51, 16  ;;  %v94_v16 = vld [vmem:[%s9785_s0 + $0x144] sm:$0xf] }
  0x51   :  { %v340_v20 = vsel %vm7066_vm5, %v335_v62, %v339_v38  ;;  %v344_v21 = vrot.slane %v342_v4, 4  ;;  %v355_v39 = vshrl.u32 %v7387_v51, 16  ;;  %v95_v24 = vld [vmem:[%s9785_s0 + $0x148] sm:$0xf]  ;;  %v709_v28 = vrot.slane %v708_v8, 4 }
  0x52   :  { %v347_v22 = vrot.slane %v345_v7, 5  ;;  %v7410_v25 = vcombine.low %v330_v61, %v340_v20  ;;  %v718_v29 = vor.u32 %v717_v12, %v713_v54  ;;  %v353_v31 = vrot.slane %v351_v14, 5  ;;  %v96_v42 = vld [vmem:[%s9785_s0 + $0x14c] sm:$0x1]  ;;  %v7423_v61 = vld [vmem:[%s9785_s0 + $0x78] sm:$0xf] }
  0x53   :  { %v357_v33 = vrot.slane %v355_v39, 4  ;;  %v361_v34 = vshll.u32 %v7396_v63, 16  ;;  %v726_v36 = vshrl.u32 %v94_v16, 16  ;;  %v714_v38 = vsel %vm7066_vm5, %v709_v28, %v713_v54  ;;  %v7430_v8 = vld [vmem:[%s9785_s0 + $0x7c] sm:$0xf] }
  0x54   :  { %9967 = vst [vmem:[#allocation20_spill] sm:$0xff] %v7410_v25  ;;  %v348_v32 = vor.u32 %v347_v22, %v344_v21  ;;  %6317 = vmatprep.mubr.msk.bf16.mxu0 %vm991_vm4, %v7410_v25  ;;  %v719_v40 = vrot.slane %v718_v29, 4  ;;  %v729_v45 = vshll.u32 %v94_v16, 16  ;;  %v735_v48 = vshll.u32 %v95_v24, 16 }
  0x55   :  { %v358_v53 = vor.u32 %v357_v33, %v353_v31  ;;  %v363_v57 = vrot.slane %v361_v34, 5  ;;  %v728_v60 = vrot.slane %v726_v36, 4  ;;  %v739_v7 = vshrl.u32 %v95_v24, 16  ;;  %v97_v33 = vld [vmem:[%s9785_s0 + $0x150] sm:$0xf] }
  0x56   :  { %v349_v49 = vrot.slane %v348_v32, 4  ;;  %v724_v62 = vsel %vm7066_vm5, %v719_v40, %v723_v13  ;;  %v731_v54 = vrot.slane %v729_v45, 5  ;;  %v737_v4 = vrot.slane %v735_v48, 5  ;;  %v7439_v13 = vld [vmem:[%s9785_s0 + $0x80] sm:$0x1] }
  0x57   :  { %v7432_v12 = vcombine.low %v714_v38, %v724_v62  ;;  %v359_v16 = vrot.slane %v358_v53, 4  ;;  %v745_v20 = vshll.u32 %v96_v42, 16  ;;  %v741_v22 = vrot.slane %v739_v7, 4  ;;  %v7457_v42 = vld [vmem:[%s9785_s0 + $0x154] sm:$0xf] }
  0x58   :  { %v354_v14 = vsel %vm7066_vm5, %v349_v49, %v353_v31  ;;  %v732_v21 = vor.u32 %v731_v54, %v728_v60  ;;  %v366_v39 = vshrl.u32 %v7423_v61, 16  ;;  %v369_v24 = vshll.u32 %v7423_v61, 16 }
  0x59   :  { %9968 = vst [vmem:[#allocation21_spill] sm:$0xff] %v7432_v12  ;;  %6349 = vmatprep.mubr.msk.bf16.mxu1 %vm991_vm4, %v7432_v12  ;;  %v364_v28 = vsel %vm7066_vm5, %v359_v16, %v363_v57  ;;  %v747_v29 = vrot.slane %v745_v20, 5  ;;  %v375_v31 = vshll.u32 %v7430_v8, 16  ;;  %v379_v32 = vshrl.u32 %v7430_v8, 16  ;;  %v7467_v20 = vld [vmem:[%s9785_s0 + $0x158] sm:$0x1] }
  0x5a   :  { %v7452_v34 = vcombine.low %v354_v14, %v364_v28  ;;  %v733_v36 = vrot.slane %v732_v21, 4  ;;  %v742_v38 = vor.u32 %v741_v22, %v737_v4  ;;  %v368_v40 = vrot.slane %v366_v39, 4  ;;  %v7473_v22 = vld [vmem:[%s9785_s0 + $0x84] sm:$0xf]  ;;  %v7539_v12 = vld [vmem:[%s9785_s0 + $0x94] sm:$0xf] }
  0x5b   :  { %v371_v45 = vrot.slane %v369_v24, 5  ;;  %v377_v48 = vrot.slane %v375_v31, 5  ;;  %v381_v49 = vrot.slane %v379_v32, 4  ;;  %v385_v53 = vshll.u32 %v7439_v13, 16  ;;  %v7481_v31 = vld [vmem:[%s9785_s0 + $0x88] sm:$0xf] }
  0x5c   :  { %9969 = vst [vmem:[#allocation22_spill] sm:$0xff] %v7452_v34  ;;  %6318 = vmatmul.mubr.msk.bf16.gmra.mxu0 %vm991_vm4, %v7452_v34  ;;  %v738_v57 = vsel %vm7066_vm5, %v733_v36, %v737_v4  ;;  %v743_v60 = vrot.slane %v742_v38, 4  ;;  %v750_v62 = vshrl.u32 %v97_v33, 16  ;;  %v753_v54 = vshll.u32 %v97_v33, 16 }
  0x5d   :  { %v372_v7 = vor.u32 %v371_v45, %v368_v40  ;;  %v382_v14 = vor.u32 %v381_v49, %v377_v48  ;;  %v387_v16 = vrot.slane %v385_v53, 5  ;;  %v759_v21 = vshll.u32 %v7457_v42, 16 }
  0x5e   :  { %v748_v4 = vsel %vm7066_vm5, %v743_v60, %v747_v29  ;;  %v752_v39 = vrot.slane %v750_v62, 4  ;;  %v755_v24 = vrot.slane %v753_v54, 5  ;;  %v763_v28 = vshrl.u32 %v7457_v42, 16 }
  0x5f   :  { %v7483_v32 = vcombine.low %v738_v57, %v748_v4  ;;  %v373_v33 = vrot.slane %v372_v7, 4  ;;  %v383_v36 = vrot.slane %v382_v14, 4  ;;  %v761_v38 = vrot.slane %v759_v21, 5  ;;  %v7496_v57 = vld [vmem:[%s9785_s0 + $0x8c] sm:$0x1] }
  0x60   :  { %v756_v40 = vor.u32 %v755_v24, %v752_v39  ;;  %v765_v45 = vrot.slane %v763_v28, 4  ;;  %v769_v49 = vshll.u32 %v7467_v20, 16  ;;  %v390_v29 = vshrl.u32 %v7473_v22, 16  ;;  %v7503_v7 = vld [vmem:[%s9785_s0 + $0x15c] sm:$0xf] }
  0x61   :  { %9970 = vst [vmem:[#allocation23_spill] sm:$0xff] %v7483_v32  ;;  %6350 = vmatmul.mubr.msk.bf16.gmra.mxu1 %vm991_vm4, %v7483_v32  ;;  %v378_v53 = vsel %vm7066_vm5, %v373_v33, %v377_v48  ;;  %v388_v60 = vsel %vm7066_vm5, %v383_v36, %v387_v16  ;;  %v393_v62 = vshll.u32 %v7473_v22, 16  ;;  %v399_v54 = vshll.u32 %v7481_v31, 16  ;;  %v7510_v16 = vld [vmem:[%s9785_s0 + $0x160] sm:$0xf] }
  0x62   :  { %v7505_v14 = vcombine.low %v378_v53, %v388_v60  ;;  %v757_v48 = vrot.slane %v756_v40, 4  ;;  %v766_v21 = vor.u32 %v765_v45, %v761_v38  ;;  %v771_v4 = vrot.slane %v769_v49, 5  ;;  %v7521_v45 = vld [vmem:[%s9785_s0 + $0x164] sm:$0x1] }
  0x63   :  { %v392_v39 = vrot.slane %v390_v29, 4  ;;  %v395_v24 = vrot.slane %v393_v62, 5  ;;  %v401_v28 = vrot.slane %v399_v54, 5  ;;  %v403_v33 = vshrl.u32 %v7481_v31, 16  ;;  %9972 = vst [vmem:[#allocation25_spill] sm:$0xff] %v7521_v45 }
  0x64   :  { %9971 = vst [vmem:[#allocation24_spill] sm:$0xff] %v7505_v14  ;;  %6321 = vmatprep.mubr.msk.bf16.mxu0 %vm991_vm4, %v7505_v14  ;;  %v762_v36 = vsel %vm7066_vm5, %v757_v48, %v761_v38  ;;  %v767_v53 = vrot.slane %v766_v21, 4  ;;  %v409_v40 = vshll.u32 %v7496_v57, 16  ;;  %v774_v49 = vshrl.u32 %v7503_v7, 16  ;;  %v7529_v38 = vld [vmem:[%s9785_s0 + $0x90] sm:$0xf] }
  0x65   :  { %v396_v29 = vor.u32 %v395_v24, %v392_v39  ;;  %v405_v60 = vrot.slane %v403_v33, 4  ;;  %v777_v62 = vshll.u32 %v7503_v7, 16  ;;  %v783_v54 = vshll.u32 %v7510_v16, 16 }
  0x66   :  { %v772_v48 = vsel %vm7066_vm5, %v767_v53, %v771_v4  ;;  %v411_v21 = vrot.slane %v409_v40, 5  ;;  %v776_v59 = vrot.slane %v774_v49, 4  ;;  %v787_v2 = vshrl.u32 %v7510_v16, 16  ;;  %v7550_v49 = vld [vmem:[%s9785_s0 + $0x98] sm:$0x1] }
  0x67   :  { %v7534_v32 = vcombine.low %v762_v36, %v772_v48  ;;  %v397_v39 = vrot.slane %v396_v29, 4  ;;  %v406_v24 = vor.u32 %v405_v60, %v401_v28  ;;  %v779_v33 = vrot.slane %v777_v62, 5  ;;  %v7557_v48 = vld [vmem:[%s9785_s0 + $0x168] sm:$0xf] }
  0x68   :  { %v785_v44 = vrot.slane %v783_v54, 5  ;;  %v789_v47 = vrot.slane %v787_v2, 4  ;;  %v793_v56 = vshll.u32 %v7521_v45, 16  ;;  %v414_v4 = vshrl.u32 %v7529_v38, 16  ;;  %9974 = vst [vmem:[#allocation27_spill] sm:$0xff] %v7557_v48 }
  0x69   :  { %9973 = vst [vmem:[#allocation26_spill] sm:$0xff] %v7534_v32  ;;  %6353 = vmatprep.mubr.msk.bf16.mxu1 %vm991_vm4, %v7534_v32  ;;  %v402_v36 = vsel %vm7066_vm5, %v397_v39, %v401_v28  ;;  %v407_v53 = vrot.slane %v406_v24, 4  ;;  %v780_v40 = vor.u32 %v779_v33, %v776_v59  ;;  %v417_v29 = vshll.u32 %v7529_v38, 16 }
  0x6a   :  { %v790_v2 = vor.u32 %v789_v47, %v785_v44  ;;  %v795_v60 = vrot.slane %v793_v56, 5  ;;  %v416_v62 = vrot.slane %v414_v4, 4  ;;  %v423_v54 = vshll.u32 %v7539_v12, 16  ;;  %v7565_v47 = vld [vmem:[%s9785_s0 + $0x16c] sm:$0xf] }
  0x6b   :  { %v412_v59 = vsel %vm7066_vm5, %v407_v53, %v411_v21  ;;  %v781_v28 = vrot.slane %v780_v40, 4  ;;  %v419_v39 = vrot.slane %v417_v29, 5  ;;  %v427_v24 = vshrl.u32 %v7539_v12, 16  ;;  %v7575_v53 = vld [vmem:[%s9785_s0 + $0x170] sm:$0x1] }
  0x6c   :  { %v7567_v56 = vcombine.low %v402_v36, %v412_v59  ;;  %v791_v33 = vrot.slane %v790_v2, 4  ;;  %v425_v4 = vrot.slane %v423_v54, 5  ;;  %v433_v32 = vshll.u32 %v7550_v49, 16  ;;  %9976 = vst [vmem:[#allocation29_spill] sm:$0xff] %v7575_v53 }
  0x6d   :  { %v786_v11 = vsel %vm7066_vm5, %v781_v28, %v785_v44  ;;  %v420_v18 = vor.u32 %v419_v39, %v416_v62  ;;  %v429_v21 = vrot.slane %v427_v24, 4  ;;  %v798_v40 = vshrl.u32 %v7557_v48, 16  ;;  %v7587_v62 = vld [vmem:[%s9785_s0 + $0x9c] sm:$0xf]  ;;  %v7594_v24 = vld [vmem:[%s9785_s0 + $0xa0] sm:$0xf] }
  0x6e   :  { %9975 = vst [vmem:[#allocation28_spill] sm:$0xff] %v7567_v56  ;;  %6322 = vmatmul.mubr.msk.bf16.gmra.mxu0 %vm991_vm4, %v7567_v56  ;;  %v796_v36 = vsel %vm7066_vm5, %v791_v33, %v795_v60  ;;  %v435_v29 = vrot.slane %v433_v32, 5  ;;  %v801_v2 = vshll.u32 %v7557_v48, 16  ;;  %v807_v44 = vshll.u32 %v7565_v47, 16 }
  0x6f   :  { %v7589_v54 = vcombine.low %v786_v11, %v796_v36  ;;  %v421_v59 = vrot.slane %v420_v18, 4  ;;  %v430_v28 = vor.u32 %v429_v21, %v425_v4  ;;  %v800_v39 = vrot.slane %v798_v40, 4  ;;  %v7605_v21 = vld [vmem:[%s9785_s0 + $0xa4] sm:$0x1] }
  0x70   :  { %v803_v32 = vrot.slane %v801_v2, 5  ;;  %v809_v60 = vrot.slane %v807_v44, 5  ;;  %v811_v33 = vshrl.u32 %v7565_v47, 16  ;;  %v817_v37 = vshll.u32 %v7575_v53, 16 }
  0x71   :  { %9977 = vst [vmem:[#allocation30_spill] sm:$0xff] %v7589_v54  ;;  %6354 = vmatmul.mubr.msk.bf16.gmra.mxu1 %vm991_vm4, %v7589_v54  ;;  %v426_v11 = vsel %vm7066_vm5, %v421_v59, %v425_v4  ;;  %v431_v18 = vrot.slane %v430_v28, 4  ;;  %v438_v40 = vshrl.u32 %v7587_v62, 16  ;;  %v441_v36 = vshll.u32 %v7587_v62, 16  ;;  %v7613_v54 = vld [vmem:[%s9785_s0 + $0x174] sm:$0xf] }
  0x72   :  { %v804_v2 = vor.u32 %v803_v32, %v800_v39  ;;  %v813_v44 = vrot.slane %v811_v33, 4  ;;  %v819_v58 = vrot.slane %v817_v37, 5  ;;  %v447_v56 = vshll.u32 %v7594_v24, 16  ;;  %9978 = vst [vmem:[#allocation31_spill] sm:$0xff] %v7613_v54  ;;  %v7621_v39 = vld [vmem:[%s9785_s0 + $0x178] sm:$0xf] }
  0x73   :  { %v436_v4 = vsel %vm7066_vm5, %v431_v18, %v435_v29  ;;  %v440_v59 = vrot.slane %v438_v40, 4  ;;  %v443_v28 = vrot.slane %v441_v36, 5  ;;  %v451_v14 = vshrl.u32 %v7594_v24, 16  ;;  %9979 = vst [vmem:[#allocation32_spill] sm:$0xff] %v7621_v39 }
  0x74   :  { %v7623_v37 = vcombine.low %v426_v11, %v436_v4  ;;  %v805_v32 = vrot.slane %v804_v2, 4  ;;  %v814_v33 = vor.u32 %v813_v44, %v809_v60  ;;  %v449_v34 = vrot.slane %v447_v56, 5  ;;  %v7634_v11 = vld [vmem:[%s9785_s0 + $0x17c] sm:$0x1] }
  0x75   :  { %v444_v25 = vor.u32 %v443_v28, %v440_v59  ;;  %v453_v23 = vrot.slane %v451_v14, 4  ;;  %v457_v15 = vshll.u32 %v7605_v21, 16  ;;  %v822_v29 = vshrl.u32 %v7613_v54, 16  ;;  %9981 = vst [vmem:[#allocation34_spill] sm:$0xff] %v7634_v11  ;;  %v7641_v59 = vld [vmem:[%s9785_s0 + $0xa8] sm:$0xf] }
  0x76   :  { %9980 = vst [vmem:[#allocation33_spill] sm:$0xff] %v7623_v37  ;;  %6325 = vmatprep.mubr.msk.bf16.mxu0 %vm991_vm4, %v7623_v37  ;;  %v810_v18 = vsel %vm7066_vm5, %v805_v32, %v809_v60  ;;  %v815_v40 = vrot.slane %v814_v33, 4  ;;  %v825_v56 = vshll.u32 %v7613_v54, 16  ;;  %v831_v14 = vshll.u32 %v7621_v39, 16  ;;  %v7649_v37 = vld [vmem:[%s9785_s0 + $0xac] sm:$0xf] }
  0x77   :  { %v445_v36 = vrot.slane %v444_v25, 4  ;;  %v454_v2 = vor.u32 %v453_v23, %v449_v34  ;;  %v459_v44 = vrot.slane %v457_v15, 5  ;;  %v824_v4 = vrot.slane %v822_v29, 4 }
  0x78   :  { %v820_v60 = vsel %vm7066_vm5, %v815_v40, %v819_v58  ;;  %v827_v28 = vrot.slane %v825_v56, 5  ;;  %v833_v32 = vrot.slane %v831_v14, 5  ;;  %v835_v33 = vshrl.u32 %v7621_v39, 16  ;;  %v7659_v58 = vld [vmem:[%s9785_s0 + $0xb0] sm:$0x1] }
  0x79   :  { %v7651_v23 = vcombine.low %v810_v18, %v820_v60  ;;  %v450_v15 = vsel %vm7066_vm5, %v445_v36, %v449_v34  ;;  %v455_v25 = vrot.slane %v454_v2, 4  ;;  %v841_v29 = vshll.u32 %v7634_v11, 16  ;;  %v7672_v2 = vld [vmem:[%s9785_s0 + $0x180] sm:$0xf] }
  0x7a   :  { %v828_v26 = vor.u32 %v827_v28, %v824_v4  ;;  %v837_v46 = vrot.slane %v835_v33, 4  ;;  %v462_v40 = vshrl.u32 %v7641_v59, 16  ;;  %v465_v56 = vshll.u32 %v7641_v59, 16  ;;  %9983 = vst [vmem:[#allocation36_spill] sm:$0xff] %v7672_v2 }
  0x7b   :  { %9982 = vst [vmem:[#allocation35_spill] sm:$0xff] %v7651_v23  ;;  %6357 = vmatprep.mubr.msk.bf16.mxu1 %vm991_vm4, %v7651_v23  ;;  %v460_v34 = vsel %vm7066_vm5, %v455_v25, %v459_v44  ;;  %v843_v18 = vrot.slane %v841_v29, 5  ;;  %v471_v14 = vshll.u32 %v7649_v37, 16  ;;  %v475_v36 = vshrl.u32 %v7649_v37, 16  ;;  %v7679_v23 = vld [vmem:[%s9785_s0 + $0x184] sm:$0xf] }
  0x7c   :  { %v7674_v4 = vcombine.low %v450_v15, %v460_v34  ;;  %v829_v60 = vrot.slane %v828_v26, 4  ;;  %v838_v28 = vor.u32 %v837_v46, %v833_v32  ;;  %v464_v33 = vrot.slane %v462_v40, 4  ;;  %9985 = vst [vmem:[#allocation38_spill] sm:$0xff] %v7679_v23 }
  0x7d   :  { %v467_v44 = vrot.slane %v465_v56, 5  ;;  %v473_v25 = vrot.slane %v471_v14, 5  ;;  %v477_v29 = vrot.slane %v475_v36, 4  ;;  %v481_v0 = vshll.u32 %v7659_v58, 16  ;;  %v7691_v56 = vld [vmem:[%s9785_s0 + $0x188] sm:$0x1] }
  0x7e   :  { %9984 = vst [vmem:[#allocation37_spill] sm:$0xff] %v7674_v4  ;;  %6326 = vmatmul.mubr.msk.bf16.gmra.mxu0 %vm991_vm4, %v7674_v4  ;;  %v834_v15 = vsel %vm7066_vm5, %v829_v60, %v833_v32  ;;  %v839_v34 = vrot.slane %v838_v28, 4  ;;  %v846_v46 = vshrl.u32 %v7672_v2, 16  ;;  %v849_v26 = vshll.u32 %v7672_v2, 16  ;;  %9986 = vst [vmem:[#allocation39_spill] sm:$0xff] %v7691_v56 }
  0x7f   :  { %v468_v40 = vor.u32 %v467_v44, %v464_v33  ;;  %v478_v17 = vor.u32 %v477_v29, %v473_v25  ;;  %v483_v27 = vrot.slane %v481_v0, 5  ;;  %v855_v14 = vshll.u32 %v7679_v23, 16  ;;  %v7697_v36 = vld [vmem:[%s9785_s0 + $0xb4] sm:$0xf]  ;;  %v7705_v0 = vld [vmem:[%s9785_s0 + $0xb8] sm:$0xf] }
  0x80   :  { %v844_v32 = vsel %vm7066_vm5, %v839_v34, %v843_v18  ;;  %v848_v60 = vrot.slane %v846_v46, 4  ;;  %v851_v28 = vrot.slane %v849_v26, 5  ;;  %v859_v33 = vshrl.u32 %v7679_v23, 16  ;;  %v6935_v23 = vld [vmem:[%s9785_s0 + $0x14] sm:$0x1] }
  0x81   :  { %v7707_v44 = vcombine.low %v834_v15, %v844_v32  ;;  %v469_v29 = vrot.slane %v468_v40, 4  ;;  %v479_v4 = vrot.slane %v478_v17, 4  ;;  %v857_v2 = vrot.slane %v855_v14, 5  ;;  %v7720_v17 = vld [vmem:[%s9785_s0 + $0xbc] sm:$0x1] }
  0x82   :  { %v852_v11 = vor.u32 %v851_v28, %v848_v60  ;;  %v861_v54 = vrot.slane %v859_v33, 4  ;;  %v865_v39 = vshll.u32 %v7691_v56, 16  ;;  %v486_v18 = vshrl.u32 %v7697_v36, 16  ;;  %v7727_v40 = vld [vmem:[%s9785_s0 + $0x18c] sm:$0xf] }
  0x83   :  { %9987 = vst [vmem:[#allocation40_spill] sm:$0xff] %v7707_v44  ;;  %6358 = vmatmul.mubr.msk.bf16.gmra.mxu1 %vm991_vm4, %v7707_v44  ;;  %v474_v34 = vsel %vm7066_vm5, %v469_v29, %v473_v25  ;;  %v484_v46 = vsel %vm7066_vm5, %v479_v4, %v483_v27  ;;  %v489_v15 = vshll.u32 %v7697_v36, 16  ;;  %v495_v26 = vshll.u32 %v7705_v0, 16  ;;  %9988 = vst [vmem:[#allocation41_spill] sm:$0xff] %v7727_v40  ;;  %v7734_v27 = vld [vmem:[%s9785_s0 + $0x190] sm:$0xf] }
  0x84   :  { %v7729_v14 = vcombine.low %v474_v34, %v484_v46  ;;  %v853_v25 = vrot.slane %v852_v11, 4  ;;  %v862_v32 = vor.u32 %v861_v54, %v857_v2  ;;  %v867_v60 = vrot.slane %v865_v39, 5  ;;  %9990 = vst [vmem:[#allocation43_spill] sm:$0xff] %v7734_v27 }
  0x85   :  { %v488_v4 = vrot.slane %v486_v18, 4  ;;  %v491_v28 = vrot.slane %v489_v15, 5  ;;  %v497_v33 = vrot.slane %v495_v26, 5  ;;  %v499_v29 = vshrl.u32 %v7705_v0, 16  ;;  %v7746_v18 = vld [vmem:[%s9785_s0 + $0x194] sm:$0x1] }
  0x86   :  { %9989 = vst [vmem:[#allocation42_spill] sm:$0xff] %v7729_v14  ;;  %6329 = vmatprep.mubr.msk.bf16.mxu0 %vm991_vm4, %v7729_v14  ;;  %v858_v34 = vsel %vm7066_vm5, %v853_v25, %v857_v2  ;;  %v863_v46 = vrot.slane %v862_v32, 4  ;;  %v505_v54 = vshll.u32 %v7720_v17, 16  ;;  %v870_v39 = vshrl.u32 %v7727_v40, 16  ;;  %9991 = vst [vmem:[#allocation44_spill] sm:$0xff] %v7746_v18 }
  0x87   :  { %v492_v11 = vor.u32 %v491_v28, %v488_v4  ;;  %v501_v44 = vrot.slane %v499_v29, 4  ;;  %v873_v15 = vshll.u32 %v7727_v40, 16  ;;  %v879_v26 = vshll.u32 %v7734_v27, 16 }
  0x88   :  { %v868_v14 = vsel %vm7066_vm5, %v863_v46, %v867_v60  ;;  %v507_v2 = vrot.slane %v505_v54, 5  ;;  %v872_v25 = vrot.slane %v870_v39, 4  ;;  %v883_v32 = vshrl.u32 %v7734_v27, 16  ;;  %v5660_v60 = vld [vmem:[%s9786_s1 + $0x6] sm:$0x3] }
  0x89   :  { %v7753_v56 = vcombine.low %v858_v34, %v868_v14  ;;  %v493_v4 = vrot.slane %v492_v11, 4  ;;  %v502_v28 = vor.u32 %v501_v44, %v497_v33  ;;  %v875_v29 = vrot.slane %v873_v15, 5 }
  0x8a   :  { %v1979_v53 = vrot.slane %v6935_v23, 5  ;;  %v881_v40 = vrot.slane %v879_v26, 5  ;;  %v885_v48 = vrot.slane %v883_v32, 4  ;;  %v889_v45 = vshll.u32 %v7746_v18, 16  ;;  %v6936_v23 = vld [vmem:[%s9785_s0] sm:$0xf] }
  0x8b   :  { %9992 = vst [vmem:[#allocation45_spill] sm:$0xff] %v7753_v56  ;;  %6361 = vmatprep.mubr.msk.bf16.mxu1 %vm991_vm4, %v7753_v56  ;;  %v498_v44 = vsel %vm7066_vm5, %v493_v4, %v497_v33  ;;  %v503_v14 = vrot.slane %v502_v28, 4  ;;  %v876_v34 = vor.u32 %v875_v29, %v872_v25  ;;  %vm1964_vm6 = vcmask 1042432   ;;  %v6937_v33 = vld [vmem:[%s9785_s0 + $0x4] sm:$0xf] }
  0x8c   :  { %v886_v46 = vor.u32 %v885_v48, %v881_v40  ;;  %v891_v54 = vrot.slane %v889_v45, 5  ;;  %vm1965_vm7 = vcmask 1046532   ;;  %v5563_v39 = vrot.slane %v6936_v23, 9  ;;  %v5695_v25 = vld [vmem:[%s9786_s1 + $0x8] sm:$0x3] }
  0x8d   :  { %v508_v11 = vsel %vm7066_vm5, %v503_v14, %v507_v2  ;;  %v877_v15 = vrot.slane %v876_v34, 4  ;;  %vm7771_vm8 = vmor %vm1964_vm6, %vm1965_vm7  ;;  %v9993_v26 = vmov 0  ;;  %v1969_v48 = vrot.slane %v6937_v33, 5  ;;  %v6938_v4 = vld [vmem:[%s9785_s0 + $0xc] sm:$0xf] }
  0x8e   :  { %v9994_v26 = vsel %vm7771_vm8, 4294967295, %v9993_v26  ;;  %v7779_v45 = vand.u32 %v5660_v60, %v7040_v5  ;;  %v7784_v32 = vcombine.low %v498_v44, %v508_v11  ;;  %v887_v2 = vrot.slane %v886_v46, 4 }
  0x8f   :  { %9995 = vst [vmem:[#allocation46_spill] sm:$0xff] %v9994_v26  ;;  %v5564_v28 = vrot.slane %v6938_v4, 9  ;;  %v882_v29 = vsel %vm7066_vm5, %v877_v15, %v881_v40  ;;  %v1970_v14 = vsel %vm7771_vm8, %v5563_v39, %v1969_v48  ;;  %v1971_v60 = vrot.slane %v1969_v48, 4  ;;  %v10078_v26 = vld [vmem:[#allocation14_spill] sm:$0xff] }
  0x90   :  { %9996 = vst [vmem:[#allocation47_spill] sm:$0xff] %v7784_v32  ;;  %6497 = vmatprep.subr.bf16.mxu1 %v7779_v45  ;;  %v9997_v34 = vrot.slane %v7073_v35, 5  ;;  %6330 = vmatmul.mubr.msk.bf16.gmra.mxu0 %vm991_vm4, %v7784_v32  ;;  %v892_v44 = vsel %vm7066_vm5, %v887_v2, %v891_v54  ;;  %v5499_v46 = vcombine.low %v6936_v23, %v6937_v33  ;;  %v10000_v48 = vrot.slane %v7045_v6, 5  ;;  %v6939_v54 = vld [vmem:[%s9785_s0 + $0x18] sm:$0xf] }
  0x91   :  { %v3178_v39 = vand.u32 %v5695_v25, %v7040_v5  ;;  %v7805_v15 = vcombine.low %v882_v29, %v892_v44  ;;  %v5565_v35 = vrot.slane %v6939_v54, 9  ;;  %v6940_v33 = vld [vmem:[%s9785_s0 + $0x1c] sm:$0xf]  ;;  %v6941_v6 = vld [vmem:[%s9785_s0 + $0x20] sm:$0x1]  ;;  %vm5353_vm9 = vcmask 125952  }
  0x92   :  { %v1978_v56 = vrot.slane %v9997_v34, 4  ;;  %v9998_v11 = vmov %v9997_v34  ;;  %v1973_v34 = vsel %vm7771_vm8, %v1971_v60, %v10000_v48  ;;  %v1983_v25 = vrot.slane %v6940_v33, 5  ;;  %v6943_v60 = vld [vmem:[%s9785_s0 + $0x24] sm:$0xf]  ;;  %v6944_v48 = vld [vmem:[%s9785_s0 + $0x2c] sm:$0x1] }
  0x93   :  { %v1977_v40 = vsel %vm7771_vm8, %v5564_v28, %v9998_v11  ;;  %9999 = vst [vmem:[#allocation48_spill] sm:$0xff] %v7805_v15  ;;  %v5596_v23 = vcombine.low %v1970_v14, %v1973_v34  ;;  %6563 = vmatprep.subr.bf16.mxu0 %v3178_v39  ;;  %v1986_v2 = vrot.slane %v6941_v6, 5  ;;  %6362 = vmatmul.mubr.msk.bf16.gmra.mxu1 %vm991_vm4, %v7805_v15  ;;  %v5566_v44 = vrot.slane %v6943_v60, 9 }
  0x94   :  { %v1980_v32 = vsel %vm7771_vm8, %v1978_v56, %v1979_v53  ;;  %v6942_v53 = vld [vmem:[%s9785_s0 + $0x28] sm:$0xf]  ;;  %6367 = vmatprep.mubr.msk.bf16.mxu1 %vm991_vm4, %v5499_v46  ;;  %v1984_v29 = vsel %vm7771_vm8, %v5565_v35, %v1983_v25  ;;  %v1985_v14 = vrot.slane %v1983_v25, 4  ;;  %v1993_v34 = vrot.slane %v6944_v48, 5  ;;  %v6946_v35 = vld [vmem:[%s9785_s0 + $0x30] sm:$0xf] }
  0x95   :  { %v1990_v56 = vrot.slane %v6942_v53, 5  ;;  %6433 = vmatprep.mubr.msk.bf16.mxu0 %vm991_vm4, %v5596_v23  ;;  %v7829_v28 = vcombine.low %v1977_v40, %v1980_v32  ;;  %v6945_v32 = vld [vmem:[%s9785_s0 + $0x34] sm:$0xf]  ;;  %v5567_v23 = vrot.slane %v6946_v35, 9  ;;  %v6947_v25 = vld [vmem:[%s9785_s0 + $0x38] sm:$0x1]  ;;  %v7862_v27 = vcombine.low %v6939_v54, %v6940_v33 }
  0x96   :  { %v1997_v46 = vrot.slane %v6945_v32, 5  ;;  %v1987_v40 = vsel %vm7771_vm8, %v1985_v14, %v1986_v2  ;;  %v2000_v6 = vrot.slane %v6947_v25, 5  ;;  %v6948_v48 = vld [vmem:[%s9785_s0 + $0x10] sm:$0xf]  ;;  %v6949_v2 = vld [vmem:[%s9785_s0 + $0x40] sm:$0xf] }
  0x97   :  { %v1992_v11 = vrot.slane %v1990_v56, 4  ;;  %v7853_v15 = vcombine.low %v6938_v4, %v6948_v48  ;;  %v7855_v30 = vcombine.low %v1984_v29, %v1987_v40  ;;  %v2004_v14 = vrot.slane %v6949_v2, 5 }
  0x98   :  { %v1999_v18 = vrot.slane %v1997_v46, 4  ;;  %6434 = vmatmul.mubr.msk.bf16.vlgmr.msra.gmra.mxu0 %vm991_vm4, %v7829_v28  ;;  %v1991_v4 = vsel %vm7771_vm8, %v5566_v44, %v1990_v56  ;;  %v2011_v40 = vrot.slane %v7250_v10, 5  ;;  %v1998_v25 = vsel %vm7771_vm8, %v5567_v23, %v1997_v46  ;;  %v6951_v56 = vld [vmem:[%s9785_s0 + $0x44] sm:$0x1] }
  0x99   :  { %10001 = vst [vmem:[#allocation49_spill] sm:$0xff] %v7855_v30  ;;  %6564 = vmatpush3.bf16.msra.mxu0 %v3178_v39  ;;  %6437 = vmatprep.mubr.msk.bf16.mxu0 %vm991_vm4, %v7855_v30  ;;  %v1994_v29 = vsel %vm7771_vm8, %v1992_v11, %v1993_v34  ;;  %v6950_v39 = vld [vmem:[%s9785_s0 + $0x3c] sm:$0xf]  ;;  %v2006_v33 = vrot.slane %v2004_v14, 4  ;;  %v2007_v10 = vrot.slane %v6951_v56, 5  ;;  %v5569_v44 = vrot.slane %v7243_v3, 9 }
  0x9a   :  { %v2001_v48 = vsel %vm7771_vm8, %v1999_v18, %v2000_v6  ;;  %v5568_v54 = vrot.slane %v6950_v39, 9  ;;  %v7887_v18 = vcombine.low %v1991_v4, %v1994_v29  ;;  %v2013_v11 = vrot.slane %v2011_v40, 4 }
  0x9b   :  { %6368 = vmatmul.mubr.msk.bf16.vlgmr.msra.gmra.mxu1 %vm991_vm4, %v7853_v15  ;;  %v2014_v34 = vrot.slane %v7259_v19, 5  ;;  %v2018_v46 = vrot.slane %v7295_v55, 5  ;;  %v7891_v23 = vcombine.low %v1998_v25, %v2001_v48  ;;  %v7893_v6 = vcombine.low %v6943_v60, %v6942_v53 }
  0x9c   :  { %6498 = vmatpush3.bf16.msra.mxu1 %v7779_v45  ;;  %6371 = vmatprep.mubr.msk.bf16.mxu1 %vm991_vm4, %v7862_v27  ;;  %10002 = vst [vmem:[#allocation50_spill] sm:$0xff] %v7887_v18  ;;  %v7895_v30 = vcombine.low %v6946_v35, %v6945_v32  ;;  %v2005_v3 = vsel %vm7771_vm8, %v5568_v54, %v2004_v14  ;;  %v5570_v29 = vrot.slane %v7288_v50, 9  ;;  %v2021_v19 = vrot.slane %v7309_v9, 5  ;;  %v6952_v50 = vld [vmem:[%s9785_s0 + $0x48] sm:$0xf] }
  0x9d   :  { %10003 = vst [vmem:[#allocation51_spill] sm:$0xff] %v7891_v23  ;;  %v2008_v45 = vsel %vm7771_vm8, %v2006_v33, %v2007_v10  ;;  %v2012_v4 = vsel %vm7771_vm8, %v5569_v44, %v2011_v40  ;;  %v2015_v55 = vsel %vm7771_vm8, %v2013_v11, %v2014_v34  ;;  %v2020_v53 = vrot.slane %v2018_v46, 4  ;;  %v6953_v9 = vld [vmem:[%s9785_s0 + $0x4c] sm:$0xf] }
  0x9e   :  { %10004 = vst [vmem:[#allocation52_spill] sm:$0xff] %v7895_v30  ;;  %v5571_v60 = vrot.slane %v7333_v41, 9  ;;  %v2025_v32 = vrot.slane %v7342_v52, 5  ;;  %v7913_v35 = vcombine.low %v6950_v39, %v6949_v2  ;;  %v7915_v14 = vcombine.low %v2005_v3, %v2008_v45 }
  0x9f   :  { %v7923_v40 = vcombine.low %v6952_v50, %v6953_v9  ;;  %v7927_v25 = vcombine.low %v2012_v4, %v2015_v55  ;;  %v2019_v2 = vsel %vm7771_vm8, %v5570_v29, %v2018_v46  ;;  %v2028_v48 = vrot.slane %v7352_v1, 5 }
  0xa0   :  { %6438 = vmatmul.mubr.msk.bf16.gmra.mxu0 %vm991_vm4, %v7887_v18  ;;  %10005 = vst [vmem:[#allocation53_spill] sm:$0xff] %v7913_v35  ;;  %10006 = vst [vmem:[#allocation54_spill] sm:$0xff] %v7915_v14  ;;  %v5572_v39 = vrot.slane %v7380_v43, 9  ;;  %v2022_v54 = vsel %vm7771_vm8, %v2020_v53, %v2021_v19  ;;  %v2026_v33 = vsel %vm7771_vm8, %v5571_v60, %v2025_v32  ;;  %v2027_v56 = vrot.slane %v2025_v32, 4  ;;  %v8589_v18 = vld [vmem:[%s9785_s0 + $0xc8] sm:$0x1] }
  0xa1   :  { %6441 = vmatprep.mubr.msk.bf16.mxu0 %vm991_vm4, %v7891_v23  ;;  %10007 = vst [vmem:[#allocation55_spill] sm:$0xff] %v7923_v40  ;;  %10008 = vst [vmem:[#allocation56_spill] sm:$0xff] %v7927_v25  ;;  %v7941_v10 = vcombine.low %v7529_v38, %v7539_v12  ;;  %v2032_v44 = vrot.slane %v7387_v51, 5  ;;  %v2035_v1 = vrot.slane %v7396_v63, 5  ;;  %v2039_v11 = vrot.slane %v7430_v8, 5 }
  0xa2   :  { %v5575_v34 = vrot.slane %v7529_v38, 9  ;;  %v2053_v46 = vrot.slane %v7539_v12, 5  ;;  %v2056_v3 = vrot.slane %v7550_v49, 5  ;;  %v7951_v45 = vcombine.low %v7587_v62, %v7594_v24  ;;  %10094 = vst [vmem:[#allocation106_spill] sm:$0xff] %v8589_v18 }
  0xa3   :  { %6372 = vmatmul.mubr.msk.bf16.gmra.mxu1 %vm991_vm4, %v7893_v6  ;;  %10009 = vst [vmem:[#allocation57_spill] sm:$0xff] %v7941_v10  ;;  %v5576_v4 = vrot.slane %v7587_v62, 9  ;;  %v7954_v29 = vcombine.low %v2019_v2, %v2022_v54  ;;  %v2060_v19 = vrot.slane %v7594_v24, 5  ;;  %v2063_v63 = vrot.slane %v7605_v21, 5 }
  0xa4   :  { %6375 = vmatprep.mubr.msk.bf16.mxu1 %vm991_vm4, %v7895_v30  ;;  %10010 = vst [vmem:[#allocation58_spill] sm:$0xff] %v7951_v45  ;;  %v7960_v55 = vcombine.low %v7641_v59, %v7649_v37  ;;  %v2029_v12 = vsel %vm7771_vm8, %v2027_v56, %v2028_v48  ;;  %v2054_v38 = vsel %vm7771_vm8, %v5575_v34, %v2053_v46  ;;  %v2055_v49 = vrot.slane %v2053_v46, 4 }
  0xa5   :  { %10011 = vst [vmem:[#allocation59_spill] sm:$0xff] %v7954_v29  ;;  %v5577_v62 = vrot.slane %v7641_v59, 9  ;;  %v2061_v24 = vsel %vm7771_vm8, %v5576_v4, %v2060_v19  ;;  %v2062_v21 = vrot.slane %v2060_v19, 4  ;;  %v2067_v53 = vrot.slane %v7649_v37, 5 }
  0xa6   :  { %10012 = vst [vmem:[#allocation60_spill] sm:$0xff] %v7960_v55  ;;  %v2070_v60 = vrot.slane %v7659_v58, 5  ;;  %v2057_v32 = vsel %vm7771_vm8, %v2055_v49, %v2056_v3  ;;  %v7979_v50 = vcombine.low %v7697_v36, %v7705_v0  ;;  %v5578_v59 = vrot.slane %v7697_v36, 9 }
  0xa7   :  { %v2074_v9 = vrot.slane %v7705_v0, 5  ;;  %v7985_v2 = vcombine.low %v2054_v38, %v2057_v32  ;;  %v2064_v37 = vsel %vm7771_vm8, %v2062_v21, %v2063_v63  ;;  %v2068_v58 = vsel %vm7771_vm8, %v5577_v62, %v2067_v53 }
  0xa8   :  { %6442 = vmatmul.mubr.msk.bf16.gmra.mxu0 %vm991_vm4, %v7915_v14  ;;  %10013 = vst [vmem:[#allocation61_spill] sm:$0xff] %v7979_v50  ;;  %v2069_v48 = vrot.slane %v2067_v53, 4  ;;  %v7993_v54 = vcombine.low %v2061_v24, %v2064_v37  ;;  %v2077_v56 = vrot.slane %v7720_v17, 5  ;;  %v7998_v34 = vcombine.low %v2026_v33, %v2029_v12  ;;  %v6954_v17 = vld [vmem:[%s9785_s0 + $0x54] sm:$0xf] }
  0xa9   :  { %6445 = vmatprep.mubr.msk.bf16.mxu0 %vm991_vm4, %v7927_v25  ;;  %10014 = vst [vmem:[#allocation62_spill] sm:$0xff] %v7985_v2  ;;  %v2075_v36 = vsel %vm7771_vm8, %v5578_v59, %v2074_v9  ;;  %v2076_v0 = vrot.slane %v2074_v9, 4  ;;  %v2034_v46 = vrot.slane %v2032_v44, 4  ;;  %v5573_v3 = vrot.slane %v7423_v61, 9  ;;  %v6955_v33 = vld [vmem:[%s9785_s0 + $0x58] sm:$0xf] }
  0xaa   :  { %10015 = vst [vmem:[#allocation63_spill] sm:$0xff] %v7993_v54  ;;  %10016 = vst [vmem:[#allocation64_spill] sm:$0xff] %v7998_v34  ;;  %v2071_v4 = vsel %vm7771_vm8, %v2069_v48, %v2070_v60  ;;  %v2041_v19 = vrot.slane %v2039_v11, 4  ;;  %v2042_v63 = vrot.slane %v7439_v13, 5  ;;  %v8014_v12 = vcombine.low %v6954_v17, %v6955_v33  ;;  %v6958_v37 = vld [vmem:[%s9785_s0 + $0xd8] sm:$0xf] }
  0xab   :  { %6376 = vmatmul.mubr.msk.bf16.gmra.mxu1 %vm991_vm4, %v7913_v35  ;;  %v8004_v38 = vcombine.low %v2068_v58, %v2071_v4  ;;  %v2078_v49 = vsel %vm7771_vm8, %v2076_v0, %v2077_v56  ;;  %v8022_v13 = vcombine.low %v7333_v41, %v7342_v52  ;;  %v2033_v24 = vsel %vm7771_vm8, %v5572_v39, %v2032_v44  ;;  %v5732_v56 = vld [vmem:[%s9786_s1 + $0xa] sm:$0x3] }
  0xac   :  { %6379 = vmatprep.mubr.msk.bf16.mxu1 %vm991_vm4, %v7923_v40  ;;  %10018 = vst [vmem:[#allocation66_spill] sm:$0xff] %v8014_v12  ;;  %v8016_v62 = vcombine.low %v2075_v36, %v2078_v49  ;;  %v2036_v21 = vsel %vm7771_vm8, %v2034_v46, %v2035_v1  ;;  %v2046_v53 = vrot.slane %v7481_v31, 5  ;;  %v2040_v60 = vsel %vm7771_vm8, %v5573_v3, %v2039_v11  ;;  %v6959_v36 = vld [vmem:[%s9785_s0 + $0xe8] sm:$0xf]  ;;  %v5767_v46 = vld [vmem:[%s9786_s1 + $0xc] sm:$0x3] }
  0xad   :  { %10017 = vst [vmem:[#allocation65_spill] sm:$0xff] %v8004_v38  ;;  %10020 = vst [vmem:[#allocation68_spill] sm:$0xff] %v8022_v13  ;;  %v2043_v32 = vsel %vm7771_vm8, %v2041_v19, %v2042_v63  ;;  %v8039_v41 = vcombine.low %v2033_v24, %v2036_v21  ;;  %v5574_v39 = vrot.slane %v7473_v22, 9  ;;  %v2049_v1 = vrot.slane %v7496_v57, 5  ;;  %v6960_v19 = vld [vmem:[%s9785_s0 + $0xf4] sm:$0xf] }
  0xae   :  { %10019 = vst [vmem:[#allocation67_spill] sm:$0xff] %v8016_v62  ;;  %v8041_v52 = vcombine.low %v2040_v60, %v2043_v32  ;;  %v2048_v44 = vrot.slane %v2046_v53, 4  ;;  %v8047_v11 = vcombine.low %v7380_v43, %v7387_v51  ;;  %v8053_v59 = vcombine.low %v7423_v61, %v7430_v8  ;;  %v6956_v61 = vld [vmem:[%s9785_s0 + $0xdc] sm:$0xf]  ;;  %v6961_v24 = vld [vmem:[%s9785_s0 + $0xe4] sm:$0xf] }
  0xaf   :  { %10021 = vst [vmem:[#allocation69_spill] sm:$0xff] %v8039_v41  ;;  %v2047_v9 = vsel %vm7771_vm8, %v5574_v39, %v2046_v53  ;;  %v8069_v51 = vcombine.low %v7473_v22, %v7481_v31  ;;  %v2081_v8 = vrot.slane %v6956_v61, 5  ;;  %v6957_v22 = vld [vmem:[%s9785_s0 + $0xe0] sm:$0x1]  ;;  %v5579_v58 = vrot.slane %v6958_v37, 9 }
  0xb0   :  { %6446 = vmatmul.mubr.msk.bf16.gmra.mxu0 %vm991_vm4, %v7954_v29  ;;  %10022 = vst [vmem:[#allocation70_spill] sm:$0xff] %v8041_v52  ;;  %10023 = vst [vmem:[#allocation71_spill] sm:$0xff] %v8047_v11  ;;  %v2050_v57 = vsel %vm7771_vm8, %v2048_v44, %v2049_v1  ;;  %v2084_v31 = vrot.slane %v6957_v22, 5  ;;  %v2088_v0 = vrot.slane %v6959_v36, 5  ;;  %v2095_v63 = vrot.slane %v6960_v19, 5  ;;  %v10045_v29 = vld [vmem:[#allocation29_spill] sm:$0xff] }
  0xb1   :  { %6449 = vmatprep.mubr.msk.bf16.mxu0 %vm991_vm4, %v7998_v34  ;;  %10024 = vst [vmem:[#allocation72_spill] sm:$0xff] %v8053_v59  ;;  %v8065_v43 = vcombine.low %v2047_v9, %v2050_v57  ;;  %10026 = vst [vmem:[#allocation74_spill] sm:$0xff] %v8069_v51  ;;  %v2083_v48 = vrot.slane %v2081_v8, 4  ;;  %v2082_v3 = vsel %vm7771_vm8, %v5579_v58, %v2081_v8  ;;  %v5580_v21 = vrot.slane %v6961_v24, 9  ;;  %v6962_v60 = vld [vmem:[%s9785_s0 + $0xec] sm:$0x1] }
  0xb2   :  { %v8113_v49 = vand.u32 %v5732_v56, %v7040_v5  ;;  %v8116_v17 = vand.u32 %v5767_v46, %v7040_v5  ;;  %v2090_v53 = vrot.slane %v2088_v0, 4  ;;  %v2091_v32 = vrot.slane %v6962_v60, 5  ;;  %v6963_v39 = vld [vmem:[%s9785_s0 + $0xf0] sm:$0xf]  ;;  %v6964_v9 = vld [vmem:[%s9785_s0 + $0xf8] sm:$0x1] }
  0xb3   :  { %6380 = vmatmul.mubr.msk.bf16.gmra.mxu1 %vm991_vm4, %v8014_v12  ;;  %10025 = vst [vmem:[#allocation73_spill] sm:$0xff] %v8065_v43  ;;  %v2085_v4 = vsel %vm7771_vm8, %v2083_v48, %v2084_v31  ;;  %v5581_v44 = vrot.slane %v6963_v39, 9  ;;  %v2097_v1 = vrot.slane %v2095_v63, 4  ;;  %v2098_v57 = vrot.slane %v6964_v9, 5  ;;  %v6965_v58 = vld [vmem:[%s9785_s0 + $0x100] sm:$0xf] }
  0xb4   :  { %6383 = vmatprep.mubr.msk.bf16.mxu1 %vm991_vm4, %v8022_v13  ;;  %v5612_v33 = vcombine.low %v2082_v3, %v2085_v4  ;;  %6629 = vmatprep.subr.bf16.mxu1 %v8113_v49  ;;  %v5515_v8 = vcombine.low %v6958_v37, %v6956_v61  ;;  %v2089_v22 = vsel %vm7771_vm8, %v5580_v21, %v2088_v0  ;;  %v2102_v48 = vrot.slane %v6965_v58, 5  ;;  %v6966_v61 = vld [vmem:[%s9785_s0 + $0x10c] sm:$0xf]  ;;  %v6967_v4 = vld [vmem:[%s9785_s0 + $0xfc] sm:$0xf] }
  0xb5   :  { %6695 = vmatprep.subr.bf16.mxu0 %v8116_v17  ;;  %v2092_v31 = vsel %vm7771_vm8, %v2090_v53, %v2091_v32  ;;  %v2096_v56 = vsel %vm7771_vm8, %v5581_v44, %v2095_v63  ;;  %v2099_v46 = vsel %vm7771_vm8, %v2097_v1, %v2098_v57  ;;  %v2109_v37 = vrot.slane %v6966_v61, 5  ;;  %v6968_v21 = vld [vmem:[%s9785_s0 + $0x104] sm:$0x1]  ;;  %v6969_v60 = vld [vmem:[%s9785_s0 + $0x108] sm:$0xf] }
  0xb6   :  { %v8152_v0 = vcombine.low %v2089_v22, %v2092_v31  ;;  %v8154_v3 = vcombine.low %v2096_v56, %v2099_v46  ;;  %v5582_v63 = vrot.slane %v6967_v4, 9  ;;  %v2105_v53 = vrot.slane %v6968_v21, 5  ;;  %v6970_v1 = vld [vmem:[%s9785_s0 + $0x110] sm:$0x1]  ;;  %v6971_v56 = vld [vmem:[%s9785_s0 + $0x118] sm:$0xf] }
  0xb7   :  { %v5583_v32 = vrot.slane %v6969_v60, 9  ;;  %v2111_v44 = vrot.slane %v2109_v37, 4  ;;  %v2112_v9 = vrot.slane %v6970_v1, 5  ;;  %v8168_v57 = vcombine.low %v6961_v24, %v6959_v36 }
  0xb8   :  { %6450 = vmatmul.mubr.msk.bf16.gmra.mxu0 %vm991_vm4, %v8039_v41  ;;  %10027 = vst [vmem:[#allocation75_spill] sm:$0xff] %v8152_v0  ;;  %10028 = vst [vmem:[#allocation76_spill] sm:$0xff] %v8154_v3  ;;  %v2103_v22 = vsel %vm7771_vm8, %v5582_v63, %v2102_v48  ;;  %v2116_v36 = vrot.slane %v6971_v56, 5  ;;  %v2168_v25 = vrot.slane %v10045_v29, 5 }
  0xb9   :  { %6453 = vmatprep.mubr.msk.bf16.mxu0 %vm991_vm4, %v8041_v52  ;;  %v2110_v24 = vsel %vm7771_vm8, %v5583_v32, %v2109_v37  ;;  %v6973_v37 = vld [vmem:[%s9785_s0 + $0x114] sm:$0xf] }
  0xba   :  { %v2118_v21 = vrot.slane %v2116_v36, 4 }
  0xbb   :  { %6384 = vmatmul.mubr.msk.bf16.gmra.mxu1 %vm991_vm4, %v8047_v11 }
  0xbc   :  { %6387 = vmatprep.mubr.msk.bf16.mxu1 %vm991_vm4, %v8053_v59 }
  0xc0   :  { %6454 = vmatmul.mubr.msk.bf16.gmra.mxu0 %vm991_vm4, %v8065_v43 }
  0xc1   :  { %6457 = vmatprep.mubr.msk.bf16.mxu0 %vm991_vm4, %v7985_v2 }
  0xc3   :  { %6388 = vmatmul.mubr.msk.bf16.gmra.mxu1 %vm991_vm4, %v8069_v51 }
  0xc4   :  { %6391 = vmatprep.mubr.msk.bf16.mxu1 %vm991_vm4, %v7941_v10 }
  0xc8   :  { %6458 = vmatmul.mubr.msk.bf16.gmra.mxu0 %vm991_vm4, %v7993_v54 }
  0xc9   :  { %6461 = vmatprep.mubr.msk.bf16.mxu0 %vm991_vm4, %v8004_v38  ;;  %v8258_v38 = vcombine.low %v6973_v37, %v6971_v56  ;;  %v6983_v56 = vld [vmem:[%s9785_s0 + $0x148] sm:$0xf] }
  0xcb   :  { %6392 = vmatmul.mubr.msk.bf16.gmra.mxu1 %vm991_vm4, %v7951_v45 }
  0xcc   :  { %6395 = vmatprep.mubr.msk.bf16.mxu1 %vm991_vm4, %v7960_v55 }
  0xd0   :  { %6462 = vmatmul.mubr.msk.bf16.gmra.mxu0 %vm991_vm4, %v8016_v62 }
  0xd1   :  { %6465 = vmatprep.mubr.msk.bf16.mxu0 %vm991_vm4, %v5612_v33  ;;  %v2104_v33 = vrot.slane %v2102_v48, 4 }
  0xd3   :  { %6396 = vmatmul.mubr.msk.bf16.gmra.mxu1 %vm991_vm4, %v7979_v50  ;;  %v2106_v31 = vsel %vm7771_vm8, %v2104_v33, %v2105_v53  ;;  %v5584_v33 = vrot.slane %v6973_v37, 9  ;;  %v6974_v53 = vld [vmem:[%s9785_s0 + $0x11c] sm:$0x1]  ;;  %v2144_v37 = vrot.slane %v6983_v56, 5 }
  0xd4   :  { %6399 = vmatprep.mubr.msk.bf16.mxu1 %vm991_vm4, %v5515_v8  ;;  %v8172_v8 = vcombine.low %v6963_v39, %v6960_v19  ;;  %v2113_v19 = vsel %vm7771_vm8, %v2111_v44, %v2112_v9  ;;  %v6972_v39 = vld [vmem:[%s9785_s0 + $0x124] sm:$0xf]  ;;  %v8194_v48 = vcombine.low %v2103_v22, %v2106_v31  ;;  %v2119_v32 = vrot.slane %v6974_v53, 5  ;;  %v6975_v44 = vld [vmem:[%s9785_s0 + $0x120] sm:$0xf] }
  0xd5   :  { %v2123_v46 = vrot.slane %v6972_v39, 5  ;;  %v8196_v63 = vcombine.low %v2110_v24, %v2113_v19  ;;  %v5585_v1 = vrot.slane %v6975_v44, 9  ;;  %v6976_v22 = vld [vmem:[%s9785_s0 + $0x128] sm:$0x1]  ;;  %v8210_v24 = vcombine.low %v6967_v4, %v6965_v58  ;;  %v6977_v58 = vld [vmem:[%s9785_s0 + $0x130] sm:$0xf] }
  0xd6   :  { %10029 = vst [vmem:[#allocation77_spill] sm:$0xff] %v8194_v48  ;;  %v2126_v31 = vrot.slane %v6976_v22, 5  ;;  %v8214_v19 = vcombine.low %v6969_v60, %v6966_v61  ;;  %v2117_v53 = vsel %vm7771_vm8, %v5584_v33, %v2116_v36  ;;  %v2130_v4 = vrot.slane %v6977_v58, 5  ;;  %v6978_v22 = vld [vmem:[%s9785_s0 + $0x13c] sm:$0xf] }
  0xd7   :  { %10030 = vst [vmem:[#allocation78_spill] sm:$0xff] %v8196_v63  ;;  %v2125_v9 = vrot.slane %v2123_v46, 4  ;;  %10031 = vst [vmem:[#allocation79_spill] sm:$0xff] %v8210_v24  ;;  %v2124_v61 = vsel %vm7771_vm8, %v5585_v1, %v2123_v46  ;;  %v8264_v2 = vcombine.low %v6975_v44, %v6972_v39 }
  0xd8   :  { %6466 = vmatmul.mubr.msk.bf16.gmra.mxu0 %vm991_vm4, %v8152_v0  ;;  %v2120_v0 = vsel %vm7771_vm8, %v2118_v21, %v2119_v32  ;;  %v6979_v32 = vld [vmem:[%s9785_s0 + $0x12c] sm:$0xf] }
  0xd9   :  { %6469 = vmatprep.mubr.msk.bf16.mxu0 %vm991_vm4, %v8154_v3  ;;  %v8216_v3 = vpop.f32.mrf.mxu0  ;;  %v2127_v60 = vsel %vm7771_vm8, %v2125_v9, %v2126_v31  ;;  %v8240_v33 = vcombine.low %v2117_v53, %v2120_v0  ;;  %v5586_v1 = vrot.slane %v6979_v32, 9  ;;  %v2132_v9 = vrot.slane %v2130_v4, 4  ;;  %v6980_v31 = vld [vmem:[%s9785_s0 + $0x134] sm:$0x1]  ;;  %v6981_v0 = vld [vmem:[%s9785_s0 + $0x138] sm:$0xf] }
  0xda   :  { %v8244_v46 = vcombine.low %v2124_v61, %v2127_v60  ;;  %v5587_v53 = vrot.slane %v6981_v0, 9  ;;  %v6982_v61 = vld [vmem:[%s9785_s0 + $0x140] sm:$0x1]  ;;  %v8310_v41 = vcombine.low %v6981_v0, %v6978_v22  ;;  %v2165_v0 = vrot.slane %v7565_v47, 5 }
  0xdb   :  { %6400 = vmatmul.mubr.msk.bf16.gmra.mxu1 %vm991_vm4, %v8168_v57  ;;  %v8236_v36 = vpop.f32.mrf.mxu1  ;;  %10033 = vst [vmem:[#allocation81_spill] sm:$0xff] %v8240_v33  ;;  %v8242_v21 = vpop.f32.mrf.mxu0  ;;  %v2140_v60 = vrot.slane %v6982_v61, 5  ;;  %v2131_v43 = vsel %vm7771_vm8, %v5586_v1, %v2130_v4 }
  0xdc   :  { %6403 = vmatprep.mubr.msk.bf16.mxu1 %vm991_vm4, %v8172_v8  ;;  %10032 = vst [vmem:[#allocation80_spill] sm:$0xff] %v8236_v36  ;;  %10034 = vst [vmem:[#allocation82_spill] sm:$0xff] %v8244_v46  ;;  %v10096_v36 = vld [vmem:[#allocation33_spill] sm:$0xff] }
  0xdd   :  { %v8260_v54 = vpop.f32.mrf.mxu1 }
  0xde   :  { %10035 = vst [vmem:[#allocation83_spill] sm:$0xff] %v8260_v54 }
  0xdf   :  { %v8284_v4 = vpop.f32.mrf.mxu1 }
  0xe0   :  { %6470 = vmatmul.mubr.msk.bf16.gmra.mxu0 %vm991_vm4, %v8194_v48  ;;  %v2133_v48 = vrot.slane %v6980_v31, 5  ;;  %v8266_v31 = vpop.f32.mrf.mxu0  ;;  %10036 = vst [vmem:[#allocation84_spill] sm:$0xff] %v8284_v4 }
  0xe1   :  { %6473 = vmatprep.mubr.msk.bf16.mxu0 %vm991_vm4, %v8196_v63  ;;  %v2137_v63 = vrot.slane %v6978_v22, 5  ;;  %v8306_v52 = vpop.f32.mrf.mxu1 }
  0xe2   :  { %v2134_v61 = vsel %vm7771_vm8, %v2132_v9, %v2133_v48  ;;  %v8290_v1 = vpop.f32.mrf.mxu0  ;;  %10039 = vst [vmem:[#allocation87_spill] sm:$0xff] %v8306_v52  ;;  %v10056_v52 = vld [vmem:[#allocation39_spill] sm:$0xff] }
  0xe3   :  { %6404 = vmatmul.mubr.msk.bf16.gmra.mxu1 %vm991_vm4, %v8210_v24  ;;  %v2139_v62 = vrot.slane %v2137_v63, 4  ;;  %v2138_v39 = vsel %vm7771_vm8, %v5587_v53, %v2137_v63  ;;  %v8288_v48 = vcombine.low %v2131_v43, %v2134_v61  ;;  %v6985_v53 = vld [vmem:[%s9785_s0 + $0x14c] sm:$0x1]  ;;  %v6986_v43 = vld [vmem:[%s9785_s0 + $0x150] sm:$0xf]  ;;  %v2182_v4 = vrot.slane %v10056_v52, 5 }
  0xe4   :  { %6407 = vmatprep.mubr.msk.bf16.mxu1 %vm991_vm4, %v8214_v19  ;;  %v5589_v61 = vrot.slane %v6986_v43, 9 }
  0xe5   :  { %v2141_v44 = vsel %vm7771_vm8, %v2139_v62, %v2140_v60  ;;  %10037 = vst [vmem:[#allocation85_spill] sm:$0xff] %v8288_v48  ;;  %v6984_v62 = vld [vmem:[%s9785_s0 + $0x144] sm:$0xf]  ;;  %v2147_v60 = vrot.slane %v6985_v53, 5 }
  0xe6   :  { %v8292_v9 = vcombine.low %v2138_v39, %v2141_v44  ;;  %v5588_v63 = vrot.slane %v6984_v62, 9  ;;  %v2154_v39 = vrot.slane %v7467_v20, 5  ;;  %v8304_v44 = vcombine.low %v6979_v32, %v6977_v58 }
  0xe7   :  { %v2158_v58 = vrot.slane %v7510_v16, 5  ;;  %v8342_v14 = vcombine.low %v6984_v62, %v6983_v56  ;;  %v10048_v62 = vld [vmem:[#allocation32_spill] sm:$0xff] }
  0xe8   :  { %6474 = vmatmul.mubr.msk.bf16.gmra.mxu0 %vm991_vm4, %v8240_v33  ;;  %v2151_v33 = vrot.slane %v7457_v42, 5  ;;  %10038 = vst [vmem:[#allocation86_spill] sm:$0xff] %v8292_v9  ;;  %v2146_v42 = vrot.slane %v2144_v37, 4  ;;  %v8312_v34 = vpop.f32.mrf.mxu0  ;;  %v2145_v53 = vsel %vm7771_vm8, %v5588_v63, %v2144_v37 }
  0xe9   :  { %6477 = vmatprep.mubr.msk.bf16.mxu0 %vm991_vm4, %v8244_v46 }
  0xea   :  { %v2153_v46 = vrot.slane %v2151_v33, 4  ;;  %v2148_v20 = vsel %vm7771_vm8, %v2146_v42, %v2147_v60  ;;  %v2152_v32 = vsel %vm7771_vm8, %v5589_v61, %v2151_v33  ;;  %v8334_v63 = vpop.f32.mrf.mxu0  ;;  %v5590_v33 = vrot.slane %v7503_v7, 9  ;;  %v10044_v61 = vld [vmem:[#allocation27_spill] sm:$0xff] }
  0xeb   :  { %6408 = vmatmul.mubr.msk.bf16.gmra.mxu1 %vm991_vm4, %v8258_v38  ;;  %v8332_v37 = vcombine.low %v2145_v53, %v2148_v20  ;;  %v2160_v42 = vrot.slane %v2158_v58, 4  ;;  %v6987_v53 = vld [vmem:[%s9785_s0 + $0x154] sm:$0xf] }
  0xec   :  { %6411 = vmatprep.mubr.msk.bf16.mxu1 %vm991_vm4, %v8264_v2  ;;  %v2155_v22 = vsel %vm7771_vm8, %v2153_v46, %v2154_v39  ;;  %v10043_v46 = vld [vmem:[#allocation25_spill] sm:$0xff]  ;;  %v5591_v39 = vrot.slane %v10044_v61, 9  ;;  %v8351_v7 = vcombine.low %v6986_v43, %v6987_v53  ;;  %v8353_v20 = vpop.f32.mrf.mxu0  ;;  %v2159_v29 = vsel %vm7771_vm8, %v5590_v33, %v2158_v58 }
  0xed   :  { %10041 = vst [vmem:[#allocation89_spill] sm:$0xff] %v8332_v37  ;;  %v8336_v16 = vcombine.low %v2152_v32, %v2155_v22  ;;  %v2161_v60 = vrot.slane %v10043_v46, 5  ;;  %10046 = vst [vmem:[#allocation25_spill] sm:$0xff] %v8342_v14  ;;  %v2172_v32 = vrot.slane %v10048_v62, 5  ;;  %v10049_v46 = vld [vmem:[#allocation38_spill] sm:$0xff] }
  0xee   :  { %v2166_v22 = vsel %vm7771_vm8, %v5591_v39, %v2165_v0  ;;  %v2179_v53 = vrot.slane %v10049_v46, 5  ;;  %v8375_v33 = vpop.f32.mrf.mxu0 }
  0xef   :  { %10042 = vst [vmem:[#allocation90_spill] sm:$0xff] %v8336_v16  ;;  %v2162_v56 = vsel %vm7771_vm8, %v2160_v42, %v2161_v60  ;;  %v2174_v39 = vrot.slane %v2172_v32, 4 }
  0xf0   :  { %6478 = vmatmul.mubr.msk.bf16.gmra.mxu0 %vm991_vm4, %v8288_v48  ;;  %v2167_v48 = vrot.slane %v2165_v0, 4  ;;  %v8373_v58 = vcombine.low %v2159_v29, %v2162_v56  ;;  %v10053_v0 = vld [vmem:[#allocation31_spill] sm:$0xff]  ;;  %v2181_v23 = vrot.slane %v2179_v53, 4  ;;  %v6989_v29 = vld [vmem:[%s9785_s0 + $0x160] sm:$0xf] }
  0xf1   :  { %6481 = vmatprep.mubr.msk.bf16.mxu0 %vm991_vm4, %v8292_v9  ;;  %v8328_v9 = vpop.f32.mrf.mxu1  ;;  %v5592_v60 = vrot.slane %v10053_v0, 9 }
  0xf2   :  { %10040 = vst [vmem:[#allocation88_spill] sm:$0xff] %v8328_v9  ;;  %v2169_v43 = vsel %vm7771_vm8, %v2167_v48, %v2168_v25  ;;  %10051 = vst [vmem:[#allocation32_spill] sm:$0xff] %v8373_v58  ;;  %v10054_v25 = vld [vmem:[#allocation34_spill] sm:$0xff] }
  0xf3   :  { %6412 = vmatmul.mubr.msk.bf16.gmra.mxu1 %vm991_vm4, %v8304_v44  ;;  %v8344_v9 = vpop.f32.mrf.mxu1  ;;  %v8377_v42 = vcombine.low %v2166_v22, %v2169_v43  ;;  %v2175_v48 = vrot.slane %v10054_v25, 5  ;;  %v8397_v43 = vcombine.low %v10044_v61, %v7565_v47  ;;  %v2173_v25 = vsel %vm7771_vm8, %v5592_v60, %v2172_v32 }
  0xf4   :  { %6415 = vmatprep.mubr.msk.bf16.mxu1 %vm991_vm4, %v8310_v41  ;;  %10047 = vst [vmem:[#allocation27_spill] sm:$0xff] %v8344_v9  ;;  %v2183_v47 = vsel %vm7771_vm8, %v2181_v23, %v2182_v4  ;;  %v8428_v23 = vcombine.low %v10053_v0, %v10048_v62 }
  0xf5   :  { %10052 = vst [vmem:[#allocation38_spill] sm:$0xff] %v8377_v42 }
  0xf8   :  { %6482 = vmatmul.mubr.msk.bf16.gmra.mxu0 %vm991_vm4, %v8332_v37  ;;  %v10055_v37 = vld [vmem:[#allocation36_spill] sm:$0xff] }
  0xf9   :  { %6485 = vmatprep.mubr.msk.bf16.mxu0 %vm991_vm4, %v8336_v16  ;;  %v8369_v16 = vpop.f32.mrf.mxu1  ;;  %v5593_v9 = vrot.slane %v10055_v37, 9  ;;  %v8399_v52 = vpop.f32.mrf.mxu0 }
  0xfa   :  { %10050 = vst [vmem:[#allocation29_spill] sm:$0xff] %v8369_v16  ;;  %v6988_v16 = vld [vmem:[%s9785_s0 + $0x15c] sm:$0xf] }
  0xfb   :  { %6416 = vmatmul.mubr.msk.bf16.gmra.mxu1 %vm991_vm4, %v8342_v14  ;;  %v8389_v56 = vcombine.low %v6988_v16, %v6989_v29  ;;  %v8391_v22 = vpop.f32.mrf.mxu1  ;;  %v2176_v16 = vsel %vm7771_vm8, %v2174_v39, %v2175_v48  ;;  %v10058_v29 = vld [vmem:[#allocation43_spill] sm:$0xff]  ;;  %v8420_v60 = vpop.f32.mrf.mxu0  ;;  %v10062_v48 = vld [vmem:[#allocation41_spill] sm:$0xff] }
  0xfc   :  { %6419 = vmatprep.mubr.msk.bf16.mxu1 %vm991_vm4, %v8351_v7  ;;  %10057 = vst [vmem:[#allocation31_spill] sm:$0xff] %v8391_v22  ;;  %v2186_v22 = vrot.slane %v10058_v29, 5  ;;  %v8418_v32 = vcombine.low %v2173_v25, %v2176_v16  ;;  %v8436_v25 = vcombine.low %v10055_v37, %v10049_v46 }
  0xfe   :  { %v8414_v61 = vpop.f32.mrf.mxu1  ;;  %10060 = vst [vmem:[#allocation36_spill] sm:$0xff] %v8418_v32 }
  0xff   :  { %10059 = vst [vmem:[#allocation34_spill] sm:$0xff] %v8414_v61 }
 0x100   :  { %6486 = vmatmul.mubr.msk.bf16.gmra.mxu0 %vm991_vm4, %v8373_v58  ;;  %v2180_v58 = vsel %vm7771_vm8, %v5593_v9, %v2179_v53  ;;  %v2188_v9 = vrot.slane %v2186_v22, 4  ;;  %v10063_v53 = vld [vmem:[#allocation44_spill] sm:$0xff]  ;;  %v8430_v4 = vpop.f32.mrf.mxu1 }
 0x101   :  { %6489 = vmatprep.mubr.msk.bf16.mxu0 %vm991_vm4, %v8377_v42  ;;  %v8422_v39 = vcombine.low %v2180_v58, %v2183_v47  ;;  %v5594_v42 = vrot.slane %v10062_v48, 9  ;;  %v2189_v54 = vrot.slane %v10063_v53, 5  ;;  %10064 = vst [vmem:[#allocation43_spill] sm:$0xff] %v8430_v4  ;;  %v8438_v58 = vpop.f32.mrf.mxu0  ;;  %v8458_v47 = vcombine.low %v10062_v48, %v10058_v29  ;;  %v10071_v53 = vld [vmem:[#allocation8_spill] sm:$0xff] }
 0x102   :  { %v8448_v0 = vpop.f32.mrf.mxu1 }
 0x103   :  { %6420 = vmatmul.mubr.msk.bf16.gmra.mxu1 %vm991_vm4, %v8389_v56  ;;  %10061 = vst [vmem:[#allocation39_spill] sm:$0xff] %v8422_v39  ;;  %v2187_v16 = vsel %vm7771_vm8, %v5594_v42, %v2186_v22  ;;  %v2190_v62 = vsel %vm7771_vm8, %v2188_v9, %v2189_v54  ;;  %10065 = vst [vmem:[#allocation41_spill] sm:$0xff] %v8448_v0  ;;  %v8454_v46 = vpop.f32.mrf.mxu0  ;;  %v10068_v22 = vld [vmem:[#allocation6_spill] sm:$0xff] }
 0x104   :  { %6423 = vmatprep.mubr.msk.bf16.mxu1 %vm991_vm4, %v8397_v43  ;;  %v8452_v37 = vcombine.low %v2187_v16, %v2190_v62  ;;  %v8460_v42 = vpop.f32.mrf.mxu1  ;;  %v10072_v62 = vld [vmem:[#allocation10_spill] sm:$0xff] }
 0x105   :  { %10067 = vst [vmem:[#allocation91_spill] sm:$0xff] %v8460_v42  ;;  %v10091_v42 = vld [vmem:[#allocation24_spill] sm:$0xff] }
 0x106   :  { %10066 = vst [vmem:[#allocation44_spill] sm:$0xff] %v8452_v37 }
 0x108   :  { %6490 = vmatmul.mubr.msk.bf16.gmra.mxu0 %vm991_vm4, %v8418_v32 }
 0x109   :  { %6493 = vmatprep.mubr.msk.bf16.mxu0 %vm991_vm4, %v8422_v39  ;;  %v10077_v39 = vld [vmem:[#allocation12_spill] sm:$0xff] }
 0x10b   :  { %6424 = vmatmul.mubr.msk.bf16.gmra.mxu1 %vm991_vm4, %v8428_v23  ;;  %v8464_v54 = vpop.f32.mrf.mxu0 }
 0x10c   :  { %6427 = vmatprep.mubr.msk.bf16.mxu1 %vm991_vm4, %v8436_v25 }
 0x10d   :  { %v8474_v29 = vpop.f32.mrf.mxu0 }
 0x10f   :  { %v8470_v9 = vpop.f32.mrf.mxu1  ;;  %v8480_v16 = vpop.f32.mrf.mxu0 }
 0x110   :  { %6494 = vmatmul.mubr.msk.bf16.gmra.mxu0 %vm991_vm4, %v8452_v37  ;;  %10069 = vst [vmem:[#allocation6_spill] sm:$0xff] %v8470_v9  ;;  %v10086_v9 = vld [vmem:[#allocation22_spill] sm:$0xff] }
 0x111   :  { %6565 = vmatprep.mubr.msk.bf16.mxu0 %vm991_vm4, %v10068_v22  ;;  %v8476_v48 = vpop.f32.mrf.mxu1 }
 0x112   :  { %10070 = vst [vmem:[#allocation92_spill] sm:$0xff] %v8476_v48 }
 0x113   :  { %6428 = vmatmul.mubr.msk.bf16.gmra.mxu1 %vm991_vm4, %v8458_v47  ;;  %v8487_v22 = vpop.f32.mrf.mxu1 }
 0x114   :  { %6499 = vmatprep.mubr.msk.bf16.mxu1 %vm991_vm4, %v7853_v15  ;;  %10073 = vst [vmem:[#allocation93_spill] sm:$0xff] %v8487_v22  ;;  %v8492_v15 = vpop.f32.mrf.mxu0 }
 0x115   :  { %v8503_v37 = vpop.f32.mrf.mxu1 }
 0x116   :  { %10075 = vst [vmem:[#allocation95_spill] sm:$0xff] %v8503_v37 }
 0x118   :  { %6566 = vmatmul.mubr.msk.bf16.vlgmr.msra.gmra.mxu0 %vm991_vm4, %v10071_v53  ;;  %v5802_v53 = vld [vmem:[%s9786_s1 + $0xe] sm:$0x3] }
 0x119   :  { %6696 = vmatpush3.bf16.msra.mxu0 %v8116_v17  ;;  %6569 = vmatprep.mubr.msk.bf16.mxu0 %vm991_vm4, %v10072_v62  ;;  %v8498_v17 = vand.u32 %v5802_v53, %v7040_v5  ;;  %v5839_v62 = vld [vmem:[%s9786_s1 + $0x10] sm:$0x3] }
 0x11b   :  { %6500 = vmatmul.mubr.msk.bf16.vlgmr.msra.gmra.mxu1 %vm991_vm4, %v7862_v27  ;;  %10074 = vst [vmem:[#allocation94_spill] sm:$0xff] %v8498_v17 }
 0x11c   :  { %6630 = vmatpush3.bf16.msra.mxu1 %v8113_v49  ;;  %6503 = vmatprep.mubr.msk.bf16.mxu1 %vm991_vm4, %v7893_v6  ;;  %v8507_v49 = vand.u32 %v5839_v62, %v7040_v5  ;;  %v8511_v32 = vpop.f32.mrf.mxu0 }
 0x11d   :  { %6761 = vmatprep.subr.bf16.mxu1 %v8498_v17 }
 0x11e   :  { %10076 = vst [vmem:[#allocation96_spill] sm:$0xff] %v8507_v49  ;;  %6827 = vmatprep.subr.bf16.mxu0 %v8507_v49  ;;  %v8522_v5 = vpop.f32.mrf.mxu0 }
 0x120   :  { %6570 = vmatmul.mubr.msk.bf16.gmra.mxu0 %vm991_vm4, %v10077_v39  ;;  %v10081_v39 = vld [vmem:[#allocation16_spill] sm:$0xff]  ;;  %v8528_v37 = vpop.f32.mrf.mxu0 }
 0x121   :  { %6573 = vmatprep.mubr.msk.bf16.mxu0 %vm991_vm4, %v10078_v26  ;;  %v8518_v53 = vpop.f32.mrf.mxu1  ;;  %v10082_v26 = vld [vmem:[#allocation18_spill] sm:$0xff] }
 0x122   :  { %10079 = vst [vmem:[#allocation97_spill] sm:$0xff] %v8518_v53  ;;  %v8538_v53 = vpop.f32.mrf.mxu0 }
 0x123   :  { %6504 = vmatmul.mubr.msk.bf16.gmra.mxu1 %vm991_vm4, %v7895_v30  ;;  %v8524_v62 = vpop.f32.mrf.mxu1 }
 0x124   :  { %6507 = vmatprep.mubr.msk.bf16.mxu1 %vm991_vm4, %v7913_v35  ;;  %10080 = vst [vmem:[#allocation98_spill] sm:$0xff] %v8524_v62  ;;  %v10085_v62 = vld [vmem:[#allocation20_spill] sm:$0xff] }
 0x125   :  { %v8534_v22 = vpop.f32.mrf.mxu1 }
 0x126   :  { %10083 = vst [vmem:[#allocation99_spill] sm:$0xff] %v8534_v22 }
 0x127   :  { %v8540_v48 = vpop.f32.mrf.mxu1 }
 0x128   :  { %6574 = vmatmul.mubr.msk.bf16.gmra.mxu0 %vm991_vm4, %v10081_v39  ;;  %10084 = vst [vmem:[#allocation100_spill] sm:$0xff] %v8540_v48  ;;  %v8559_v48 = vld [vmem:[%s9785_s0 + $0xc0] sm:$0xf] }
 0x129   :  { %6577 = vmatprep.mubr.msk.bf16.mxu0 %vm991_vm4, %v10082_v26  ;;  %10088 = vst [vmem:[#allocation102_spill] sm:$0xff] %v8559_v48  ;;  %v3116_v0 = vshrl.u32 %v8559_v48, 16  ;;  %v3119_v4 = vshll.u32 %v8559_v48, 16 }
 0x12b   :  { %6508 = vmatmul.mubr.msk.bf16.gmra.mxu1 %vm991_vm4, %v7923_v40 }
 0x12c   :  { %6511 = vmatprep.mubr.msk.bf16.mxu1 %vm991_vm4, %v8014_v12  ;;  %v3118_v12 = vrot.slane %v3116_v0, 4 }
 0x12e   :  { %v8544_v39 = vpop.f32.mrf.mxu0 }
 0x130   :  { %6578 = vmatmul.mubr.msk.bf16.gmra.mxu0 %vm991_vm4, %v10085_v62  ;;  %v8554_v22 = vpop.f32.mrf.mxu0  ;;  %v8564_v62 = vld [vmem:[%s9785_s0 + $0xc4] sm:$0xf] }
 0x131   :  { %6581 = vmatprep.mubr.msk.bf16.mxu0 %vm991_vm4, %v10086_v9  ;;  %v8550_v26 = vpop.f32.mrf.mxu1  ;;  %10089 = vst [vmem:[#allocation103_spill] sm:$0xff] %v8564_v62  ;;  %v3129_v61 = vshrl.u32 %v8564_v62, 16 }
 0x132   :  { %10087 = vst [vmem:[#allocation101_spill] sm:$0xff] %v8550_v26  ;;  %v8570_v26 = vpop.f32.mrf.mxu0 }
 0x133   :  { %6512 = vmatmul.mubr.msk.bf16.gmra.mxu1 %vm991_vm4, %v8022_v13  ;;  %v8566_v9 = vpop.f32.mrf.mxu1  ;;  %v3125_v13 = vshll.u32 %v8564_v62, 16  ;;  %v3131_v35 = vrot.slane %v3129_v61, 4 }
 0x134   :  { %6515 = vmatprep.mubr.msk.bf16.mxu1 %vm991_vm4, %v8047_v11  ;;  %10090 = vst [vmem:[#allocation104_spill] sm:$0xff] %v8566_v9  ;;  %v10092_v11 = vld [vmem:[#allocation28_spill] sm:$0xff] }
 0x135   :  { %v8580_v9 = vpop.f32.mrf.mxu1  ;;  %v3127_v40 = vrot.slane %v3125_v13, 5  ;;  %v3135_v13 = vshll.u32 %v8589_v18, 16 }
 0x136   :  { %10093 = vst [vmem:[#allocation105_spill] sm:$0xff] %v8580_v9 }
 0x137   :  { %v8591_v17 = vpop.f32.mrf.mxu1  ;;  %v3132_v0 = vor.u32 %v3131_v35, %v3127_v40  ;;  %v3137_v30 = vrot.slane %v3135_v13, 5 }
 0x138   :  { %6582 = vmatmul.mubr.msk.bf16.gmra.mxu0 %vm991_vm4, %v10091_v42  ;;  %v8584_v42 = vpop.f32.mrf.mxu0  ;;  %10095 = vst [vmem:[#allocation107_spill] sm:$0xff] %v8591_v17 }
 0x139   :  { %6585 = vmatprep.mubr.msk.bf16.mxu0 %vm991_vm4, %v10092_v11  ;;  %v3121_v11 = vrot.slane %v3119_v4, 5  ;;  %v3133_v17 = vrot.slane %v3132_v0, 4 }
 0x13b   :  { %6516 = vmatmul.mubr.msk.bf16.gmra.mxu1 %vm991_vm4, %v8053_v59  ;;  %v10097_v59 = vld [vmem:[#allocation37_spill] sm:$0xff]  ;;  %v3138_v18 = vsel %vm7066_vm5, %v3133_v17, %v3137_v30  ;;  %v10107_v30 = vld [vmem:[#allocation7_spill] sm:$0xff] }
 0x13c   :  { %6519 = vmatprep.mubr.msk.bf16.mxu1 %vm991_vm4, %v8069_v51  ;;  %v3122_v51 = vor.u32 %v3121_v11, %v3118_v12  ;;  %v10101_v12 = vld [vmem:[#allocation47_spill] sm:$0xff]  ;;  %v10157_v11 = vld [vmem:[#allocation29_spill] sm:$0xff] }
 0x13e   :  { %v8595_v9 = vpop.f32.mrf.mxu0 }
 0x140   :  { %6586 = vmatmul.mubr.msk.bf16.gmra.mxu0 %vm991_vm4, %v10096_v36  ;;  %v8606_v4 = vpop.f32.mrf.mxu0  ;;  %v3123_v36 = vrot.slane %v3122_v51, 4 }
 0x141   :  { %6589 = vmatprep.mubr.msk.bf16.mxu0 %vm991_vm4, %v10097_v59  ;;  %v10100_v59 = vld [vmem:[#allocation42_spill] sm:$0xff] }
 0x142   :  { %v8612_v35 = vpop.f32.mrf.mxu0 }
 0x143   :  { %6520 = vmatmul.mubr.msk.bf16.gmra.mxu1 %vm991_vm4, %v7941_v10  ;;  %v8602_v61 = vpop.f32.mrf.mxu1  ;;  %v10114_v10 = vld [vmem:[#allocation13_spill] sm:$0xff] }
 0x144   :  { %10098 = vst [vmem:[#allocation108_spill] sm:$0xff] %v8602_v61  ;;  %6523 = vmatprep.mubr.msk.bf16.mxu1 %vm991_vm4, %v7951_v45  ;;  %v3128_v61 = vsel %vm7066_vm5, %v3123_v36, %v3127_v40  ;;  %v8624_v0 = vpop.f32.mrf.mxu0  ;;  %v8634_v40 = vcombine.low %v8559_v48, %v8564_v62 }
 0x145   :  { %v8608_v49 = vpop.f32.mrf.mxu1  ;;  %v8628_v13 = vcombine.low %v3128_v61, %v3138_v18 }
 0x146   :  { %10099 = vst [vmem:[#allocation109_spill] sm:$0xff] %v8608_v49  ;;  %10106 = vst [vmem:[#allocation113_spill] sm:$0xff] %v8634_v40 }
 0x147   :  { %v8622_v51 = vpop.f32.mrf.mxu1  ;;  %10104 = vst [vmem:[#allocation111_spill] sm:$0xff] %v8628_v13 }
 0x148   :  { %6590 = vmatmul.mubr.msk.bf16.gmra.mxu0 %vm991_vm4, %v10100_v59  ;;  %10103 = vst [vmem:[#allocation110_spill] sm:$0xff] %v8622_v51 }
 0x149   :  { %6593 = vmatprep.mubr.msk.bf16.mxu0 %vm991_vm4, %v10101_v12  ;;  %v8630_v59 = vpop.f32.mrf.mxu1 }
 0x14a   :  { %10105 = vst [vmem:[#allocation112_spill] sm:$0xff] %v8630_v59 }
 0x14b   :  { %6524 = vmatmul.mubr.msk.bf16.gmra.mxu1 %vm991_vm4, %v7960_v55 }
 0x14c   :  { %6527 = vmatprep.mubr.msk.bf16.mxu1 %vm991_vm4, %v7979_v50 }
 0x150   :  { %v8636_v36 = vpop.f32.mrf.mxu0  ;;  %6594 = vmatmul.mubr.msk.bf16.gmra.mxu0 %vm991_vm4, %v8628_v13 }
 0x151   :  { %6597 = vmatprep.mubr.msk.bf16.mxu0 %vm991_vm4, %v10107_v30  ;;  %v10111_v30 = vld [vmem:[#allocation9_spill] sm:$0xff] }
 0x152   :  { %v8642_v17 = vpop.f32.mrf.mxu0 }
 0x153   :  { %v8644_v12 = vpop.f32.mrf.mxu1  ;;  %6528 = vmatmul.mubr.msk.bf16.gmra.mxu1 %vm991_vm4, %v8634_v40 }
 0x154   :  { %10108 = vst [vmem:[#allocation7_spill] sm:$0xff] %v8644_v12  ;;  %v8648_v18 = vpop.f32.mrf.mxu0  ;;  %6531 = vmatprep.mubr.msk.bf16.mxu1 %vm991_vm4, %v8168_v57  ;;  %v10113_v12 = vld [vmem:[#allocation11_spill] sm:$0xff] }
 0x155   :  { %v8652_v61 = vpop.f32.mrf.mxu1 }
 0x156   :  { %10109 = vst [vmem:[#allocation114_spill] sm:$0xff] %v8652_v61  ;;  %v8654_v59 = vpop.f32.mrf.mxu0 }
 0x157   :  { %v8656_v13 = vpop.f32.mrf.mxu1 }
 0x158   :  { %10110 = vst [vmem:[#allocation115_spill] sm:$0xff] %v8656_v13  ;;  %v6435_v51 = vpop.f32.mrf.mxu0  ;;  %6598 = vmatmul.mubr.msk.bf16.gmra.mxu0 %vm991_vm4, %v10111_v30 }
 0x159   :  { %v8660_v49 = vpop.f32.mrf.mxu1  ;;  %6601 = vmatprep.mubr.msk.bf16.mxu0 %vm991_vm4, %v10113_v12 }
 0x15a   :  { %10112 = vst [vmem:[#allocation116_spill] sm:$0xff] %v8660_v49  ;;  %v2422_v40 = vpop.f32.mrf.mxu0 }
 0x15b   :  { %v6369_v50 = vpop.f32.mrf.mxu1  ;;  %6532 = vmatmul.mubr.msk.bf16.gmra.mxu1 %vm991_vm4, %v8172_v8 }
 0x15c   :  { %v1686_v57 = vadd.f32 %v6369_v50, %v8216_v3  ;;  %v6436_v61 = vpop.f32.mrf.mxu0  ;;  %6535 = vmatprep.mubr.msk.bf16.mxu1 %vm991_vm4, %v8210_v24  ;;  %v10115_v3 = vld [vmem:[#allocation15_spill] sm:$0xff] }
 0x15d   :  { %v1677_v13 = vpop.f32.mrf.mxu1 }
 0x15e   :  { %v8669_v48 = vadd.f32 %v6435_v51, %v1686_v57  ;;  %v1678_v30 = vadd.f32 %v1677_v13, %v8242_v21  ;;  %v2425_v49 = vpop.f32.mrf.mxu0 }
 0x15f   :  { %v6370_v62 = vpop.f32.mrf.mxu1 }
 0x160   :  { %v8672_v55 = vadd.f32 %v2422_v40, %v1678_v30  ;;  %v1689_v12 = vadd.f32 %v6370_v62, %v8266_v31  ;;  %v6439_v45 = vpop.f32.mrf.mxu0  ;;  %6602 = vmatmul.mubr.msk.bf16.gmra.mxu0 %vm991_vm4, %v10114_v10 }
 0x161   :  { %v1680_v50 = vpop.f32.mrf.mxu1  ;;  %6605 = vmatprep.mubr.msk.bf16.mxu0 %vm991_vm4, %v10115_v3 }
 0x162   :  { %v8679_v24 = vadd.f32 %v6436_v61, %v1689_v12  ;;  %v1681_v51 = vadd.f32 %v1680_v50, %v8290_v1  ;;  %v2438_v57 = vpop.f32.mrf.mxu0 }
 0x163   :  { %v6373_v21 = vpop.f32.mrf.mxu1  ;;  %6536 = vmatmul.mubr.msk.bf16.gmra.mxu1 %vm991_vm4, %v8214_v19 }
 0x164   :  { %v8684_v13 = vadd.f32 %v2425_v49, %v1681_v51  ;;  %v1702_v31 = vadd.f32 %v6373_v21, %v8312_v34  ;;  %v6440_v62 = vpop.f32.mrf.mxu0  ;;  %6539 = vmatprep.mubr.msk.bf16.mxu1 %vm991_vm4, %v8258_v38  ;;  %v10116_v49 = vld [vmem:[#allocation17_spill] sm:$0xff]  ;;  %v10117_v51 = vld [vmem:[#allocation19_spill] sm:$0xff] }
 0x165   :  { %v1693_v40 = vpop.f32.mrf.mxu1 }
 0x166   :  { %v8689_v30 = vadd.f32 %v6439_v45, %v1702_v31  ;;  %v1694_v12 = vadd.f32 %v1693_v40, %v8334_v63  ;;  %v2441_v61 = vpop.f32.mrf.mxu0 }
 0x167   :  { %v6374_v1 = vpop.f32.mrf.mxu1 }
 0x168   :  { %v8692_v50 = vadd.f32 %v2438_v57, %v1694_v12  ;;  %v1705_v3 = vadd.f32 %v6374_v1, %v8353_v20  ;;  %v6443_v10 = vpop.f32.mrf.mxu0  ;;  %6606 = vmatmul.mubr.msk.bf16.gmra.mxu0 %vm991_vm4, %v10116_v49 }
 0x169   :  { %v1696_v34 = vpop.f32.mrf.mxu1  ;;  %6609 = vmatprep.mubr.msk.bf16.mxu0 %vm991_vm4, %v10117_v51 }
 0x16a   :  { %v8699_v21 = vadd.f32 %v6440_v62, %v1705_v3  ;;  %v1697_v45 = vadd.f32 %v1696_v34, %v8375_v33  ;;  %v2454_v31 = vpop.f32.mrf.mxu0 }
 0x16b   :  { %v6377_v63 = vpop.f32.mrf.mxu1  ;;  %6540 = vmatmul.mubr.msk.bf16.gmra.mxu1 %vm991_vm4, %v8264_v2 }
 0x16c   :  { %v8704_v57 = vadd.f32 %v2441_v61, %v1697_v45  ;;  %v1718_v20 = vadd.f32 %v6377_v63, %v8399_v52  ;;  %v6444_v40 = vpop.f32.mrf.mxu0  ;;  %6543 = vmatprep.mubr.msk.bf16.mxu1 %vm991_vm4, %v8304_v44  ;;  %v10118_v61 = vld [vmem:[#allocation21_spill] sm:$0xff]  ;;  %v10119_v45 = vld [vmem:[#allocation23_spill] sm:$0xff] }
 0x16d   :  { %v1709_v12 = vpop.f32.mrf.mxu1 }
 0x16e   :  { %v8709_v1 = vadd.f32 %v6443_v10, %v1718_v20  ;;  %v1710_v3 = vadd.f32 %v1709_v12, %v8420_v60  ;;  %v2457_v62 = vpop.f32.mrf.mxu0 }
 0x16f   :  { %v6378_v33 = vpop.f32.mrf.mxu1 }
 0x170   :  { %v8712_v34 = vadd.f32 %v2454_v31, %v1710_v3  ;;  %v1721_v51 = vadd.f32 %v6378_v33, %v8438_v58  ;;  %v6447_v49 = vpop.f32.mrf.mxu0  ;;  %6610 = vmatmul.mubr.msk.bf16.gmra.mxu0 %vm991_vm4, %v10118_v61 }
 0x171   :  { %v1712_v52 = vpop.f32.mrf.mxu1  ;;  %6613 = vmatprep.mubr.msk.bf16.mxu0 %vm991_vm4, %v10119_v45 }
 0x172   :  { %v8719_v63 = vadd.f32 %v6444_v40, %v1721_v51  ;;  %v1713_v10 = vadd.f32 %v1712_v52, %v8454_v46  ;;  %v2470_v20 = vpop.f32.mrf.mxu0  ;;  %v8735_v46 = vld [vmem:[%s9785_s0 + $0x198] sm:$0xf] }
 0x173   :  { %v6381_v60 = vpop.f32.mrf.mxu1  ;;  %6544 = vmatmul.mubr.msk.bf16.gmra.mxu1 %vm991_vm4, %v8310_v41  ;;  %v3143_v45 = vshll.u32 %v8735_v46, 16 }
 0x174   :  { %10120 = vst [vmem:[#allocation117_spill] sm:$0xff] %v8719_v63  ;;  %v8724_v31 = vadd.f32 %v2457_v62, %v1713_v10  ;;  %v1734_v58 = vadd.f32 %v6381_v60, %v8464_v54  ;;  %v6448_v12 = vpop.f32.mrf.mxu0  ;;  %6547 = vmatprep.mubr.msk.bf16.mxu1 %vm991_vm4, %v8342_v14  ;;  %v8740_v62 = vld [vmem:[%s9785_s0 + $0x19c] sm:$0xf]  ;;  %v10124_v60 = vld [vmem:[#allocation26_spill] sm:$0xff] }
 0x175   :  { %v1725_v3 = vpop.f32.mrf.mxu1  ;;  %v3153_v61 = vshrl.u32 %v8740_v62, 16  ;;  %v3145_v63 = vrot.slane %v3143_v45, 5  ;;  %v10130_v45 = vld [vmem:[#allocation40_spill] sm:$0xff] }
 0x176   :  { %10121 = vst [vmem:[#allocation118_spill] sm:$0xff] %v8724_v31  ;;  %v8729_v33 = vadd.f32 %v6447_v49, %v1734_v58  ;;  %v1726_v51 = vadd.f32 %v1725_v3, %v8474_v29  ;;  %v2473_v40 = vpop.f32.mrf.mxu0  ;;  %v10125_v58 = vld [vmem:[#allocation30_spill] sm:$0xff]  ;;  %v3140_v3 = vshrl.u32 %v8735_v46, 16 }
 0x177   :  { %v6382_v54 = vpop.f32.mrf.mxu1 }
 0x178   :  { %10122 = vst [vmem:[#allocation119_spill] sm:$0xff] %v8729_v33  ;;  %v8742_v52 = vadd.f32 %v2470_v20, %v1726_v51  ;;  %v1737_v10 = vadd.f32 %v6382_v54, %v8480_v16  ;;  %v6451_v49 = vpop.f32.mrf.mxu0  ;;  %6614 = vmatmul.mubr.msk.bf16.gmra.mxu0 %vm991_vm4, %v10124_v60  ;;  %v3149_v33 = vshll.u32 %v8740_v62, 16  ;;  %v3142_v14 = vrot.slane %v3140_v3, 4  ;;  %v10129_v3 = vld [vmem:[#allocation35_spill] sm:$0xff] }
 0x179   :  { %v1728_v29 = vpop.f32.mrf.mxu1  ;;  %6617 = vmatprep.mubr.msk.bf16.mxu0 %vm991_vm4, %v10125_v58 }
 0x17a   :  { %10123 = vst [vmem:[#allocation120_spill] sm:$0xff] %v8742_v52  ;;  %v8753_v20 = vadd.f32 %v6448_v12, %v1737_v10  ;;  %v1729_v16 = vadd.f32 %v1728_v29, %v8492_v15  ;;  %v2486_v51 = vpop.f32.mrf.mxu0  ;;  %v3151_v12 = vrot.slane %v3149_v33, 5  ;;  %v3155_v10 = vrot.slane %v3153_v61, 4 }
 0x17b   :  { %v6385_v54 = vpop.f32.mrf.mxu1  ;;  %6548 = vmatmul.mubr.msk.bf16.gmra.mxu1 %vm991_vm4, %v8351_v7 }
 0x17c   :  { %10126 = vst [vmem:[#allocation121_spill] sm:$0xff] %v8753_v20  ;;  %v8758_v60 = vadd.f32 %v2473_v40, %v1729_v16  ;;  %v1750_v58 = vadd.f32 %v6385_v54, %v8511_v32  ;;  %v6452_v52 = vpop.f32.mrf.mxu0  ;;  %6551 = vmatprep.mubr.msk.bf16.mxu1 %vm991_vm4, %v8389_v56  ;;  %v8769_v40 = vld [vmem:[%s9785_s0 + $0x1a0] sm:$0x1] }
 0x17d   :  { %v1741_v31 = vpop.f32.mrf.mxu1  ;;  %10128 = vst [vmem:[#allocation123_spill] sm:$0xff] %v8769_v40  ;;  %v3159_v33 = vshll.u32 %v8769_v40, 16 }
 0x17e   :  { %10127 = vst [vmem:[#allocation122_spill] sm:$0xff] %v8758_v60  ;;  %v8763_v20 = vadd.f32 %v6451_v49, %v1750_v58  ;;  %v1742_v15 = vadd.f32 %v1741_v31, %v8522_v5  ;;  %v2489_v29 = vpop.f32.mrf.mxu0  ;;  %v3146_v5 = vor.u32 %v3145_v63, %v3142_v14  ;;  %v3156_v31 = vor.u32 %v3155_v10, %v3151_v12 }
 0x17f   :  { %v6386_v32 = vpop.f32.mrf.mxu1 }
 0x180   :  { %v8771_v16 = vadd.f32 %v2486_v51, %v1742_v15  ;;  %v1753_v54 = vadd.f32 %v6386_v32, %v8528_v37  ;;  %v6455_v60 = vpop.f32.mrf.mxu0  ;;  %6618 = vmatmul.mubr.msk.bf16.gmra.mxu0 %vm991_vm4, %v10129_v3  ;;  %v3147_v63 = vrot.slane %v3146_v5, 4  ;;  %v3157_v10 = vrot.slane %v3156_v31, 4 }
 0x181   :  { %v1744_v61 = vpop.f32.mrf.mxu1  ;;  %6621 = vmatprep.mubr.msk.bf16.mxu0 %vm991_vm4, %v10130_v45 }
 0x182   :  { %v8779_v49 = vadd.f32 %v6452_v52, %v1753_v54  ;;  %v1745_v58 = vadd.f32 %v1744_v61, %v8538_v53  ;;  %v2502_v51 = vpop.f32.mrf.mxu0  ;;  %v3161_v52 = vrot.slane %v3159_v33, 5 }
 0x183   :  { %v6389_v15 = vpop.f32.mrf.mxu1  ;;  %6552 = vmatmul.mubr.msk.bf16.gmra.mxu1 %vm991_vm4, %v8397_v43 }
 0x184   :  { %v8784_v37 = vadd.f32 %v2489_v29, %v1745_v58  ;;  %v1766_v32 = vadd.f32 %v6389_v15, %v8544_v39  ;;  %v6456_v3 = vpop.f32.mrf.mxu0  ;;  %6555 = vmatprep.mubr.msk.bf16.mxu1 %vm991_vm4, %v8428_v23  ;;  %v10132_v39 = vld [vmem:[#allocation45_spill] sm:$0xff] }
 0x185   :  { %v1757_v14 = vpop.f32.mrf.mxu1 }
 0x186   :  { %10131 = vst [vmem:[#allocation124_spill] sm:$0xff] %v8784_v37  ;;  %v8789_v54 = vadd.f32 %v6455_v60, %v1766_v32  ;;  %v1758_v53 = vadd.f32 %v1757_v14, %v8554_v22  ;;  %v2505_v61 = vpop.f32.mrf.mxu0  ;;  %v10133_v37 = vld [vmem:[#allocation48_spill] sm:$0xff]  ;;  %v3152_v60 = vsel %vm7066_vm5, %v3147_v63, %v3151_v12  ;;  %v3162_v22 = vsel %vm7066_vm5, %v3157_v10, %v3161_v52 }
 0x187   :  { %v6390_v45 = vpop.f32.mrf.mxu1  ;;  %v8813_v12 = vcombine.low %v3152_v60, %v3162_v22  ;;  %v8820_v52 = vcombine.low %v8735_v46, %v8740_v62 }
 0x188   :  { %v8792_v40 = vadd.f32 %v2502_v51, %v1758_v53  ;;  %v1769_v29 = vadd.f32 %v6390_v45, %v8570_v26  ;;  %v6459_v58 = vpop.f32.mrf.mxu0  ;;  %6622 = vmatmul.mubr.msk.bf16.gmra.mxu0 %vm991_vm4, %v10132_v39 }
 0x189   :  { %v1760_v15 = vpop.f32.mrf.mxu1  ;;  %6625 = vmatprep.mubr.msk.bf16.mxu0 %vm991_vm4, %v10133_v37  ;;  %10134 = vst [vmem:[#allocation125_spill] sm:$0xff] %v8813_v12  ;;  %v10153_v37 = vld [vmem:[#allocation54_spill] sm:$0xff] }
 0x18a   :  { %v8803_v5 = vadd.f32 %v6456_v3, %v1769_v29  ;;  %v1761_v31 = vadd.f32 %v1760_v15, %v8584_v42  ;;  %v2518_v33 = vpop.f32.mrf.mxu0 }
 0x18b   :  { %v6393_v26 = vpop.f32.mrf.mxu1  ;;  %6556 = vmatmul.mubr.msk.bf16.gmra.mxu1 %vm991_vm4, %v8436_v25 }
 0x18c   :  { %v8808_v45 = vadd.f32 %v2505_v61, %v1761_v31  ;;  %v1782_v51 = vadd.f32 %v6393_v26, %v8595_v9  ;;  %v6460_v32 = vpop.f32.mrf.mxu0  ;;  %6559 = vmatprep.mubr.msk.bf16.mxu1 %vm991_vm4, %v8458_v47 }
 0x18d   :  { %v1773_v14 = vpop.f32.mrf.mxu1 }
 0x18e   :  { %v8815_v3 = vadd.f32 %v6459_v58, %v1782_v51  ;;  %v1774_v42 = vadd.f32 %v1773_v14, %v8606_v4  ;;  %v2521_v63 = vpop.f32.mrf.mxu0 }
 0x18f   :  { %v6394_v10 = vpop.f32.mrf.mxu1 }
 0x190   :  { %v8822_v53 = vadd.f32 %v2518_v33, %v1774_v42  ;;  %v1785_v9 = vadd.f32 %v6394_v10, %v8612_v35  ;;  %v6463_v61 = vpop.f32.mrf.mxu0  ;;  %6626 = vmatmul.mubr.msk.bf16.gmra.mxu0 %vm991_vm4, %v8813_v12  ;;  %v10136_v10 = vld [vmem:[#allocation52_spill] sm:$0xff] }
 0x191   :  { %v1776_v29 = vpop.f32.mrf.mxu1  ;;  %6697 = vmatprep.mubr.msk.bf16.mxu0 %vm991_vm4, %v7862_v27 }
 0x192   :  { %v8829_v58 = vadd.f32 %v6460_v32, %v1785_v9  ;;  %v1777_v4 = vadd.f32 %v1776_v29, %v8624_v0  ;;  %v2534_v15 = vpop.f32.mrf.mxu0  ;;  %v10137_v29 = vld [vmem:[#allocation49_spill] sm:$0xff] }
 0x193   :  { %v6397_v60 = vpop.f32.mrf.mxu1  ;;  %6560 = vmatmul.mubr.msk.bf16.gmra.mxu1 %vm991_vm4, %v8820_v52 }
 0x194   :  { %v8834_v22 = vadd.f32 %v2521_v63, %v1777_v4  ;;  %v1798_v35 = vadd.f32 %v6397_v60, %v8636_v36  ;;  %v6464_v31 = vpop.f32.mrf.mxu0  ;;  %6631 = vmatprep.mubr.msk.bf16.mxu1 %vm991_vm4, %v7829_v28  ;;  %v10135_v63 = vld [vmem:[#allocation96_spill] sm:$0xff] }
 0x195   :  { %v1789_v33 = vpop.f32.mrf.mxu1  ;;  %v10139_v4 = vld [vmem:[#allocation80_spill] sm:$0xff] }
 0x196   :  { %v8839_v26 = vadd.f32 %v6463_v61, %v1798_v35  ;;  %v1790_v27 = vadd.f32 %v1789_v33, %v8642_v17  ;;  %v2537_v51 = vpop.f32.mrf.mxu0  ;;  %v10141_v35 = vld [vmem:[#allocation50_spill] sm:$0xff] }
 0x197   :  { %v6398_v0 = vpop.f32.mrf.mxu1 }
 0x198   :  { %v8842_v32 = vadd.f32 %v2534_v15, %v1790_v27  ;;  %v1801_v14 = vadd.f32 %v6398_v0, %v8648_v18  ;;  %v6467_v42 = vpop.f32.mrf.mxu0  ;;  %6698 = vmatmul.mubr.msk.bf16.vlgmr.msra.gmra.mxu0 %vm991_vm4, %v7893_v6  ;;  %v10140_v6 = vld [vmem:[#allocation94_spill] sm:$0xff]  ;;  %v10143_v27 = vld [vmem:[#allocation83_spill] sm:$0xff] }
 0x199   :  { %v1792_v36 = vpop.f32.mrf.mxu1  ;;  %6828 = vmatpush3.bf16.msra.mxu0 %v10135_v63  ;;  %6701 = vmatprep.mubr.msk.bf16.mxu0 %vm991_vm4, %v10136_v10  ;;  %v10145_v63 = vld [vmem:[#allocation84_spill] sm:$0xff] }
 0x19a   :  { %v8850_v28 = vadd.f32 %v6464_v31, %v1801_v14  ;;  %v1793_v17 = vadd.f32 %v1792_v36, %v8654_v59  ;;  %v2550_v9 = vpop.f32.mrf.mxu0 }
 0x19b   :  { %v6401_v61 = vpop.f32.mrf.mxu1  ;;  %6632 = vmatmul.mubr.msk.bf16.vlgmr.msra.gmra.mxu1 %vm991_vm4, %v10137_v29 }
 0x19c   :  { %v8855_v18 = vadd.f32 %v2537_v51, %v1793_v17  ;;  %v1814_v15 = vadd.f32 %v6401_v61, %v10139_v4  ;;  %6762 = vmatpush3.bf16.msra.mxu1 %v10140_v6  ;;  %v6468_v60 = vpop.f32.mrf.mxu0  ;;  %6635 = vmatprep.mubr.msk.bf16.mxu1 %vm991_vm4, %v10141_v35  ;;  %v10146_v17 = vld [vmem:[#allocation53_spill] sm:$0xff]  ;;  %v10147_v4 = vld [vmem:[#allocation55_spill] sm:$0xff] }
 0x19d   :  { %v1805_v33 = vpop.f32.mrf.mxu1  ;;  %v10217_v35 = vld [vmem:[#allocation67_spill] sm:$0xff] }
 0x19e   :  { %10138 = vst [vmem:[#allocation96_spill] sm:$0xff] %v8855_v18  ;;  %v8861_v31 = vadd.f32 %v6467_v42, %v1814_v15  ;;  %v1806_v59 = vadd.f32 %v1805_v33, %v10143_v27  ;;  %v2553_v0 = vpop.f32.mrf.mxu0  ;;  %v10149_v42 = vld [vmem:[#allocation87_spill] sm:$0xff] }
 0x19f   :  { %v6402_v14 = vpop.f32.mrf.mxu1  ;;  %v10150_v27 = vld [vmem:[#allocation51_spill] sm:$0xff] }
 0x1a0   :  { %10142 = vst [vmem:[#allocation52_spill] sm:$0xff] %v8861_v31  ;;  %v8864_v36 = vadd.f32 %v2550_v9, %v1806_v59  ;;  %v1817_v51 = vadd.f32 %v6402_v14, %v10145_v63  ;;  %v6471_v10 = vpop.f32.mrf.mxu0  ;;  %6702 = vmatmul.mubr.msk.bf16.gmra.mxu0 %vm991_vm4, %v10146_v17  ;;  %v10152_v59 = vld [vmem:[#allocation88_spill] sm:$0xff] }
 0x1a1   :  { %v1808_v61 = vpop.f32.mrf.mxu1  ;;  %6705 = vmatprep.mubr.msk.bf16.mxu0 %vm991_vm4, %v10147_v4 }
 0x1a2   :  { %10144 = vst [vmem:[#allocation49_spill] sm:$0xff] %v8864_v36  ;;  %v8871_v6 = vadd.f32 %v6468_v60, %v1817_v51  ;;  %v1809_v15 = vadd.f32 %v1808_v61, %v10149_v42  ;;  %v2566_v12 = vpop.f32.mrf.mxu0  ;;  %v10155_v60 = vld [vmem:[#allocation27_spill] sm:$0xff] }
 0x1a3   :  { %v6405_v33 = vpop.f32.mrf.mxu1  ;;  %6636 = vmatmul.mubr.msk.bf16.gmra.mxu1 %vm991_vm4, %v10150_v27 }
 0x1a4   :  { %10148 = vst [vmem:[#allocation80_spill] sm:$0xff] %v8871_v6  ;;  %v8876_v9 = vadd.f32 %v2553_v0, %v1809_v15  ;;  %v1830_v14 = vadd.f32 %v6405_v33, %v10152_v59  ;;  %v6472_v63 = vpop.f32.mrf.mxu0  ;;  %6639 = vmatprep.mubr.msk.bf16.mxu1 %vm991_vm4, %v10153_v37  ;;  %v10158_v0 = vld [vmem:[#allocation66_spill] sm:$0xff]  ;;  %v10159_v33 = vld [vmem:[#allocation68_spill] sm:$0xff] }
 0x1a5   :  { %v1821_v17 = vpop.f32.mrf.mxu1 }
 0x1a6   :  { %10151 = vst [vmem:[#allocation94_spill] sm:$0xff] %v8876_v9  ;;  %v8881_v39 = vadd.f32 %v6471_v10, %v1830_v14  ;;  %v1822_v51 = vadd.f32 %v1821_v17, %v10155_v60  ;;  %v2569_v4 = vpop.f32.mrf.mxu0  ;;  %v10161_v10 = vld [vmem:[#allocation31_spill] sm:$0xff]  ;;  %v10162_v60 = vld [vmem:[#allocation56_spill] sm:$0xff] }
 0x1a7   :  { %v6406_v61 = vpop.f32.mrf.mxu1 }
 0x1a8   :  { %10154 = vst [vmem:[#allocation83_spill] sm:$0xff] %v8881_v39  ;;  %v8884_v42 = vadd.f32 %v2566_v12, %v1822_v51  ;;  %v1833_v6 = vadd.f32 %v6406_v61, %v10157_v11  ;;  %v6475_v36 = vpop.f32.mrf.mxu0  ;;  %6706 = vmatmul.mubr.msk.bf16.gmra.mxu0 %vm991_vm4, %v10158_v0  ;;  %v10164_v11 = vld [vmem:[#allocation34_spill] sm:$0xff] }
 0x1a9   :  { %v1824_v15 = vpop.f32.mrf.mxu1  ;;  %6709 = vmatprep.mubr.msk.bf16.mxu0 %vm991_vm4, %v10159_v33 }
 0x1aa   :  { %10156 = vst [vmem:[#allocation84_spill] sm:$0xff] %v8884_v42  ;;  %v8891_v59 = vadd.f32 %v6472_v63, %v1833_v6  ;;  %v1825_v14 = vadd.f32 %v1824_v15, %v10161_v10  ;;  %v2582_v39 = vpop.f32.mrf.mxu0  ;;  %v10165_v42 = vld [vmem:[#allocation59_spill] sm:$0xff] }
 0x1ab   :  { %v6409_v17 = vpop.f32.mrf.mxu1  ;;  %6640 = vmatmul.mubr.msk.bf16.gmra.mxu1 %vm991_vm4, %v10162_v60  ;;  %v10167_v6 = vld [vmem:[#allocation43_spill] sm:$0xff] }
 0x1ac   :  { %10160 = vst [vmem:[#allocation53_spill] sm:$0xff] %v8891_v59  ;;  %v8896_v12 = vadd.f32 %v2569_v4, %v1825_v14  ;;  %v1846_v51 = vadd.f32 %v6409_v17, %v10164_v11  ;;  %v6476_v61 = vpop.f32.mrf.mxu0  ;;  %6643 = vmatprep.mubr.msk.bf16.mxu1 %vm991_vm4, %v10165_v42  ;;  %v10169_v59 = vld [vmem:[#allocation41_spill] sm:$0xff]  ;;  %v10170_v4 = vld [vmem:[#allocation71_spill] sm:$0xff]  ;;  %v10171_v17 = vld [vmem:[#allocation72_spill] sm:$0xff] }
 0x1ad   :  { %v1837_v0 = vpop.f32.mrf.mxu1 }
 0x1ae   :  { %10163 = vst [vmem:[#allocation55_spill] sm:$0xff] %v8896_v12  ;;  %v8901_v9 = vadd.f32 %v6475_v36, %v1846_v51  ;;  %v1838_v63 = vadd.f32 %v1837_v0, %v10167_v6  ;;  %v2585_v33 = vpop.f32.mrf.mxu0  ;;  %v10173_v36 = vld [vmem:[#allocation91_spill] sm:$0xff]  ;;  %v10174_v6 = vld [vmem:[#allocation64_spill] sm:$0xff] }
 0x1af   :  { %v6410_v15 = vpop.f32.mrf.mxu1 }
 0x1b0   :  { %10166 = vst [vmem:[#allocation87_spill] sm:$0xff] %v8901_v9  ;;  %v8904_v10 = vadd.f32 %v2582_v39, %v1838_v63  ;;  %v1849_v37 = vadd.f32 %v6410_v15, %v10169_v59  ;;  %v6479_v60 = vpop.f32.mrf.mxu0  ;;  %6710 = vmatmul.mubr.msk.bf16.gmra.mxu0 %vm991_vm4, %v10170_v4  ;;  %v10176_v59 = vld [vmem:[#allocation6_spill] sm:$0xff] }
 0x1b1   :  { %v1840_v14 = vpop.f32.mrf.mxu1  ;;  %6713 = vmatprep.mubr.msk.bf16.mxu0 %vm991_vm4, %v10171_v17 }
 0x1b2   :  { %10168 = vst [vmem:[#allocation88_spill] sm:$0xff] %v8904_v10  ;;  %v8911_v11 = vadd.f32 %v6476_v61, %v1849_v37  ;;  %v1841_v51 = vadd.f32 %v1840_v14, %v10173_v36  ;;  %v2598_v9 = vpop.f32.mrf.mxu0  ;;  %v10177_v10 = vld [vmem:[#allocation69_spill] sm:$0xff]  ;;  %v10179_v37 = vld [vmem:[#allocation92_spill] sm:$0xff] }
 0x1b3   :  { %v6413_v0 = vpop.f32.mrf.mxu1  ;;  %6644 = vmatmul.mubr.msk.bf16.gmra.mxu1 %vm991_vm4, %v10174_v6 }
 0x1b4   :  { %10172 = vst [vmem:[#allocation27_spill] sm:$0xff] %v8911_v11  ;;  %v8916_v39 = vadd.f32 %v2585_v33, %v1841_v51  ;;  %v1862_v63 = vadd.f32 %v6413_v0, %v10176_v59  ;;  %v6480_v15 = vpop.f32.mrf.mxu0  ;;  %6647 = vmatprep.mubr.msk.bf16.mxu1 %vm991_vm4, %v10177_v10  ;;  %v10181_v11 = vld [vmem:[#allocation93_spill] sm:$0xff]  ;;  %v10182_v33 = vld [vmem:[#allocation74_spill] sm:$0xff] }
 0x1b5   :  { %v1853_v4 = vpop.f32.mrf.mxu1  ;;  %v10183_v0 = vld [vmem:[#allocation57_spill] sm:$0xff] }
 0x1b6   :  { %10175 = vst [vmem:[#allocation29_spill] sm:$0xff] %v8916_v39  ;;  %v8921_v12 = vadd.f32 %v6479_v60, %v1862_v63  ;;  %v1854_v61 = vadd.f32 %v1853_v4, %v10179_v37  ;;  %v2601_v17 = vpop.f32.mrf.mxu0  ;;  %v10185_v60 = vld [vmem:[#allocation95_spill] sm:$0xff]  ;;  %v10186_v37 = vld [vmem:[#allocation70_spill] sm:$0xff] }
 0x1b7   :  { %v6414_v14 = vpop.f32.mrf.mxu1 }
 0x1b8   :  { %10178 = vst [vmem:[#allocation66_spill] sm:$0xff] %v8921_v12  ;;  %v8924_v36 = vadd.f32 %v2598_v9, %v1854_v61  ;;  %v1865_v42 = vadd.f32 %v6414_v14, %v10181_v11  ;;  %v6483_v6 = vpop.f32.mrf.mxu0  ;;  %6714 = vmatmul.mubr.msk.bf16.gmra.mxu0 %vm991_vm4, %v10182_v33  ;;  %v10188_v11 = vld [vmem:[#allocation97_spill] sm:$0xff] }
 0x1b9   :  { %v1856_v51 = vpop.f32.mrf.mxu1  ;;  %6717 = vmatprep.mubr.msk.bf16.mxu0 %vm991_vm4, %v10183_v0 }
 0x1ba   :  { %10180 = vst [vmem:[#allocation68_spill] sm:$0xff] %v8924_v36  ;;  %v8931_v59 = vadd.f32 %v6480_v15, %v1865_v42  ;;  %v1857_v63 = vadd.f32 %v1856_v51, %v10185_v60  ;;  %v2614_v12 = vpop.f32.mrf.mxu0  ;;  %v10189_v36 = vld [vmem:[#allocation73_spill] sm:$0xff]  ;;  %v10191_v42 = vld [vmem:[#allocation98_spill] sm:$0xff] }
 0x1bb   :  { %v6417_v4 = vpop.f32.mrf.mxu1  ;;  %6648 = vmatmul.mubr.msk.bf16.gmra.mxu1 %vm991_vm4, %v10186_v37 }
 0x1bc   :  { %10184 = vst [vmem:[#allocation31_spill] sm:$0xff] %v8931_v59  ;;  %v8936_v9 = vadd.f32 %v2601_v17, %v1857_v63  ;;  %v1878_v61 = vadd.f32 %v6417_v4, %v10188_v11  ;;  %v6484_v14 = vpop.f32.mrf.mxu0  ;;  %6651 = vmatprep.mubr.msk.bf16.mxu1 %vm991_vm4, %v10189_v36  ;;  %v10193_v59 = vld [vmem:[#allocation99_spill] sm:$0xff]  ;;  %v10194_v17 = vld [vmem:[#allocation58_spill] sm:$0xff]  ;;  %v10195_v4 = vld [vmem:[#allocation60_spill] sm:$0xff] }
 0x1bd   :  { %v1869_v33 = vpop.f32.mrf.mxu1  ;;  %v10205_v36 = vld [vmem:[#allocation102_spill] sm:$0xff] }
 0x1be   :  { %10187 = vst [vmem:[#allocation34_spill] sm:$0xff] %v8936_v9  ;;  %v8941_v39 = vadd.f32 %v6483_v6, %v1878_v61  ;;  %v1870_v15 = vadd.f32 %v1869_v33, %v10191_v42  ;;  %v2617_v0 = vpop.f32.mrf.mxu0  ;;  %v10197_v6 = vld [vmem:[#allocation100_spill] sm:$0xff]  ;;  %v10198_v42 = vld [vmem:[#allocation62_spill] sm:$0xff]  ;;  %v5730_v31 = vrot.slane %v10205_v36, 9 }
 0x1bf   :  { %v6418_v51 = vpop.f32.mrf.mxu1 }
 0x1c0   :  { %10190 = vst [vmem:[#allocation43_spill] sm:$0xff] %v8941_v39  ;;  %v8944_v60 = vadd.f32 %v2614_v12, %v1870_v15  ;;  %v1881_v10 = vadd.f32 %v6418_v51, %v10193_v59  ;;  %v6487_v37 = vpop.f32.mrf.mxu0  ;;  %6718 = vmatmul.mubr.msk.bf16.gmra.mxu0 %vm991_vm4, %v10194_v17  ;;  %v10200_v59 = vld [vmem:[#allocation101_spill] sm:$0xff]  ;;  %v10202_v17 = vld [vmem:[#allocation103_spill] sm:$0xff] }
 0x1c1   :  { %v1872_v63 = vpop.f32.mrf.mxu1  ;;  %6721 = vmatprep.mubr.msk.bf16.mxu0 %vm991_vm4, %v10195_v4  ;;  %v3537_v9 = vrot.slane %v10202_v17, 5 }
 0x1c2   :  { %10192 = vst [vmem:[#allocation41_spill] sm:$0xff] %v8944_v60  ;;  %v8951_v11 = vadd.f32 %v6484_v14, %v1881_v10  ;;  %v1873_v61 = vadd.f32 %v1872_v63, %v10197_v6  ;;  %v2630_v39 = vpop.f32.mrf.mxu0  ;;  %v10201_v60 = vld [vmem:[#allocation63_spill] sm:$0xff]  ;;  %v10204_v14 = vld [vmem:[#allocation104_spill] sm:$0xff] }
 0x1c3   :  { %v6421_v33 = vpop.f32.mrf.mxu1  ;;  %6652 = vmatmul.mubr.msk.bf16.gmra.mxu1 %vm991_vm4, %v10198_v42 }
 0x1c4   :  { %10196 = vst [vmem:[#allocation71_spill] sm:$0xff] %v8951_v11  ;;  %v8956_v12 = vadd.f32 %v2617_v0, %v1873_v61  ;;  %v1894_v15 = vadd.f32 %v6421_v33, %v10200_v59  ;;  %v6488_v51 = vpop.f32.mrf.mxu0  ;;  %6655 = vmatprep.mubr.msk.bf16.mxu1 %vm991_vm4, %v10201_v60  ;;  %v10207_v0 = vld [vmem:[#allocation105_spill] sm:$0xff]  ;;  %v10209_v60 = vld [vmem:[#allocation106_spill] sm:$0xff] }
 0x1c5   :  { %v1885_v4 = vpop.f32.mrf.mxu1  ;;  %v10208_v59 = vld [vmem:[#allocation61_spill] sm:$0xff]  ;;  %v3540_v17 = vrot.slane %v10209_v60, 5 }
 0x1c6   :  { %10199 = vst [vmem:[#allocation72_spill] sm:$0xff] %v8956_v12  ;;  %v8962_v10 = vadd.f32 %v6487_v37, %v1894_v15  ;;  %v1886_v63 = vadd.f32 %v1885_v4, %v10204_v14  ;;  %v2633_v6 = vpop.f32.mrf.mxu0  ;;  %v3539_v12 = vrot.slane %v3537_v9, 4  ;;  %v10210_v37 = vld [vmem:[#allocation113_spill] sm:$0xff]  ;;  %v8977_v15 = vld [vmem:[%s9785_s0 + $0xcc] sm:$0xf] }
 0x1c7   :  { %v6422_v11 = vpop.f32.mrf.mxu1 }
 0x1c8   :  { %10203 = vst [vmem:[#allocation91_spill] sm:$0xff] %v8962_v10  ;;  %v8966_v42 = vadd.f32 %v2630_v39, %v1886_v63  ;;  %v1897_v61 = vadd.f32 %v6422_v11, %v10207_v0  ;;  %v6491_v33 = vpop.f32.mrf.mxu0  ;;  %6722 = vmatmul.mubr.msk.bf16.gmra.mxu0 %vm991_vm4, %v10208_v59  ;;  %v8982_v39 = vld [vmem:[%s9785_s0 + $0xd0] sm:$0xf]  ;;  %v10213_v63 = vld [vmem:[#allocation65_spill] sm:$0xff]  ;;  %v3538_v59 = vsel %vm7771_vm8, %v5730_v31, %v3537_v9 }
 0x1c9   :  { %v1888_v18 = vpop.f32.mrf.mxu1  ;;  %6725 = vmatprep.mubr.msk.bf16.mxu0 %vm991_vm4, %v10210_v37  ;;  %v10212_v11 = vld [vmem:[#allocation107_spill] sm:$0xff] }
 0x1ca   :  { %10206 = vst [vmem:[#allocation6_spill] sm:$0xff] %v8966_v42  ;;  %v8984_v36 = vadd.f32 %v6488_v51, %v1897_v61  ;;  %v1889_v4 = vadd.f32 %v1888_v18, %v10212_v11  ;;  %v2646_v14 = vpop.f32.mrf.mxu0  ;;  %v10216_v42 = vld [vmem:[#allocation108_spill] sm:$0xff]  ;;  %v3541_v51 = vsel %vm7771_vm8, %v3539_v12, %v3540_v17  ;;  %v5768_v18 = vcombine.low %v8977_v15, %v8982_v39 }
 0x1cb   :  { %v6425_v60 = vpop.f32.mrf.mxu1  ;;  %6656 = vmatmul.mubr.msk.bf16.gmra.mxu1 %vm991_vm4, %v10213_v63 }
 0x1cc   :  { %10211 = vst [vmem:[#allocation92_spill] sm:$0xff] %v8984_v36  ;;  %v8991_v37 = vadd.f32 %v2633_v6, %v1889_v4  ;;  %v1910_v10 = vadd.f32 %v6425_v60, %v10216_v42  ;;  %v6492_v27 = vpop.f32.mrf.mxu0  ;;  %6659 = vmatprep.mubr.msk.bf16.mxu1 %vm991_vm4, %v10217_v35  ;;  %v10219_v36 = vld [vmem:[#allocation109_spill] sm:$0xff]  ;;  %v9003_v6 = vcombine.low %v3538_v59, %v3541_v51  ;;  %v10221_v4 = vld [vmem:[#allocation110_spill] sm:$0xff] }
 0x1cd   :  { %v1901_v61 = vpop.f32.mrf.mxu1 }
 0x1ce   :  { %10215 = vst [vmem:[#allocation93_spill] sm:$0xff] %v8991_v37  ;;  %v9000_v11 = vadd.f32 %v6491_v33, %v1910_v10  ;;  %v1902_v63 = vadd.f32 %v1901_v61, %v10219_v36  ;;  %v2649_v31 = vpop.f32.mrf.mxu0  ;;  %v10223_v10 = vld [vmem:[#allocation112_spill] sm:$0xff] }
 0x1cf   :  { %v6426_v9 = vpop.f32.mrf.mxu1 }
 0x1d0   :  { %10218 = vst [vmem:[#allocation74_spill] sm:$0xff] %v9000_v11  ;;  %v9005_v42 = vadd.f32 %v2646_v14, %v1902_v63  ;;  %v1913_v60 = vadd.f32 %v6426_v9, %v10221_v4  ;;  %v6495_v37 = vpop.f32.mrf.mxu0  ;;  %6726 = vmatmul.mubr.msk.bf16.gmra.mxu0 %vm991_vm4, %v5768_v18  ;;  %v10224_v63 = vld [vmem:[#allocation7_spill] sm:$0xff] }
 0x1d1   :  { %v1904_v12 = vpop.f32.mrf.mxu1  ;;  %6729 = vmatprep.mubr.msk.bf16.mxu0 %vm991_vm4, %v8172_v8  ;;  %v10225_v9 = vld [vmem:[#allocation75_spill] sm:$0xff]  ;;  %v10226_v8 = vld [vmem:[#allocation114_spill] sm:$0xff] }
 0x1d2   :  { %10220 = vst [vmem:[#allocation57_spill] sm:$0xff] %v9005_v42  ;;  %v9011_v17 = vadd.f32 %v6492_v27, %v1913_v60  ;;  %v1905_v33 = vadd.f32 %v1904_v12, %v10223_v10  ;;  %v2662_v36 = vpop.f32.mrf.mxu0 }
 0x1d3   :  { %v6429_v61 = vpop.f32.mrf.mxu1  ;;  %6660 = vmatmul.mubr.msk.bf16.gmra.mxu1 %vm991_vm4, %v9003_v6 }
 0x1d4   :  { %10222 = vst [vmem:[#allocation95_spill] sm:$0xff] %v9011_v17  ;;  %v9016_v14 = vadd.f32 %v2649_v31, %v1905_v33  ;;  %v1926_v59 = vadd.f32 %v6429_v61, %v10224_v63  ;;  %v6496_v51 = vpop.f32.mrf.mxu0  ;;  %6663 = vmatprep.mubr.msk.bf16.mxu1 %vm991_vm4, %v10225_v9  ;;  %v10227_v17 = vld [vmem:[#allocation115_spill] sm:$0xff] }
 0x1d5   :  { %v1917_v18 = vpop.f32.mrf.mxu1  ;;  %v10228_v31 = vld [vmem:[#allocation79_spill] sm:$0xff] }
 0x1d6   :  { %v9021_v4 = vadd.f32 %v6495_v37, %v1926_v59  ;;  %v1918_v27 = vadd.f32 %v1917_v18, %v10226_v8  ;;  %v2665_v60 = vpop.f32.mrf.mxu0  ;;  %v10230_v37 = vld [vmem:[#allocation116_spill] sm:$0xff] }
 0x1d7   :  { %v6430_v12 = vpop.f32.mrf.mxu1  ;;  %v10231_v18 = vld [vmem:[#allocation76_spill] sm:$0xff] }
 0x1d8   :  { %v9024_v10 = vadd.f32 %v2662_v36, %v1918_v27  ;;  %v1929_v42 = vadd.f32 %v6430_v12, %v10227_v17  ;;  %v6567_v11 = vpop.f32.mrf.mxu0  ;;  %6730 = vmatmul.mubr.msk.bf16.gmra.mxu0 %vm991_vm4, %v10228_v31  ;;  %v10232_v27 = vld [vmem:[#allocation77_spill] sm:$0xff] }
 0x1d9   :  { %v1920_v33 = vpop.f32.mrf.mxu1  ;;  %6733 = vmatprep.mubr.msk.bf16.mxu0 %vm991_vm4, %v8214_v19 }
 0x1da   :  { %v9031_v61 = vadd.f32 %v6496_v51, %v1929_v42  ;;  %v1921_v63 = vadd.f32 %v1920_v33, %v10230_v37  ;;  %v3214_v59 = vpop.f32.mrf.mxu0 }
 0x1db   :  { %v6501_v9 = vpop.f32.mrf.mxu1  ;;  %6664 = vmatmul.mubr.msk.bf16.gmra.mxu1 %vm991_vm4, %v10231_v18 }
 0x1dc   :  { %10229 = vst [vmem:[#allocation97_spill] sm:$0xff] %v9031_v61  ;;  %v9036_v36 = vadd.f32 %v2665_v60, %v1921_v63  ;;  %v3053_v17 = vadd.f32 %v6501_v9, %v8669_v48  ;;  %v6568_v8 = vpop.f32.mrf.mxu0  ;;  %6667 = vmatprep.mubr.msk.bf16.mxu1 %vm991_vm4, %v10232_v27  ;;  %v10233_v9 = vld [vmem:[#allocation78_spill] sm:$0xff] }
 0x1dd   :  { %v2796_v12 = vpop.f32.mrf.mxu1 }
 0x1de   :  { %v9041_v31 = vadd.f32 %v6567_v11, %v3053_v17  ;;  %v3051_v19 = vadd.f32 %v2796_v12, %v8672_v55  ;;  %v3217_v42 = vpop.f32.mrf.mxu0  ;;  %v10234_v12 = vld [vmem:[#allocation81_spill] sm:$0xff] }
 0x1df   :  { %v6502_v51 = vpop.f32.mrf.mxu1 }
 0x1e0   :  { %v9044_v33 = vadd.f32 %v3214_v59, %v3051_v19  ;;  %v3054_v37 = vadd.f32 %v6502_v51, %v8679_v24  ;;  %v6571_v61 = vpop.f32.mrf.mxu0  ;;  %6734 = vmatmul.mubr.msk.bf16.gmra.mxu0 %vm991_vm4, %v8258_v38 }
 0x1e1   :  { %v2799_v48 = vpop.f32.mrf.mxu1  ;;  %6737 = vmatprep.mubr.msk.bf16.mxu0 %vm991_vm4, %v8264_v2 }
 0x1e2   :  { %v9051_v60 = vadd.f32 %v6568_v8, %v3054_v37  ;;  %v3052_v11 = vadd.f32 %v2799_v48, %v8684_v13  ;;  %v3230_v63 = vpop.f32.mrf.mxu0 }
 0x1e3   :  { %v6505_v55 = vpop.f32.mrf.mxu1  ;;  %6668 = vmatmul.mubr.msk.bf16.gmra.mxu1 %vm991_vm4, %v10233_v9 }
 0x1e4   :  { %v9056_v59 = vadd.f32 %v3217_v42, %v3052_v11  ;;  %v3057_v24 = vadd.f32 %v6505_v55, %v8689_v30  ;;  %v6572_v17 = vpop.f32.mrf.mxu0  ;;  %6671 = vmatprep.mubr.msk.bf16.mxu1 %vm991_vm4, %v10234_v12  ;;  %v10236_v55 = vld [vmem:[#allocation82_spill] sm:$0xff] }
 0x1e5   :  { %v2812_v38 = vpop.f32.mrf.mxu1 }
 0x1e6   :  { %v9061_v19 = vadd.f32 %v6571_v61, %v3057_v24  ;;  %v3055_v2 = vadd.f32 %v2812_v38, %v8692_v50  ;;  %v3233_v8 = vpop.f32.mrf.mxu0  ;;  %v10238_v38 = vld [vmem:[#allocation85_spill] sm:$0xff] }
 0x1e7   :  { %v6506_v13 = vpop.f32.mrf.mxu1 }
 0x1e8   :  { %v9064_v51 = vadd.f32 %v3230_v63, %v3055_v2  ;;  %v3058_v37 = vadd.f32 %v6506_v13, %v8699_v21  ;;  %v6575_v48 = vpop.f32.mrf.mxu0  ;;  %6738 = vmatmul.mubr.msk.bf16.gmra.mxu0 %vm991_vm4, %v8304_v44 }
 0x1e9   :  { %v2815_v30 = vpop.f32.mrf.mxu1  ;;  %6741 = vmatprep.mubr.msk.bf16.mxu0 %vm991_vm4, %v8310_v41 }
 0x1ea   :  { %v9071_v42 = vadd.f32 %v6572_v17, %v3058_v37  ;;  %v3056_v61 = vadd.f32 %v2815_v30, %v8704_v57  ;;  %v3246_v11 = vpop.f32.mrf.mxu0  ;;  %v10241_v37 = vld [vmem:[#allocation117_spill] sm:$0xff] }
 0x1eb   :  { %v6509_v50 = vpop.f32.mrf.mxu1  ;;  %6672 = vmatmul.mubr.msk.bf16.gmra.mxu1 %vm991_vm4, %v10236_v55 }
 0x1ec   :  { %10235 = vst [vmem:[#allocation98_spill] sm:$0xff] %v9071_v42  ;;  %v9076_v63 = vadd.f32 %v3233_v8, %v3056_v61  ;;  %v3061_v21 = vadd.f32 %v6509_v50, %v8709_v1  ;;  %v6576_v24 = vpop.f32.mrf.mxu0  ;;  %6675 = vmatprep.mubr.msk.bf16.mxu1 %vm991_vm4, %v10238_v38  ;;  %v10242_v8 = vld [vmem:[#allocation25_spill] sm:$0xff] }
 0x1ed   :  { %v2828_v44 = vpop.f32.mrf.mxu1 }
 0x1ee   :  { %10237 = vst [vmem:[#allocation99_spill] sm:$0xff] %v9076_v63  ;;  %v9081_v2 = vadd.f32 %v6575_v48, %v3061_v21  ;;  %v3059_v41 = vadd.f32 %v2828_v44, %v8712_v34  ;;  %v3249_v17 = vpop.f32.mrf.mxu0  ;;  %v10244_v48 = vld [vmem:[#allocation118_spill] sm:$0xff] }
 0x1ef   :  { %v6510_v57 = vpop.f32.mrf.mxu1  ;;  %v10245_v44 = vld [vmem:[#allocation86_spill] sm:$0xff] }
 0x1f0   :  { %10239 = vst [vmem:[#allocation58_spill] sm:$0xff] %v9081_v2  ;;  %v9084_v13 = vadd.f32 %v3246_v11, %v3059_v41  ;;  %v3062_v30 = vadd.f32 %v6510_v57, %v10241_v37  ;;  %v6579_v42 = vpop.f32.mrf.mxu0  ;;  %6742 = vmatmul.mubr.msk.bf16.gmra.mxu0 %vm991_vm4, %v10242_v8  ;;  %v10246_v41 = vld [vmem:[#allocation119_spill] sm:$0xff] }
 0x1f1   :  { %v2831_v1 = vpop.f32.mrf.mxu1  ;;  %6745 = vmatprep.mubr.msk.bf16.mxu0 %vm991_vm4, %v8351_v7  ;;  %v10248_v7 = vld [vmem:[#allocation120_spill] sm:$0xff] }
 0x1f2   :  { %10240 = vst [vmem:[#allocation60_spill] sm:$0xff] %v9084_v13  ;;  %v9091_v61 = vadd.f32 %v6576_v24, %v3062_v30  ;;  %v3060_v50 = vadd.f32 %v2831_v1, %v10244_v48  ;;  %v3262_v21 = vpop.f32.mrf.mxu0  ;;  %v10247_v13 = vld [vmem:[#allocation89_spill] sm:$0xff] }
 0x1f3   :  { %v6513_v34 = vpop.f32.mrf.mxu1  ;;  %6676 = vmatmul.mubr.msk.bf16.gmra.mxu1 %vm991_vm4, %v10245_v44 }
 0x1f4   :  { %10243 = vst [vmem:[#allocation100_spill] sm:$0xff] %v9091_v61  ;;  %v9096_v11 = vadd.f32 %v3249_v17, %v3060_v50  ;;  %v3065_v57 = vadd.f32 %v6513_v34, %v10246_v41  ;;  %v6580_v37 = vpop.f32.mrf.mxu0  ;;  %6679 = vmatprep.mubr.msk.bf16.mxu1 %vm991_vm4, %v10247_v13  ;;  %v10249_v61 = vld [vmem:[#allocation121_spill] sm:$0xff] }
 0x1f5   :  { %v2844_v8 = vpop.f32.mrf.mxu1 }
 0x1f6   :  { %v9101_v2 = vadd.f32 %v6579_v42, %v3065_v57  ;;  %v3063_v24 = vadd.f32 %v2844_v8, %v10248_v7  ;;  %v3265_v30 = vpop.f32.mrf.mxu0  ;;  %v10251_v42 = vld [vmem:[#allocation122_spill] sm:$0xff] }
 0x1f7   :  { %v6514_v1 = vpop.f32.mrf.mxu1  ;;  %v10252_v8 = vld [vmem:[#allocation90_spill] sm:$0xff] }
 0x1f8   :  { %v9104_v48 = vadd.f32 %v3262_v21, %v3063_v24  ;;  %v3066_v63 = vadd.f32 %v6514_v1, %v10249_v61  ;;  %v6583_v44 = vpop.f32.mrf.mxu0  ;;  %6746 = vmatmul.mubr.msk.bf16.gmra.mxu0 %vm991_vm4, %v8389_v56  ;;  %v10253_v24 = vld [vmem:[#allocation32_spill] sm:$0xff] }
 0x1f9   :  { %v2847_v17 = vpop.f32.mrf.mxu1  ;;  %6749 = vmatprep.mubr.msk.bf16.mxu0 %vm991_vm4, %v8397_v43 }
 0x1fa   :  { %v9111_v50 = vadd.f32 %v6580_v37, %v3066_v63  ;;  %v3064_v34 = vadd.f32 %v2847_v17, %v10251_v42  ;;  %v3278_v41 = vpop.f32.mrf.mxu0 }
 0x1fb   :  { %v6517_v57 = vpop.f32.mrf.mxu1  ;;  %6680 = vmatmul.mubr.msk.bf16.gmra.mxu1 %vm991_vm4, %v10252_v8 }
 0x1fc   :  { %10250 = vst [vmem:[#allocation101_spill] sm:$0xff] %v9111_v50  ;;  %v9116_v21 = vadd.f32 %v3265_v30, %v3064_v34  ;;  %v3069_v61 = vadd.f32 %v6517_v57, %v8763_v20  ;;  %v6584_v7 = vpop.f32.mrf.mxu0  ;;  %6683 = vmatprep.mubr.msk.bf16.mxu1 %vm991_vm4, %v10253_v24 }
 0x1fd   :  { %v2860_v56 = vpop.f32.mrf.mxu1 }
 0x1fe   :  { %v9121_v1 = vadd.f32 %v6583_v44, %v3069_v61  ;;  %v3067_v43 = vadd.f32 %v2860_v56, %v8771_v16  ;;  %v3281_v63 = vpop.f32.mrf.mxu0  ;;  %v10255_v44 = vld [vmem:[#allocation124_spill] sm:$0xff]  ;;  %v10256_v61 = vld [vmem:[#allocation38_spill] sm:$0xff] }
 0x1ff   :  { %v6518_v37 = vpop.f32.mrf.mxu1 }
 0x200   :  { %v9124_v17 = vadd.f32 %v3278_v41, %v3067_v43  ;;  %v3070_v42 = vadd.f32 %v6518_v37, %v8779_v49  ;;  %v6587_v50 = vpop.f32.mrf.mxu0  ;;  %6750 = vmatmul.mubr.msk.bf16.gmra.mxu0 %vm991_vm4, %v8428_v23  ;;  %v10258_v43 = vld [vmem:[#allocation36_spill] sm:$0xff]  ;;  %v3544_v23 = vrot.slane %v8740_v62, 5 }
 0x201   :  { %v2863_v20 = vpop.f32.mrf.mxu1  ;;  %6753 = vmatprep.mubr.msk.bf16.mxu0 %vm991_vm4, %v8436_v25 }
 0x202   :  { %v9131_v30 = vadd.f32 %v6584_v7, %v3070_v42  ;;  %v3068_v34 = vadd.f32 %v2863_v20, %v10255_v44  ;;  %v3294_v57 = vpop.f32.mrf.mxu0  ;;  %v5731_v44 = vrot.slane %v8735_v46, 9  ;;  %v9162_v46 = vld [vmem:[%s9785_s0 + $0x1a8] sm:$0xf] }
 0x203   :  { %v6521_v16 = vpop.f32.mrf.mxu1  ;;  %6684 = vmatmul.mubr.msk.bf16.gmra.mxu1 %vm991_vm4, %v10256_v61 }
 0x204   :  { %10254 = vst [vmem:[#allocation103_spill] sm:$0xff] %v9131_v30  ;;  %v9136_v41 = vadd.f32 %v3281_v63, %v3068_v34  ;;  %v3073_v49 = vadd.f32 %v6521_v16, %v8789_v54  ;;  %v6588_v56 = vpop.f32.mrf.mxu0  ;;  %6687 = vmatprep.mubr.msk.bf16.mxu1 %vm991_vm4, %v10258_v43  ;;  %v3546_v34 = vrot.slane %v3544_v23, 4  ;;  %v10259_v16 = vld [vmem:[#allocation123_spill] sm:$0xff] }
 0x205   :  { %v2876_v25 = vpop.f32.mrf.mxu1  ;;  %v3547_v62 = vrot.slane %v10259_v16, 5  ;;  %v10263_v16 = vld [vmem:[#allocation44_spill] sm:$0xff] }
 0x206   :  { %10257 = vst [vmem:[#allocation104_spill] sm:$0xff] %v9136_v41  ;;  %v9142_v7 = vadd.f32 %v6587_v50, %v3073_v49  ;;  %v3071_v37 = vadd.f32 %v2876_v25, %v8792_v40  ;;  %v3297_v42 = vpop.f32.mrf.mxu0  ;;  %v9157_v40 = vld [vmem:[%s9785_s0 + $0x1a4] sm:$0xf]  ;;  %v10261_v49 = vld [vmem:[#allocation39_spill] sm:$0xff] }
 0x207   :  { %v6522_v20 = vpop.f32.mrf.mxu1 }
 0x208   :  { %v9146_v30 = vadd.f32 %v3294_v57, %v3071_v37  ;;  %v3074_v63 = vadd.f32 %v6522_v20, %v8803_v5  ;;  %v6591_v54 = vpop.f32.mrf.mxu0  ;;  %6754 = vmatmul.mubr.msk.bf16.gmra.mxu0 %vm991_vm4, %v8458_v47 }
 0x209   :  { %v2879_v41 = vpop.f32.mrf.mxu1  ;;  %6757 = vmatprep.mubr.msk.bf16.mxu0 %vm991_vm4, %v8820_v52  ;;  %v3545_v52 = vsel %vm7771_vm8, %v5731_v44, %v3544_v23 }
 0x20a   :  { %v9164_v5 = vadd.f32 %v6588_v56, %v3074_v63  ;;  %v3072_v47 = vadd.f32 %v2879_v41, %v8808_v45  ;;  %v3310_v50 = vpop.f32.mrf.mxu0  ;;  %v3548_v56 = vsel %vm7771_vm8, %v3546_v34, %v3547_v62  ;;  %v5769_v45 = vcombine.low %v9157_v40, %v9162_v46 }
 0x20b   :  { %v6525_v57 = vpop.f32.mrf.mxu1  ;;  %6688 = vmatmul.mubr.msk.bf16.gmra.mxu1 %vm991_vm4, %v10261_v49  ;;  %v9183_v44 = vcombine.low %v3545_v52, %v3548_v56  ;;  %v10268_v52 = vld [vmem:[#allocation8_spill] sm:$0xff] }
 0x20c   :  { %10260 = vst [vmem:[#allocation102_spill] sm:$0xff] %v9164_v5  ;;  %v9171_v25 = vadd.f32 %v3297_v42, %v3072_v47  ;;  %v3077_v37 = vadd.f32 %v6525_v57, %v8815_v3  ;;  %v6592_v20 = vpop.f32.mrf.mxu0  ;;  %6691 = vmatprep.mubr.msk.bf16.mxu1 %vm991_vm4, %v10263_v16 }
 0x20d   :  { %v2892_v41 = vpop.f32.mrf.mxu1 }
 0x20e   :  { %10262 = vst [vmem:[#allocation105_spill] sm:$0xff] %v9171_v25  ;;  %v9180_v63 = vadd.f32 %v6591_v54, %v3077_v37  ;;  %v3075_v5 = vadd.f32 %v2892_v41, %v8822_v53  ;;  %v3313_v23 = vpop.f32.mrf.mxu0  ;;  %v10332_v25 = vld [vmem:[#allocation65_spill] sm:$0xff] }
 0x20f   :  { %v6526_v42 = vpop.f32.mrf.mxu1 }
 0x210   :  { %10264 = vst [vmem:[#allocation61_spill] sm:$0xff] %v9180_v63  ;;  %v9185_v3 = vadd.f32 %v3310_v50, %v3075_v5  ;;  %v3078_v47 = vadd.f32 %v6526_v42, %v8829_v58  ;;  %v6595_v57 = vpop.f32.mrf.mxu0  ;;  %6758 = vmatmul.mubr.msk.bf16.gmra.mxu0 %vm991_vm4, %v5769_v45 }
 0x211   :  { %v2895_v34 = vpop.f32.mrf.mxu1  ;;  %6829 = vmatprep.mubr.msk.bf16.mxu0 %vm991_vm4, %v10137_v29 }
 0x212   :  { %10265 = vst [vmem:[#allocation106_spill] sm:$0xff] %v9185_v3  ;;  %v9191_v62 = vadd.f32 %v6592_v20, %v3078_v47  ;;  %v3076_v54 = vadd.f32 %v2895_v34, %v8834_v22  ;;  %v3326_v53 = vpop.f32.mrf.mxu0  ;;  %v10272_v34 = vld [vmem:[#allocation51_spill] sm:$0xff] }
 0x213   :  { %v6529_v37 = vpop.f32.mrf.mxu1  ;;  %6692 = vmatmul.mubr.msk.bf16.gmra.mxu1 %vm991_vm4, %v9183_v44 }
 0x214   :  { %10266 = vst [vmem:[#allocation113_spill] sm:$0xff] %v9191_v62  ;;  %v9196_v5 = vadd.f32 %v3313_v23, %v3076_v54  ;;  %v3081_v58 = vadd.f32 %v6529_v37, %v8839_v26  ;;  %v6596_v50 = vpop.f32.mrf.mxu0  ;;  %6763 = vmatprep.mubr.msk.bf16.mxu1 %vm991_vm4, %v10268_v52  ;;  %v10271_v23 = vld [vmem:[#allocation50_spill] sm:$0xff] }
 0x215   :  { %v2908_v56 = vpop.f32.mrf.mxu1  ;;  %v10275_v52 = vld [vmem:[#allocation10_spill] sm:$0xff] }
 0x216   :  { %10267 = vst [vmem:[#allocation107_spill] sm:$0xff] %v9196_v5  ;;  %v9201_v45 = vadd.f32 %v6595_v57, %v3081_v58  ;;  %v3079_v29 = vadd.f32 %v2908_v56, %v8842_v32  ;;  %v3329_v20 = vpop.f32.mrf.mxu0  ;;  %v10274_v57 = vld [vmem:[#allocation96_spill] sm:$0xff] }
 0x217   :  { %v6530_v22 = vpop.f32.mrf.mxu1 }
 0x218   :  { %10269 = vst [vmem:[#allocation46_spill] sm:$0xff] %v9201_v45  ;;  %v9204_v41 = vadd.f32 %v3326_v53, %v3079_v29  ;;  %v3082_v42 = vadd.f32 %v6530_v22, %v8850_v28  ;;  %v6599_v47 = vpop.f32.mrf.mxu0  ;;  %6830 = vmatmul.mubr.msk.bf16.vlgmr.msra.gmra.mxu0 %vm991_vm4, %v10271_v23  ;;  %v10277_v28 = vld [vmem:[#allocation52_spill] sm:$0xff] }
 0x219   :  { %v2911_v26 = vpop.f32.mrf.mxu1  ;;  %6833 = vmatprep.mubr.msk.bf16.mxu0 %vm991_vm4, %v10272_v34  ;;  %v10278_v22 = vld [vmem:[#allocation12_spill] sm:$0xff] }
 0x21a   :  { %10270 = vst [vmem:[#allocation108_spill] sm:$0xff] %v9204_v41  ;;  %v9211_v54 = vadd.f32 %v6596_v50, %v3082_v42  ;;  %v3080_v37 = vadd.f32 %v2911_v26, %v10274_v57  ;;  %v3342_v58 = vpop.f32.mrf.mxu0  ;;  %v10280_v50 = vld [vmem:[#allocation49_spill] sm:$0xff] }
 0x21b   :  { %v6533_v32 = vpop.f32.mrf.mxu1  ;;  %6764 = vmatmul.mubr.msk.bf16.vlgmr.msra.gmra.mxu1 %vm991_vm4, %v10275_v52 }
 0x21c   :  { %10273 = vst [vmem:[#allocation67_spill] sm:$0xff] %v9211_v54  ;;  %v9216_v53 = vadd.f32 %v3329_v20, %v3080_v37  ;;  %v3085_v56 = vadd.f32 %v6533_v32, %v10277_v28  ;;  %v6600_v29 = vpop.f32.mrf.mxu0  ;;  %6767 = vmatprep.mubr.msk.bf16.mxu1 %vm991_vm4, %v10278_v22  ;;  %v10282_v54 = vld [vmem:[#allocation80_spill] sm:$0xff]  ;;  %v10283_v20 = vld [vmem:[#allocation54_spill] sm:$0xff] }
 0x21d   :  { %v2924_v23 = vpop.f32.mrf.mxu1  ;;  %v10284_v32 = vld [vmem:[#allocation56_spill] sm:$0xff] }
 0x21e   :  { %10276 = vst [vmem:[#allocation109_spill] sm:$0xff] %v9216_v53  ;;  %v9221_v41 = vadd.f32 %v6599_v47, %v3085_v56  ;;  %v3083_v42 = vadd.f32 %v2924_v23, %v10280_v50  ;;  %v3345_v34 = vpop.f32.mrf.mxu0  ;;  %v10286_v47 = vld [vmem:[#allocation94_spill] sm:$0xff] }
 0x21f   :  { %v6534_v26 = vpop.f32.mrf.mxu1  ;;  %v10287_v50 = vld [vmem:[#allocation14_spill] sm:$0xff] }
 0x220   :  { %10279 = vst [vmem:[#allocation110_spill] sm:$0xff] %v9221_v41  ;;  %v9224_v57 = vadd.f32 %v3342_v58, %v3083_v42  ;;  %v3086_v45 = vadd.f32 %v6534_v26, %v10282_v54  ;;  %v6603_v52 = vpop.f32.mrf.mxu0  ;;  %6834 = vmatmul.mubr.msk.bf16.gmra.mxu0 %vm991_vm4, %v10283_v20  ;;  %v10289_v54 = vld [vmem:[#allocation83_spill] sm:$0xff] }
 0x221   :  { %v2927_v37 = vpop.f32.mrf.mxu1  ;;  %6837 = vmatprep.mubr.msk.bf16.mxu0 %vm991_vm4, %v10284_v32 }
 0x222   :  { %10281 = vst [vmem:[#allocation112_spill] sm:$0xff] %v9224_v57  ;;  %v9231_v28 = vadd.f32 %v6600_v29, %v3086_v45  ;;  %v3084_v56 = vadd.f32 %v2927_v37, %v10286_v47  ;;  %v3358_v22 = vpop.f32.mrf.mxu0  ;;  %v10290_v57 = vld [vmem:[#allocation16_spill] sm:$0xff] }
 0x223   :  { %v6537_v23 = vpop.f32.mrf.mxu1  ;;  %6768 = vmatmul.mubr.msk.bf16.gmra.mxu1 %vm991_vm4, %v10287_v50  ;;  %v10292_v45 = vld [vmem:[#allocation84_spill] sm:$0xff] }
 0x224   :  { %10285 = vst [vmem:[#allocation7_spill] sm:$0xff] %v9231_v28  ;;  %v9236_v58 = vadd.f32 %v3345_v34, %v3084_v56  ;;  %v3089_v42 = vadd.f32 %v6537_v23, %v10289_v54  ;;  %v6604_v26 = vpop.f32.mrf.mxu0  ;;  %6771 = vmatprep.mubr.msk.bf16.mxu1 %vm991_vm4, %v10290_v57  ;;  %v10294_v28 = vld [vmem:[#allocation53_spill] sm:$0xff]  ;;  %v10295_v34 = vld [vmem:[#allocation59_spill] sm:$0xff]  ;;  %v10296_v23 = vld [vmem:[#allocation64_spill] sm:$0xff] }
 0x225   :  { %v2940_v20 = vpop.f32.mrf.mxu1 }
 0x226   :  { %10288 = vst [vmem:[#allocation75_spill] sm:$0xff] %v9236_v58  ;;  %v9241_v41 = vadd.f32 %v6603_v52, %v3089_v42  ;;  %v3087_v29 = vadd.f32 %v2940_v20, %v10292_v45  ;;  %v3361_v32 = vpop.f32.mrf.mxu0  ;;  %v10298_v52 = vld [vmem:[#allocation55_spill] sm:$0xff]  ;;  %v10299_v45 = vld [vmem:[#allocation18_spill] sm:$0xff] }
 0x227   :  { %v6538_v37 = vpop.f32.mrf.mxu1 }
 0x228   :  { %10291 = vst [vmem:[#allocation114_spill] sm:$0xff] %v9241_v41  ;;  %v9244_v47 = vadd.f32 %v3358_v22, %v3087_v29  ;;  %v3090_v53 = vadd.f32 %v6538_v37, %v10294_v28  ;;  %v6607_v50 = vpop.f32.mrf.mxu0  ;;  %6838 = vmatmul.mubr.msk.bf16.gmra.mxu0 %vm991_vm4, %v10295_v34  ;;  %v10301_v28 = vld [vmem:[#allocation87_spill] sm:$0xff] }
 0x229   :  { %v2943_v56 = vpop.f32.mrf.mxu1  ;;  %6841 = vmatprep.mubr.msk.bf16.mxu0 %vm991_vm4, %v10296_v23 }
 0x22a   :  { %10293 = vst [vmem:[#allocation115_spill] sm:$0xff] %v9244_v47  ;;  %v9251_v57 = vadd.f32 %v6604_v26, %v3090_v53  ;;  %v3088_v54 = vadd.f32 %v2943_v56, %v10298_v52  ;;  %v3374_v42 = vpop.f32.mrf.mxu0  ;;  %v10302_v47 = vld [vmem:[#allocation20_spill] sm:$0xff] }
 0x22b   :  { %v6541_v20 = vpop.f32.mrf.mxu1  ;;  %6772 = vmatmul.mubr.msk.bf16.gmra.mxu1 %vm991_vm4, %v10299_v45  ;;  %v10304_v53 = vld [vmem:[#allocation88_spill] sm:$0xff] }
 0x22c   :  { %10297 = vst [vmem:[#allocation79_spill] sm:$0xff] %v9251_v57  ;;  %v9256_v22 = vadd.f32 %v3361_v32, %v3088_v54  ;;  %v3093_v29 = vadd.f32 %v6541_v20, %v10301_v28  ;;  %v6608_v37 = vpop.f32.mrf.mxu0  ;;  %6775 = vmatprep.mubr.msk.bf16.mxu1 %vm991_vm4, %v10302_v47  ;;  %v10306_v57 = vld [vmem:[#allocation27_spill] sm:$0xff]  ;;  %v10307_v32 = vld [vmem:[#allocation69_spill] sm:$0xff]  ;;  %v10308_v20 = vld [vmem:[#allocation70_spill] sm:$0xff] }
 0x22d   :  { %v2956_v34 = vpop.f32.mrf.mxu1 }
 0x22e   :  { %10300 = vst [vmem:[#allocation116_spill] sm:$0xff] %v9256_v22  ;;  %v9261_v41 = vadd.f32 %v6607_v50, %v3093_v29  ;;  %v3091_v26 = vadd.f32 %v2956_v34, %v10304_v53  ;;  %v3377_v23 = vpop.f32.mrf.mxu0  ;;  %v10310_v50 = vld [vmem:[#allocation29_spill] sm:$0xff]  ;;  %v10311_v53 = vld [vmem:[#allocation22_spill] sm:$0xff] }
 0x22f   :  { %v6542_v56 = vpop.f32.mrf.mxu1 }
 0x230   :  { %10303 = vst [vmem:[#allocation76_spill] sm:$0xff] %v9261_v41  ;;  %v9264_v52 = vadd.f32 %v3374_v42, %v3091_v26  ;;  %v3094_v58 = vadd.f32 %v6542_v56, %v10306_v57  ;;  %v6611_v45 = vpop.f32.mrf.mxu0  ;;  %6842 = vmatmul.mubr.msk.bf16.gmra.mxu0 %vm991_vm4, %v10307_v32  ;;  %v10313_v57 = vld [vmem:[#allocation66_spill] sm:$0xff] }
 0x231   :  { %v2959_v54 = vpop.f32.mrf.mxu1  ;;  %6845 = vmatprep.mubr.msk.bf16.mxu0 %vm991_vm4, %v10308_v20 }
 0x232   :  { %10305 = vst [vmem:[#allocation77_spill] sm:$0xff] %v9264_v52  ;;  %v9271_v47 = vadd.f32 %v6608_v37, %v3094_v58  ;;  %v3092_v28 = vadd.f32 %v2959_v54, %v10310_v50  ;;  %v3390_v29 = vpop.f32.mrf.mxu0  ;;  %v10314_v52 = vld [vmem:[#allocation24_spill] sm:$0xff] }
 0x233   :  { %v6545_v34 = vpop.f32.mrf.mxu1  ;;  %6776 = vmatmul.mubr.msk.bf16.gmra.mxu1 %vm991_vm4, %v10311_v53  ;;  %v10316_v58 = vld [vmem:[#allocation68_spill] sm:$0xff] }
 0x234   :  { %10309 = vst [vmem:[#allocation78_spill] sm:$0xff] %v9271_v47  ;;  %v9276_v42 = vadd.f32 %v3377_v23, %v3092_v28  ;;  %v3097_v26 = vadd.f32 %v6545_v34, %v10313_v57  ;;  %v6612_v56 = vpop.f32.mrf.mxu0  ;;  %6779 = vmatprep.mubr.msk.bf16.mxu1 %vm991_vm4, %v10314_v52  ;;  %v10318_v47 = vld [vmem:[#allocation31_spill] sm:$0xff]  ;;  %v10319_v23 = vld [vmem:[#allocation73_spill] sm:$0xff]  ;;  %v10320_v34 = vld [vmem:[#allocation62_spill] sm:$0xff] }
 0x235   :  { %v2972_v32 = vpop.f32.mrf.mxu1 }
 0x236   :  { %10312 = vst [vmem:[#allocation81_spill] sm:$0xff] %v9276_v42  ;;  %v9281_v41 = vadd.f32 %v6611_v45, %v3097_v26  ;;  %v3095_v37 = vadd.f32 %v2972_v32, %v10316_v58  ;;  %v3393_v20 = vpop.f32.mrf.mxu0  ;;  %v10322_v45 = vld [vmem:[#allocation34_spill] sm:$0xff]  ;;  %v4294_v32 = vshrl.u32 %v8977_v15, 16 }
 0x237   :  { %v6546_v54 = vpop.f32.mrf.mxu1 }
 0x238   :  { %10315 = vst [vmem:[#allocation82_spill] sm:$0xff] %v9281_v41  ;;  %v9284_v50 = vadd.f32 %v3390_v29, %v3095_v37  ;;  %v3098_v22 = vadd.f32 %v6546_v54, %v10318_v47  ;;  %v6615_v53 = vpop.f32.mrf.mxu0  ;;  %6846 = vmatmul.mubr.msk.bf16.gmra.mxu0 %vm991_vm4, %v10319_v23  ;;  %v4297_v29 = vshll.u32 %v8977_v15, 16  ;;  %v10323_v37 = vld [vmem:[#allocation28_spill] sm:$0xff]  ;;  %v4307_v47 = vshrl.u32 %v8982_v39, 16  ;;  %v10325_v23 = vld [vmem:[#allocation43_spill] sm:$0xff] }
 0x239   :  { %v2975_v28 = vpop.f32.mrf.mxu1  ;;  %6849 = vmatprep.mubr.msk.bf16.mxu0 %vm991_vm4, %v10320_v34 }
 0x23a   :  { %10317 = vst [vmem:[#allocation85_spill] sm:$0xff] %v9284_v50  ;;  %v9291_v52 = vadd.f32 %v6612_v56, %v3098_v22  ;;  %v3096_v57 = vadd.f32 %v2975_v28, %v10322_v45  ;;  %v3406_v26 = vpop.f32.mrf.mxu0  ;;  %v10326_v22 = vld [vmem:[#allocation33_spill] sm:$0xff]  ;;  %v4303_v56 = vshll.u32 %v8982_v39, 16  ;;  %v4299_v62 = vrot.slane %v4297_v29, 5 }
 0x23b   :  { %v6549_v58 = vpop.f32.mrf.mxu1  ;;  %6780 = vmatmul.mubr.msk.bf16.gmra.mxu1 %vm991_vm4, %v10323_v37  ;;  %v4296_v37 = vrot.slane %v4294_v32, 4  ;;  %v10335_v29 = vld [vmem:[#allocation37_spill] sm:$0xff] }
 0x23c   :  { %10321 = vst [vmem:[#allocation117_spill] sm:$0xff] %v9291_v52  ;;  %v9299_v54 = vadd.f32 %v3393_v20, %v3096_v57  ;;  %v3101_v50 = vadd.f32 %v6549_v58, %v10325_v23  ;;  %v6616_v34 = vpop.f32.mrf.mxu0  ;;  %6783 = vmatprep.mubr.msk.bf16.mxu1 %vm991_vm4, %v10326_v22  ;;  %v10328_v52 = vld [vmem:[#allocation41_spill] sm:$0xff]  ;;  %v10330_v20 = vld [vmem:[#allocation71_spill] sm:$0xff]  ;;  %v4305_v22 = vrot.slane %v4303_v56, 5 }
 0x23d   :  { %v2988_v28 = vpop.f32.mrf.mxu1  ;;  %v10331_v23 = vld [vmem:[#allocation63_spill] sm:$0xff] }
 0x23e   :  { %10324 = vst [vmem:[#allocation25_spill] sm:$0xff] %v9299_v54  ;;  %v9305_v45 = vadd.f32 %v6615_v53, %v3101_v50  ;;  %v3099_v41 = vadd.f32 %v2988_v28, %v10328_v52  ;;  %v3409_v42 = vpop.f32.mrf.mxu0  ;;  %v4309_v54 = vrot.slane %v4307_v47, 4  ;;  %v66_v50 = vld [vmem:[%s9785_s0 + $0xd4] sm:$0x1]  ;;  %v4715_v53 = vrot.slane %v8982_v39, 5  ;;  %v10334_v52 = vld [vmem:[#allocation72_spill] sm:$0xff] }
 0x23f   :  { %v6550_v5 = vpop.f32.mrf.mxu1  ;;  %v4300_v47 = vor.u32 %v4299_v62, %v4296_v37  ;;  %v10337_v28 = vld [vmem:[#allocation91_spill] sm:$0xff]  ;;  %v4313_v39 = vshll.u32 %v66_v50, 16 }
 0x240   :  { %10327 = vst [vmem:[#allocation118_spill] sm:$0xff] %v9305_v45  ;;  %v9308_v3 = vadd.f32 %v3406_v26, %v3099_v41  ;;  %v3102_v57 = vadd.f32 %v6550_v5, %v10330_v20  ;;  %v6619_v58 = vpop.f32.mrf.mxu0  ;;  %6850 = vmatmul.mubr.msk.bf16.gmra.mxu0 %vm991_vm4, %v10331_v23  ;;  %v10338_v23 = vld [vmem:[#allocation42_spill] sm:$0xff] }
 0x241   :  { %v2991_v63 = vpop.f32.mrf.mxu1  ;;  %6853 = vmatprep.mubr.msk.bf16.mxu0 %vm991_vm4, %v10332_v25  ;;  %v10339_v45 = vld [vmem:[#allocation6_spill] sm:$0xff]  ;;  %v4301_v37 = vrot.slane %v4300_v47, 4 }
 0x242   :  { %10329 = vst [vmem:[#allocation119_spill] sm:$0xff] %v9308_v3  ;;  %v9319_v41 = vadd.f32 %v6616_v34, %v3102_v57  ;;  %v3100_v5 = vadd.f32 %v2991_v63, %v10334_v52  ;;  %v3422_v26 = vpop.f32.mrf.mxu0  ;;  %v4310_v3 = vor.u32 %v4309_v54, %v4305_v22  ;;  %v5837_v57 = vrot.slane %v8977_v15, 9 }
 0x243   :  { %v6553_v32 = vpop.f32.mrf.mxu1  ;;  %6784 = vmatmul.mubr.msk.bf16.gmra.mxu1 %vm991_vm4, %v10335_v29  ;;  %v4717_v63 = vrot.slane %v4715_v53, 4  ;;  %v4718_v52 = vrot.slane %v66_v50, 5 }
 0x244   :  { %10333 = vst [vmem:[#allocation89_spill] sm:$0xff] %v9319_v41  ;;  %v9324_v56 = vadd.f32 %v3409_v42, %v3100_v5  ;;  %v3105_v25 = vadd.f32 %v6553_v32, %v10337_v28  ;;  %v6620_v20 = vpop.f32.mrf.mxu0  ;;  %6787 = vmatprep.mubr.msk.bf16.mxu1 %vm991_vm4, %v10338_v23  ;;  %v10340_v32 = vld [vmem:[#allocation92_spill] sm:$0xff]  ;;  %v4311_v54 = vrot.slane %v4310_v3, 4  ;;  %v4315_v23 = vrot.slane %v4313_v39, 5 }
 0x245   :  { %v3004_v34 = vpop.f32.mrf.mxu1  ;;  %v4306_v3 = vsel %vm7066_vm5, %v4301_v37, %v4305_v22  ;;  %v10347_v37 = vld [vmem:[#allocation95_spill] sm:$0xff] }
 0x246   :  { %10336 = vst [vmem:[#allocation120_spill] sm:$0xff] %v9324_v56  ;;  %v9330_v41 = vadd.f32 %v6619_v58, %v3105_v25  ;;  %v3103_v29 = vadd.f32 %v3004_v34, %v10339_v45  ;;  %v3425_v62 = vpop.f32.mrf.mxu0  ;;  %v4716_v45 = vsel %vm7771_vm8, %v5837_v57, %v4715_v53  ;;  %v4719_v58 = vsel %vm7771_vm8, %v4717_v63, %v4718_v52  ;;  %v10345_v57 = vld [vmem:[#allocation111_spill] sm:$0xff] }
 0x247   :  { %v6554_v42 = vpop.f32.mrf.mxu1  ;;  %v5840_v63 = vcombine.low %v4716_v45, %v4719_v58 }
 0x248   :  { %v9333_v5 = vadd.f32 %v3422_v26, %v3103_v29  ;;  %v3106_v28 = vadd.f32 %v6554_v42, %v10340_v32  ;;  %v6623_v56 = vpop.f32.mrf.mxu0  ;;  %6854 = vmatmul.mubr.msk.bf16.gmra.mxu0 %vm991_vm4, %v10217_v35  ;;  %v10341_v26 = vld [vmem:[#allocation93_spill] sm:$0xff]  ;;  %v10342_v29 = vld [vmem:[#allocation47_spill] sm:$0xff] }
 0x249   :  { %v3007_v15 = vpop.f32.mrf.mxu1  ;;  %6857 = vmatprep.mubr.msk.bf16.mxu0 %vm991_vm4, %v9003_v6  ;;  %v10344_v6 = vld [vmem:[#allocation74_spill] sm:$0xff]  ;;  %v10378_v35 = vld [vmem:[#allocation107_spill] sm:$0xff] }
 0x24a   :  { %v9344_v50 = vadd.f32 %v6620_v20, %v3106_v28  ;;  %v3104_v47 = vadd.f32 %v3007_v15, %v10341_v26  ;;  %v3438_v25 = vpop.f32.mrf.mxu0  ;;  %v4316_v20 = vsel %vm7066_vm5, %v4311_v54, %v4315_v23  ;;  %v10346_v28 = vld [vmem:[#allocation57_spill] sm:$0xff] }
 0x24b   :  { %v6557_v34 = vpop.f32.mrf.mxu1  ;;  %6788 = vmatmul.mubr.msk.bf16.gmra.mxu1 %vm991_vm4, %v10342_v29  ;;  %v5803_v22 = vcombine.low %v4306_v3, %v4316_v20 }
 0x24c   :  { %v9351_v39 = vadd.f32 %v3425_v62, %v3104_v47  ;;  %v3109_v42 = vadd.f32 %v6557_v34, %v10344_v6  ;;  %v6624_v53 = vpop.f32.mrf.mxu0  ;;  %6791 = vmatprep.mubr.msk.bf16.mxu1 %vm991_vm4, %v10345_v57 }
 0x24d   :  { %v3020_v52 = vpop.f32.mrf.mxu1 }
 0x24e   :  { %v9358_v32 = vadd.f32 %v6623_v56, %v3109_v42  ;;  %v3107_v15 = vadd.f32 %v3020_v52, %v10346_v28  ;;  %v3441_v26 = vpop.f32.mrf.mxu0  ;;  %v10348_v42 = vld [vmem:[#allocation9_spill] sm:$0xff] }
 0x24f   :  { %v6558_v29 = vpop.f32.mrf.mxu1  ;;  %v10349_v52 = vld [vmem:[#allocation97_spill] sm:$0xff] }
 0x250   :  { %v9361_v62 = vadd.f32 %v3438_v25, %v3107_v15  ;;  %v3110_v47 = vadd.f32 %v6558_v29, %v10347_v37  ;;  %v6627_v34 = vpop.f32.mrf.mxu0  ;;  %6858 = vmatmul.mubr.msk.bf16.gmra.mxu0 %vm991_vm4, %v5840_v63  ;;  %v10350_v37 = vld [vmem:[#allocation11_spill] sm:$0xff] }
 0x251   :  { %v3023_v6 = vpop.f32.mrf.mxu1  ;;  %6861 = vmatprep.mubr.msk.bf16.mxu0 %vm991_vm4, %v10231_v18 }
 0x252   :  { %v9367_v54 = vadd.f32 %v6624_v53, %v3110_v47  ;;  %v3108_v56 = vadd.f32 %v3023_v6, %v9016_v14  ;;  %v3454_v23 = vpop.f32.mrf.mxu0 }
 0x253   :  { %v6561_v45 = vpop.f32.mrf.mxu1  ;;  %6792 = vmatmul.mubr.msk.bf16.gmra.mxu1 %vm991_vm4, %v5803_v22 }
 0x254   :  { %v9371_v58 = vadd.f32 %v3441_v26, %v3108_v56  ;;  %v3113_v25 = vadd.f32 %v6561_v45, %v9021_v4  ;;  %v6628_v3 = vpop.f32.mrf.mxu0  ;;  %6795 = vmatprep.mubr.msk.bf16.mxu1 %vm991_vm4, %v10348_v42  ;;  %v10351_v56 = vld [vmem:[#allocation13_spill] sm:$0xff] }
 0x255   :  { %v3036_v57 = vpop.f32.mrf.mxu1 }
 0x256   :  { %v9376_v20 = vadd.f32 %v6627_v34, %v3113_v25  ;;  %v3111_v18 = vadd.f32 %v3036_v57, %v9024_v10  ;;  %v3457_v53 = vpop.f32.mrf.mxu0 }
 0x257   :  { %v6562_v63 = vpop.f32.mrf.mxu1 }
 0x258   :  { %v9379_v14 = vadd.f32 %v3454_v23, %v3111_v18  ;;  %v3114_v28 = vadd.f32 %v6562_v63, %v10349_v52  ;;  %v6699_v15 = vpop.f32.mrf.mxu0  ;;  %6862 = vmatmul.mubr.msk.bf16.gmra.mxu0 %vm991_vm4, %v10232_v27  ;;  %v10352_v63 = vld [vmem:[#allocation15_spill] sm:$0xff] }
 0x259   :  { %v3039_v4 = vpop.f32.mrf.mxu1  ;;  %6865 = vmatprep.mubr.msk.bf16.mxu0 %vm991_vm4, %v10233_v9 }
 0x25a   :  { %v9386_v26 = vadd.f32 %v6628_v3, %v3114_v28  ;;  %v3112_v29 = vadd.f32 %v3039_v4, %v9036_v36  ;;  %v3974_v22 = vpop.f32.mrf.mxu0 }
 0x25b   :  { %v6633_v10 = vpop.f32.mrf.mxu1  ;;  %6796 = vmatmul.mubr.msk.bf16.gmra.mxu1 %vm991_vm4, %v10350_v37 }
 0x25c   :  { %v9391_v47 = vadd.f32 %v3457_v53, %v3112_v29  ;;  %v3857_v34 = vadd.f32 %v6633_v10, %v9041_v31  ;;  %v6700_v6 = vpop.f32.mrf.mxu0  ;;  %6799 = vmatprep.mubr.msk.bf16.mxu1 %vm991_vm4, %v10351_v56  ;;  %v10354_v10 = vld [vmem:[#allocation98_spill] sm:$0xff] }
 0x25d   :  { %v3600_v27 = vpop.f32.mrf.mxu1 }
 0x25e   :  { %v9396_v23 = vadd.f32 %v6699_v15, %v3857_v34  ;;  %v3855_v9 = vadd.f32 %v3600_v27, %v9044_v33  ;;  %v3977_v45 = vpop.f32.mrf.mxu0  ;;  %v10353_v15 = vld [vmem:[#allocation17_spill] sm:$0xff]  ;;  %v10356_v27 = vld [vmem:[#allocation99_spill] sm:$0xff] }
 0x25f   :  { %v6634_v36 = vpop.f32.mrf.mxu1 }
 0x260   :  { %v9399_v25 = vadd.f32 %v3974_v22, %v3855_v9  ;;  %v3858_v3 = vadd.f32 %v6634_v36, %v9051_v60  ;;  %v6703_v42 = vpop.f32.mrf.mxu0  ;;  %6866 = vmatmul.mubr.msk.bf16.gmra.mxu0 %vm991_vm4, %v10234_v12  ;;  %v10357_v36 = vld [vmem:[#allocation19_spill] sm:$0xff] }
 0x261   :  { %v3603_v31 = vpop.f32.mrf.mxu1  ;;  %6869 = vmatprep.mubr.msk.bf16.mxu0 %vm991_vm4, %v10236_v55 }
 0x262   :  { %v9406_v57 = vadd.f32 %v6700_v6, %v3858_v3  ;;  %v3856_v18 = vadd.f32 %v3603_v31, %v9056_v59  ;;  %v3990_v53 = vpop.f32.mrf.mxu0  ;;  %v10355_v6 = vld [vmem:[#allocation86_spill] sm:$0xff] }
 0x263   :  { %v6637_v33 = vpop.f32.mrf.mxu1  ;;  %6800 = vmatmul.mubr.msk.bf16.gmra.mxu1 %vm991_vm4, %v10352_v63  ;;  %v10360_v63 = vld [vmem:[#allocation60_spill] sm:$0xff] }
 0x264   :  { %v9411_v52 = vadd.f32 %v3977_v45, %v3856_v18  ;;  %v3861_v60 = vadd.f32 %v6637_v33, %v9061_v19  ;;  %v6704_v28 = vpop.f32.mrf.mxu0  ;;  %6803 = vmatprep.mubr.msk.bf16.mxu1 %vm991_vm4, %v10353_v15 }
 0x265   :  { %v3616_v12 = vpop.f32.mrf.mxu1 }
 0x266   :  { %v9416_v4 = vadd.f32 %v6703_v42, %v3861_v60  ;;  %v3859_v55 = vadd.f32 %v3616_v12, %v9064_v51  ;;  %v3993_v29 = vpop.f32.mrf.mxu0  ;;  %v10358_v42 = vld [vmem:[#allocation58_spill] sm:$0xff] }
 0x267   :  { %v6638_v59 = vpop.f32.mrf.mxu1 }
 0x268   :  { %v9419_v22 = vadd.f32 %v3990_v53, %v3859_v55  ;;  %v3862_v37 = vadd.f32 %v6638_v59, %v10354_v10  ;;  %v6707_v34 = vpop.f32.mrf.mxu0  ;;  %6870 = vmatmul.mubr.msk.bf16.gmra.mxu0 %vm991_vm4, %v10238_v38  ;;  %v10359_v53 = vld [vmem:[#allocation21_spill] sm:$0xff]  ;;  %v10361_v55 = vld [vmem:[#allocation100_spill] sm:$0xff] }
 0x269   :  { %v3619_v19 = vpop.f32.mrf.mxu1  ;;  %6873 = vmatprep.mubr.msk.bf16.mxu0 %vm991_vm4, %v10355_v6 }
 0x26a   :  { %v9426_v56 = vadd.f32 %v6704_v28, %v3862_v37  ;;  %v3860_v9 = vadd.f32 %v3619_v19, %v10356_v27  ;;  %v4006_v45 = vpop.f32.mrf.mxu0  ;;  %v10362_v27 = vld [vmem:[#allocation23_spill] sm:$0xff] }
 0x26b   :  { %v6641_v51 = vpop.f32.mrf.mxu1  ;;  %6804 = vmatmul.mubr.msk.bf16.gmra.mxu1 %vm991_vm4, %v10357_v36  ;;  %v10363_v36 = vld [vmem:[#allocation26_spill] sm:$0xff] }
 0x26c   :  { %v9431_v3 = vadd.f32 %v3993_v29, %v3860_v9  ;;  %v3865_v31 = vadd.f32 %v6641_v51, %v10358_v42  ;;  %v6708_v18 = vpop.f32.mrf.mxu0  ;;  %6807 = vmatprep.mubr.msk.bf16.mxu1 %vm991_vm4, %v10359_v53  ;;  %v10364_v53 = vld [vmem:[#allocation101_spill] sm:$0xff] }
 0x26d   :  { %v3632_v38 = vpop.f32.mrf.mxu1 }
 0x26e   :  { %v9436_v33 = vadd.f32 %v6707_v34, %v3865_v31  ;;  %v3863_v60 = vadd.f32 %v3632_v38, %v10360_v63  ;;  %v4009_v28 = vpop.f32.mrf.mxu0 }
 0x26f   :  { %v6642_v15 = vpop.f32.mrf.mxu1 }
 0x270   :  { %v9439_v12 = vadd.f32 %v4006_v45, %v3863_v60  ;;  %v3866_v59 = vadd.f32 %v6642_v15, %v10361_v55  ;;  %v6711_v10 = vpop.f32.mrf.mxu0  ;;  %6874 = vmatmul.mubr.msk.bf16.gmra.mxu0 %vm991_vm4, %v10247_v13  ;;  %v4321_v55 = vshll.u32 %v9157_v40, 16 }
 0x271   :  { %v3635_v29 = vpop.f32.mrf.mxu1  ;;  %6877 = vmatprep.mubr.msk.bf16.mxu0 %vm991_vm4, %v10252_v8 }
 0x272   :  { %v9446_v37 = vadd.f32 %v6708_v18, %v3866_v59  ;;  %v3864_v34 = vadd.f32 %v3635_v29, %v9096_v11  ;;  %v4022_v19 = vpop.f32.mrf.mxu0  ;;  %v4331_v29 = vshrl.u32 %v9162_v46, 16 }
 0x273   :  { %v6645_v6 = vpop.f32.mrf.mxu1  ;;  %6808 = vmatmul.mubr.msk.bf16.gmra.mxu1 %vm991_vm4, %v10362_v27 }
 0x274   :  { %v9451_v9 = vadd.f32 %v4009_v28, %v3864_v34  ;;  %v3869_v45 = vadd.f32 %v6645_v6, %v9101_v2  ;;  %v6712_v51 = vpop.f32.mrf.mxu0  ;;  %6811 = vmatprep.mubr.msk.bf16.mxu1 %vm991_vm4, %v10363_v36 }
 0x275   :  { %v3648_v13 = vpop.f32.mrf.mxu1 }
 0x276   :  { %v9456_v42 = vadd.f32 %v6711_v10, %v3869_v45  ;;  %v3867_v8 = vadd.f32 %v3648_v13, %v9104_v48  ;;  %v4025_v31 = vpop.f32.mrf.mxu0  ;;  %v4318_v48 = vshrl.u32 %v9157_v40, 16  ;;  %v10365_v10 = vld [vmem:[#allocation30_spill] sm:$0xff] }
 0x277   :  { %v6646_v11 = vpop.f32.mrf.mxu1 }
 0x278   :  { %v9459_v18 = vadd.f32 %v4022_v19, %v3867_v8  ;;  %v3870_v38 = vadd.f32 %v6646_v11, %v10364_v53  ;;  %v6715_v63 = vpop.f32.mrf.mxu0  ;;  %6878 = vmatmul.mubr.msk.bf16.gmra.mxu0 %vm991_vm4, %v10253_v24  ;;  %v10366_v19 = vld [vmem:[#allocation35_spill] sm:$0xff]  ;;  %v4320_v13 = vrot.slane %v4318_v48, 4  ;;  %v4323_v8 = vrot.slane %v4321_v55, 5  ;;  %v10368_v48 = vld [vmem:[#allocation104_spill] sm:$0xff] }
 0x279   :  { %v3651_v2 = vpop.f32.mrf.mxu1  ;;  %6881 = vmatprep.mubr.msk.bf16.mxu0 %vm991_vm4, %v10256_v61 }
 0x27a   :  { %v9466_v60 = vadd.f32 %v6712_v51, %v3870_v38  ;;  %v3868_v28 = vadd.f32 %v3651_v2, %v9116_v21  ;;  %v4038_v15 = vpop.f32.mrf.mxu0  ;;  %v4327_v21 = vshll.u32 %v9162_v46, 16  ;;  %v4333_v2 = vrot.slane %v4331_v29, 4 }
 0x27b   :  { %v6649_v59 = vpop.f32.mrf.mxu1  ;;  %6812 = vmatmul.mubr.msk.bf16.gmra.mxu1 %vm991_vm4, %v10365_v10 }
 0x27c   :  { %v9474_v24 = vadd.f32 %v4025_v31, %v3868_v28  ;;  %v3873_v34 = vadd.f32 %v6649_v59, %v9121_v1  ;;  %v6716_v61 = vpop.f32.mrf.mxu0  ;;  %6815 = vmatprep.mubr.msk.bf16.mxu1 %vm991_vm4, %v10366_v19  ;;  %v10367_v31 = vld [vmem:[#allocation103_spill] sm:$0xff]  ;;  %v4329_v38 = vrot.slane %v4327_v21, 5  ;;  %v10370_v21 = vld [vmem:[#allocation45_spill] sm:$0xff] }
 0x27d   :  { %v3664_v6 = vpop.f32.mrf.mxu1 }
 0x27e   :  { %v9480_v27 = vadd.f32 %v6715_v63, %v3873_v34  ;;  %v3871_v45 = vadd.f32 %v3664_v6, %v9124_v17  ;;  %v4041_v51 = vpop.f32.mrf.mxu0  ;;  %v120_v17 = vld [vmem:[%s9785_s0 + $0x1ac] sm:$0x1]  ;;  %v4722_v63 = vrot.slane %v9162_v46, 5  ;;  %v10369_v34 = vld [vmem:[#allocation40_spill] sm:$0xff]  ;;  %v4334_v6 = vor.u32 %v4333_v2, %v4329_v38  ;;  %s7013_s0 = smov [#allocation2]  }
 0x27f   :  { %v6650_v36 = vpop.f32.mrf.mxu1  ;;  %v4337_v46 = vshll.u32 %v120_v17, 16  ;;  %s5423_s16 = sshll.u32 %s7013_s0, 4  ;;  %s5424_s16 = int_to_ptr.vmem [resolvable:$true] %s5423_s16 }
 0x280   :  { %v9483_v11 = vadd.f32 %v4038_v15, %v3871_v45  ;;  %v3874_v53 = vadd.f32 %v6650_v36, %v10367_v31  ;;  %v6719_v1 = vpop.f32.mrf.mxu0  ;;  %6882 = vmatmul.mubr.msk.bf16.gmra.mxu0 %vm991_vm4, %v10258_v43  ;;  %v4324_v43 = vor.u32 %v4323_v8, %v4320_v13  ;;  %v5838_v45 = vrot.slane %v9157_v40, 9  ;;  %s6990_s17 = scalar_lea.vmem %s5424_s16, 4096  ;;  %p6995_p1 = scmp.lt.s32.totalorder %s5424_s16, %s5424_s16 }
 0x281   :  { %v3667_v28 = vpop.f32.mrf.mxu1  ;;  %6885 = vmatprep.mubr.msk.bf16.mxu0 %vm991_vm4, %v10261_v49  ;;  %v4724_v36 = vrot.slane %v4722_v63, 4  ;;  %v4725_v31 = vrot.slane %v120_v17, 5  ;;  %v4335_v2 = vrot.slane %v4334_v6, 4  ;;  %p6991_p0 = scmp.ne.s32.totalorder %s5424_s16, %s6990_s17  ;;  %p6996_p2 = scmp.lt.s32.totalorder %s6990_s17, %s6990_s17 }
 0x282   :  { %v9494_v15 = vadd.f32 %v6716_v61, %v3874_v53  ;;  %v3872_v55 = vadd.f32 %v3667_v28, %v10368_v48  ;;  %v4054_v59 = vpop.f32.mrf.mxu0  ;;  %v4325_v8 = vrot.slane %v4324_v43, 4 }
 0x283   :  { %v6653_v10 = vpop.f32.mrf.mxu1  ;;  %6816 = vmatmul.mubr.msk.bf16.gmra.mxu1 %vm991_vm4, %v10369_v34  ;;  %v4339_v34 = vrot.slane %v4337_v46, 5  ;;  %p6997_p3 = por %p6996_p2, %p6995_p1 }
 0x284   :  { %v9499_v29 = vadd.f32 %v4041_v51, %v3872_v55  ;;  %v3877_v49 = vadd.f32 %v6653_v10, %v9142_v7  ;;  %v6720_v19 = vpop.f32.mrf.mxu0  ;;  %6819 = vmatprep.mubr.msk.bf16.mxu1 %vm991_vm4, %v10370_v21  ;;  %v10371_v7 = vld [vmem:[#allocation102_spill] sm:$0xff] }
 0x285   :  { %v3680_v61 = vpop.f32.mrf.mxu1  ;;  %v4340_v0 = vsel %vm7066_vm5, %v4335_v2, %v4339_v34  ;;  %p6998_p4 = pnand %p6997_p3, %p6991_p0 }
 0x286   :  { %v9505_v53 = vadd.f32 %v6719_v1, %v3877_v49  ;;  %v3875_v28 = vadd.f32 %v3680_v61, %v9146_v30  ;;  %v4057_v13 = vpop.f32.mrf.mxu0  ;;  %v4723_v30 = vsel %vm7771_vm8, %v5838_v45, %v4722_v63  ;;  %v4726_v1 = vsel %vm7771_vm8, %v4724_v36, %v4725_v31  ;;  %v10373_v61 = vld [vmem:[#allocation48_spill] sm:$0xff]  ;;  %v10375_v45 = vld [vmem:[#allocation125_spill] sm:$0xff] }
 0x287   :  { %v6654_v51 = vpop.f32.mrf.mxu1 }
 0x288   :  { %v9508_v48 = vadd.f32 %v4054_v59, %v3875_v28  ;;  %v3878_v55 = vadd.f32 %v6654_v51, %v10371_v7  ;;  %v6723_v10 = vpop.f32.mrf.mxu0  ;;  %6886 = vmatmul.mubr.msk.bf16.gmra.mxu0 %vm991_vm4, %v10263_v16  ;;  %v10372_v59 = vld [vmem:[#allocation105_spill] sm:$0xff]  ;;  %v4330_v16 = vsel %vm7066_vm5, %v4325_v8, %v4329_v38  ;;  %v10376_v28 = vld [vmem:[#allocation106_spill] sm:$0xff] }
 0x289   :  { %v3683_v40 = vpop.f32.mrf.mxu1  ;;  %6889 = vmatprep.mubr.msk.bf16.mxu0 %vm991_vm4, %v9183_v44  ;;  %v10374_v44 = vld [vmem:[#allocation61_spill] sm:$0xff]  ;;  %v5804_v38 = vcombine.low %v4330_v16, %v4340_v0 }
 0x28a   :  { %v9519_v17 = vadd.f32 %v6720_v19, %v3878_v55  ;;  %v3876_v43 = vadd.f32 %v3683_v40, %v10372_v59  ;;  %v4070_v49 = vpop.f32.mrf.mxu0  ;;  %v5841_v19 = vcombine.low %v4723_v30, %v4726_v1  ;;  %v10377_v8 = vld [vmem:[#allocation113_spill] sm:$0xff]  ;;  %v10379_v1 = vld [vmem:[#allocation46_spill] sm:$0xff] }
 0x28b   :  { %v6657_v21 = vpop.f32.mrf.mxu1  ;;  %6820 = vmatmul.mubr.msk.bf16.gmra.mxu1 %vm991_vm4, %v10373_v61 }
 0x28c   :  { %v9526_v6 = vadd.f32 %v4057_v13, %v3876_v43  ;;  %v3881_v46 = vadd.f32 %v6657_v21, %v10374_v44  ;;  %v6724_v63 = vpop.f32.mrf.mxu0  ;;  %6823 = vmatprep.mubr.msk.bf16.mxu1 %vm991_vm4, %v10375_v45 }
 0x28d   :  { %v3696_v36 = vpop.f32.mrf.mxu1 }
 0x28e   :  { %v9533_v31 = vadd.f32 %v6723_v10, %v3881_v46  ;;  %v3879_v51 = vadd.f32 %v3696_v36, %v10376_v28  ;;  %v4073_v7 = vpop.f32.mrf.mxu0  ;;  %v10380_v46 = vld [vmem:[#allocation108_spill] sm:$0xff]  ;;  %v10381_v36 = vld [vmem:[#allocation67_spill] sm:$0xff] }
 0x28f   :  { %v6658_v55 = vpop.f32.mrf.mxu1 }
 0x290   :  { %v9536_v13 = vadd.f32 %v4070_v49, %v3879_v51  ;;  %v3882_v40 = vadd.f32 %v6658_v55, %v10377_v8  ;;  %v6727_v59 = vpop.f32.mrf.mxu0  ;;  %6890 = vmatmul.mubr.msk.bf16.gmra.mxu0 %vm991_vm4, %v5841_v19 }
 0x291   :  { %v3699_v43 = vpop.f32.mrf.mxu1 }
 0x292   :  { %v9540_v21 = vadd.f32 %v6724_v63, %v3882_v40  ;;  %v3880_v2 = vadd.f32 %v3699_v43, %v10378_v35  ;;  %v4086_v34 = vpop.f32.mrf.mxu0 }
 0x293   :  { %v6661_v10 = vpop.f32.mrf.mxu1  ;;  %6824 = vmatmul.mubr.msk.bf16.gmra.mxu1 %vm991_vm4, %v5804_v38 }
 0x294   :  { %v9544_v30 = vadd.f32 %v4073_v7, %v3880_v2  ;;  %v3885_v61 = vadd.f32 %v6661_v10, %v10379_v1  ;;  %v6728_v49 = vpop.f32.mrf.mxu0  ;;  %v10382_v7 = vld [vmem:[#allocation109_spill] sm:$0xff] }
 0x295   :  { %v3712_v16 = vpop.f32.mrf.mxu1 }
 0x296   :  { %v9547_v44 = vadd.f32 %v6727_v59, %v3885_v61  ;;  %v3883_v45 = vadd.f32 %v3712_v16, %v10380_v46  ;;  %v4089_v0 = vpop.f32.mrf.mxu0  ;;  %v10384_v59 = vld [vmem:[#allocation110_spill] sm:$0xff] }
 0x297   :  { %v6662_v19 = vpop.f32.mrf.mxu1 }
 0x298   :  { %v9550_v63 = vadd.f32 %v4086_v34, %v3883_v45  ;;  %v3886_v28 = vadd.f32 %v6662_v19, %v10381_v36  ;;  %v6731_v51 = vpop.f32.mrf.mxu0  ;;  %v10386_v34 = vld [vmem:[#allocation112_spill] sm:$0xff] }
 0x299   :  { %v3715_v55 = vpop.f32.mrf.mxu1 }
 0x29a   :  { %v9553_v8 = vadd.f32 %v6728_v49, %v3886_v28  ;;  %v3884_v38 = vadd.f32 %v3715_v55, %v10382_v7  ;;  %v4102_v40 = vpop.f32.mrf.mxu0  ;;  %v10388_v49 = vld [vmem:[#allocation7_spill] sm:$0xff] }
 0x29b   :  { %v6665_v43 = vpop.f32.mrf.mxu1 }
 0x29c   :  { %v9556_v35 = vadd.f32 %v4089_v0, %v3884_v38  ;;  %v3889_v2 = vadd.f32 %v6665_v43, %v10384_v59  ;;  %v6732_v10 = vpop.f32.mrf.mxu0  ;;  %v10390_v0 = vld [vmem:[#allocation75_spill] sm:$0xff] }
 0x29d   :  { %v3728_v1 = vpop.f32.mrf.mxu1 }
 0x29e   :  { %10383 = vst [vmem:[#allocation121_spill] sm:$0xff] %v9556_v35  ;;  %v9559_v61 = vadd.f32 %v6731_v51, %v3889_v2  ;;  %v3887_v16 = vadd.f32 %v3728_v1, %v10386_v34  ;;  %v4105_v46 = vpop.f32.mrf.mxu0  ;;  %v10392_v51 = vld [vmem:[#allocation114_spill] sm:$0xff] }
 0x29f   :  { %v6666_v45 = vpop.f32.mrf.mxu1 }
 0x2a0   :  { %10385 = vst [vmem:[#allocation122_spill] sm:$0xff] %v9559_v61  ;;  %v9562_v19 = vadd.f32 %v4102_v40, %v3887_v16  ;;  %v3890_v36 = vadd.f32 %v6666_v45, %v10388_v49  ;;  %v6735_v28 = vpop.f32.mrf.mxu0  ;;  %v10394_v40 = vld [vmem:[#allocation115_spill] sm:$0xff] }
 0x2a1   :  { %v3731_v55 = vpop.f32.mrf.mxu1 }
 0x2a2   :  { %10387 = vst [vmem:[#allocation90_spill] sm:$0xff] %v9562_v19  ;;  %v9565_v7 = vadd.f32 %v6732_v10, %v3890_v36  ;;  %v3888_v38 = vadd.f32 %v3731_v55, %v10390_v0  ;;  %v4118_v35 = vpop.f32.mrf.mxu0  ;;  %v10396_v10 = vld [vmem:[#allocation79_spill] sm:$0xff] }
 0x2a3   :  { %v6669_v43 = vpop.f32.mrf.mxu1 }
 0x2a4   :  { %10389 = vst [vmem:[#allocation32_spill] sm:$0xff] %v9565_v7  ;;  %v9568_v59 = vadd.f32 %v4105_v46, %v3888_v38  ;;  %v3893_v2 = vadd.f32 %v6669_v43, %v10392_v51  ;;  %v6736_v61 = vpop.f32.mrf.mxu0  ;;  %v10398_v46 = vld [vmem:[#allocation116_spill] sm:$0xff] }
 0x2a5   :  { %v3744_v1 = vpop.f32.mrf.mxu1 }
 0x2a6   :  { %10391 = vst [vmem:[#allocation124_spill] sm:$0xff] %v9568_v59  ;;  %v9571_v34 = vadd.f32 %v6735_v28, %v3893_v2  ;;  %v3891_v16 = vadd.f32 %v3744_v1, %v10394_v40  ;;  %v4121_v19 = vpop.f32.mrf.mxu0  ;;  %v10400_v28 = vld [vmem:[#allocation76_spill] sm:$0xff] }
 0x2a7   :  { %v6670_v45 = vpop.f32.mrf.mxu1 }
 0x2a8   :  { %10393 = vst [vmem:[#allocation38_spill] sm:$0xff] %v9571_v34  ;;  %v9574_v49 = vadd.f32 %v4118_v35, %v3891_v16  ;;  %v3894_v36 = vadd.f32 %v6670_v45, %v10396_v10  ;;  %v6739_v7 = vpop.f32.mrf.mxu0  ;;  %v10402_v35 = vld [vmem:[#allocation77_spill] sm:$0xff] }
 0x2a9   :  { %v3747_v55 = vpop.f32.mrf.mxu1 }
 0x2aa   :  { %10395 = vst [vmem:[#allocation36_spill] sm:$0xff] %v9574_v49  ;;  %v9577_v0 = vadd.f32 %v6736_v61, %v3894_v36  ;;  %v3892_v38 = vadd.f32 %v3747_v55, %v10398_v46  ;;  %v4134_v59 = vpop.f32.mrf.mxu0  ;;  %v10404_v61 = vld [vmem:[#allocation78_spill] sm:$0xff] }
 0x2ab   :  { %v6673_v43 = vpop.f32.mrf.mxu1 }
 0x2ac   :  { %10397 = vst [vmem:[#allocation123_spill] sm:$0xff] %v9577_v0  ;;  %v9580_v51 = vadd.f32 %v4121_v19, %v3892_v38  ;;  %v3897_v2 = vadd.f32 %v6673_v43, %v10400_v28  ;;  %v6740_v34 = vpop.f32.mrf.mxu0  ;;  %v10406_v19 = vld [vmem:[#allocation81_spill] sm:$0xff] }
 0x2ad   :  { %v3760_v1 = vpop.f32.mrf.mxu1 }
 0x2ae   :  { %10399 = vst [vmem:[#allocation39_spill] sm:$0xff] %v9580_v51  ;;  %v9583_v40 = vadd.f32 %v6739_v7, %v3897_v2  ;;  %v3895_v16 = vadd.f32 %v3760_v1, %v10402_v35  ;;  %v4137_v49 = vpop.f32.mrf.mxu0  ;;  %v10408_v7 = vld [vmem:[#allocation82_spill] sm:$0xff] }
 0x2af   :  { %v6674_v45 = vpop.f32.mrf.mxu1 }
 0x2b0   :  { %10401 = vst [vmem:[#allocation44_spill] sm:$0xff] %v9583_v40  ;;  %v9586_v10 = vadd.f32 %v4134_v59, %v3895_v16  ;;  %v3898_v36 = vadd.f32 %v6674_v45, %v10404_v61  ;;  %v6743_v0 = vpop.f32.mrf.mxu0  ;;  %v10410_v59 = vld [vmem:[#allocation85_spill] sm:$0xff] }
 0x2b1   :  { %v3763_v55 = vpop.f32.mrf.mxu1 }
 0x2b2   :  { %10403 = vst [vmem:[#allocation8_spill] sm:$0xff] %v9586_v10  ;;  %v9589_v46 = vadd.f32 %v6740_v34, %v3898_v36  ;;  %v3896_v38 = vadd.f32 %v3763_v55, %v10406_v19  ;;  %v4150_v51 = vpop.f32.mrf.mxu0  ;;  %v10412_v34 = vld [vmem:[#allocation117_spill] sm:$0xff] }
 0x2b3   :  { %v6677_v43 = vpop.f32.mrf.mxu1 }
 0x2b4   :  { %10405 = vst [vmem:[#allocation50_spill] sm:$0xff] %v9589_v46  ;;  %v9592_v28 = vadd.f32 %v4137_v49, %v3896_v38  ;;  %v3901_v2 = vadd.f32 %v6677_v43, %v10408_v7  ;;  %v6744_v40 = vpop.f32.mrf.mxu0  ;;  %v10414_v49 = vld [vmem:[#allocation25_spill] sm:$0xff] }
 0x2b5   :  { %v3776_v1 = vpop.f32.mrf.mxu1 }
 0x2b6   :  { %10407 = vst [vmem:[#allocation51_spill] sm:$0xff] %v9592_v28  ;;  %v9595_v35 = vadd.f32 %v6743_v0, %v3901_v2  ;;  %v3899_v16 = vadd.f32 %v3776_v1, %v10410_v59  ;;  %v4153_v10 = vpop.f32.mrf.mxu0  ;;  %v10416_v0 = vld [vmem:[#allocation118_spill] sm:$0xff] }
 0x2b7   :  { %v6678_v45 = vpop.f32.mrf.mxu1 }
 0x2b8   :  { %10409 = vst [vmem:[#allocation96_spill] sm:$0xff] %v9595_v35  ;;  %v9598_v61 = vadd.f32 %v4150_v51, %v3899_v16  ;;  %v3902_v36 = vadd.f32 %v6678_v45, %v10412_v34  ;;  %v6747_v46 = vpop.f32.mrf.mxu0  ;;  %v10417_v51 = vld [vmem:[#allocation119_spill] sm:$0xff] }
 0x2b9   :  { %v3779_v55 = vpop.f32.mrf.mxu1 }
 0x2ba   :  { %10411 = vst [vmem:[#allocation10_spill] sm:$0xff] %v9598_v61  ;;  %v9601_v19 = vadd.f32 %v6744_v40, %v3902_v36  ;;  %v3900_v38 = vadd.f32 %v3779_v55, %v10414_v49  ;;  %v4166_v28 = vpop.f32.mrf.mxu0  ;;  %v10418_v40 = vld [vmem:[#allocation89_spill] sm:$0xff] }
 0x2bb   :  { %v6681_v43 = vpop.f32.mrf.mxu1 }
 0x2bc   :  { %10413 = vst [vmem:[#allocation52_spill] sm:$0xff] %v9601_v19  ;;  %v9604_v7 = vadd.f32 %v4153_v10, %v3900_v38  ;;  %v3905_v2 = vadd.f32 %v6681_v43, %v10416_v0  ;;  %v6748_v35 = vpop.f32.mrf.mxu0  ;;  %v10419_v10 = vld [vmem:[#allocation120_spill] sm:$0xff] }
 0x2bd   :  { %v3792_v1 = vpop.f32.mrf.mxu1 }
 0x2be   :  { %10415 = vst [vmem:[#allocation12_spill] sm:$0xff] %v9604_v7  ;;  %v9607_v59 = vadd.f32 %v6747_v46, %v3905_v2  ;;  %v3903_v16 = vadd.f32 %v3792_v1, %v10417_v51  ;;  %v4169_v61 = vpop.f32.mrf.mxu0 }
 0x2bf   :  { %v6682_v45 = vpop.f32.mrf.mxu1 }
 0x2c0   :  { %v9610_v34 = vadd.f32 %v4166_v28, %v3903_v16  ;;  %v3906_v36 = vadd.f32 %v6682_v45, %v10418_v40  ;;  %v6751_v19 = vpop.f32.mrf.mxu0 }
 0x2c1   :  { %v3795_v55 = vpop.f32.mrf.mxu1 }
 0x2c2   :  { %v9613_v49 = vadd.f32 %v6748_v35, %v3906_v36  ;;  %v3904_v38 = vadd.f32 %v3795_v55, %v10419_v10  ;;  %v4182_v7 = vpop.f32.mrf.mxu0 }
 0x2c3   :  { %v6685_v43 = vpop.f32.mrf.mxu1 }
 0x2c4   :  { %v9616_v0 = vadd.f32 %v4169_v61, %v3904_v38  ;;  %v3909_v46 = vadd.f32 %v6685_v43, %v9330_v41  ;;  %v6752_v2 = vpop.f32.mrf.mxu0 }
 0x2c5   :  { %v3808_v1 = vpop.f32.mrf.mxu1 }
 0x2c6   :  { %v9619_v51 = vadd.f32 %v6751_v19, %v3909_v46  ;;  %v3907_v28 = vadd.f32 %v3808_v1, %v9333_v5  ;;  %v4185_v16 = vpop.f32.mrf.mxu0 }
 0x2c7   :  { %v6686_v45 = vpop.f32.mrf.mxu1 }
 0x2c8   :  { %v9622_v40 = vadd.f32 %v4182_v7, %v3907_v28  ;;  %v3910_v35 = vadd.f32 %v6686_v45, %v9344_v50  ;;  %v6755_v36 = vpop.f32.mrf.mxu0 }
 0x2c9   :  { %v3811_v55 = vpop.f32.mrf.mxu1 }
 0x2ca   :  { %v9625_v10 = vadd.f32 %v6752_v2, %v3910_v35  ;;  %v3908_v61 = vadd.f32 %v3811_v55, %v9351_v39  ;;  %v4198_v38 = vpop.f32.mrf.mxu0 }
 0x2cb   :  { %v6689_v41 = vpop.f32.mrf.mxu1 }
 0x2cc   :  { %v9628_v43 = vadd.f32 %v4185_v16, %v3908_v61  ;;  %v3913_v19 = vadd.f32 %v6689_v41, %v9358_v32  ;;  %v6756_v46 = vpop.f32.mrf.mxu0 }
 0x2cd   :  { %v3824_v5 = vpop.f32.mrf.mxu1 }
 0x2ce   :  { %v9631_v1 = vadd.f32 %v6755_v36, %v3913_v19  ;;  %v3911_v7 = vadd.f32 %v3824_v5, %v9361_v62  ;;  %v4201_v28 = vpop.f32.mrf.mxu0 }
 0x2cf   :  { %v6690_v50 = vpop.f32.mrf.mxu1 }
 0x2d0   :  { %v9634_v45 = vadd.f32 %v4198_v38, %v3911_v7  ;;  %v3914_v2 = vadd.f32 %v6690_v50, %v9367_v54  ;;  %v6759_v35 = vpop.f32.mrf.mxu0 }
 0x2d1   :  { %v3827_v39 = vpop.f32.mrf.mxu1 }
 0x2d2   :  { %v9637_v55 = vadd.f32 %v6756_v46, %v3914_v2  ;;  %v3912_v16 = vadd.f32 %v3827_v39, %v9371_v58  ;;  %v4214_v61 = vpop.f32.mrf.mxu0 }
 0x2d3   :  { %v6693_v32 = vpop.f32.mrf.mxu1 }
 0x2d4   :  { %v9640_v41 = vadd.f32 %v4201_v28, %v3912_v16  ;;  %v3917_v36 = vadd.f32 %v6693_v32, %v9376_v20  ;;  %v6760_v19 = vpop.f32.mrf.mxu0 }
 0x2d5   :  { %v3840_v62 = vpop.f32.mrf.mxu1 }
 0x2d6   :  { %v9643_v5 = vadd.f32 %v6759_v35, %v3917_v36  ;;  %v3915_v38 = vadd.f32 %v3840_v62, %v9379_v14  ;;  %v4217_v7 = vpop.f32.mrf.mxu0 }
 0x2d7   :  { %v6694_v54 = vpop.f32.mrf.mxu1 }
 0x2d8   :  { %v9646_v50 = vadd.f32 %v4214_v61, %v3915_v38  ;;  %v3918_v46 = vadd.f32 %v6694_v54, %v9386_v26  ;;  %v6831_v2 = vpop.f32.mrf.mxu0 }
 0x2d9   :  { %v3843_v58 = vpop.f32.mrf.mxu1 }
 0x2da   :  { %10420 = vst [vmem:[#allocation49_spill] sm:$0xff] %v9646_v50  ;;  %v9649_v39 = vadd.f32 %v6760_v19, %v3918_v46  ;;  %v3916_v28 = vadd.f32 %v3843_v58, %v9391_v47  ;;  %v4778_v16 = vpop.f32.mrf.mxu0 }
 0x2db   :  { %v6765_v20 = vpop.f32.mrf.mxu1 }
 0x2dc   :  { %v9652_v32 = vadd.f32 %v4217_v7, %v3916_v28  ;;  %v4649_v35 = vadd.f32 %v6765_v20, %v9396_v23  ;;  %v6832_v36 = vpop.f32.mrf.mxu0 }
 0x2dd   :  { %v4392_v14 = vpop.f32.mrf.mxu1 }
 0x2de   :  { %v5035_v62 = vadd.f32 %v6831_v2, %v4649_v35  ;;  %v4647_v61 = vadd.f32 %v4392_v14, %v9399_v25  ;;  %v4781_v38 = vpop.f32.mrf.mxu0 }
 0x2df   :  { %v6766_v26 = vpop.f32.mrf.mxu1 }
 0x2e0   :  { %v5940_v54 = vpack.c.bf16 %v5035_v62, %v5035_v62  ;;  %v5033_v50 = vadd.f32 %v4778_v16, %v4647_v61  ;;  %v4650_v19 = vadd.f32 %v6766_v26, %v9406_v57  ;;  %v6835_v46 = vpop.f32.mrf.mxu0 }
 0x2e1   :  { %v4395_v47 = vpop.f32.mrf.mxu1 }
 0x2e2   :  { %5356 = vst.msk [vmem:[#allocation2 + $0x8] sm:$0xf] %vm5353_vm9, %v5940_v54  ;;  %v5938_v7 = vpack.c.bf16 %v5033_v50, %v5033_v50  ;;  %v5036_v58 = vadd.f32 %v6832_v36, %v4650_v19  ;;  %v4648_v23 = vadd.f32 %v4395_v47, %v9411_v52  ;;  %v4794_v28 = vpop.f32.mrf.mxu0 }
 0x2e3   :  { %v6769_v20 = vpop.f32.mrf.mxu1 }
 0x2e4   :  { %5354 = vst.msk [vmem:[#allocation2] sm:$0xf] %vm5353_vm9, %v5938_v7  ;;  %v5941_v25 = vpack.c.bf16 %v5036_v58, %v5036_v58  ;;  %v5034_v2 = vadd.f32 %v4781_v38, %v4648_v23  ;;  %v4653_v35 = vadd.f32 %v6769_v20, %v9416_v4  ;;  %v6836_v14 = vpop.f32.mrf.mxu0 }
 0x2e5   :  { %v4408_v16 = vpop.f32.mrf.mxu1 }
 0x2e6   :  { %5357 = vst.msk [vmem:[#allocation2 + $0xc] sm:$0xf] %vm5353_vm9, %v5941_v25  ;;  %v5939_v57 = vpack.c.bf16 %v5034_v2, %v5034_v2  ;;  %v5039_v62 = vadd.f32 %v6835_v46, %v4653_v35  ;;  %v4651_v61 = vadd.f32 %v4408_v16, %v9419_v22  ;;  %v4797_v50 = vpop.f32.mrf.mxu0 }
 0x2e7   :  { %v6770_v36 = vpop.f32.mrf.mxu1 }
 0x2e8   :  { %5355 = vst.msk [vmem:[#allocation2 + $0x4] sm:$0xf] %vm5353_vm9, %v5939_v57  ;;  %v5944_v52 = vpack.c.bf16 %v5039_v62, %v5039_v62  ;;  %v5037_v26 = vadd.f32 %v4794_v28, %v4651_v61  ;;  %v4654_v54 = vadd.f32 %v6770_v36, %v9426_v56  ;;  %v6839_v19 = vpop.f32.mrf.mxu0 }
 0x2e9   :  { %v4411_v38 = vpop.f32.mrf.mxu1 }
 0x2ea   :  { %5360 = vst.msk [vmem:[#allocation2 + $0x18] sm:$0xf] %vm5353_vm9, %v5944_v52  ;;  %v5942_v4 = vpack.c.bf16 %v5037_v26, %v5037_v26  ;;  %v5040_v47 = vadd.f32 %v6836_v14, %v4654_v54  ;;  %v4652_v7 = vadd.f32 %v4411_v38, %v9431_v3  ;;  %v4810_v58 = vpop.f32.mrf.mxu0 }
 0x2eb   :  { %v6773_v46 = vpop.f32.mrf.mxu1 }
 0x2ec   :  { %5358 = vst.msk [vmem:[#allocation2 + $0x10] sm:$0xf] %vm5353_vm9, %v5942_v4  ;;  %v5945_v22 = vpack.c.bf16 %v5040_v47, %v5040_v47  ;;  %v5038_v23 = vadd.f32 %v4797_v50, %v4652_v7  ;;  %v4657_v20 = vadd.f32 %v6773_v46, %v9436_v33  ;;  %v6840_v25 = vpop.f32.mrf.mxu0 }
 0x2ed   :  { %v4424_v28 = vpop.f32.mrf.mxu1 }
 0x2ee   :  { %5361 = vst.msk [vmem:[#allocation2 + $0x1c] sm:$0xf] %vm5353_vm9, %v5945_v22  ;;  %v5943_v56 = vpack.c.bf16 %v5038_v23, %v5038_v23  ;;  %v5043_v2 = vadd.f32 %v6839_v19, %v4657_v20  ;;  %v4655_v35 = vadd.f32 %v4424_v28, %v9439_v12  ;;  %v4813_v16 = vpop.f32.mrf.mxu0 }
 0x2ef   :  { %v6774_v14 = vpop.f32.mrf.mxu1 }
 0x2f0   :  { %5359 = vst.msk [vmem:[#allocation2 + $0x14] sm:$0xf] %vm5353_vm9, %v5943_v56  ;;  %v5948_v3 = vpack.c.bf16 %v5043_v2, %v5043_v2  ;;  %v5041_v57 = vadd.f32 %v4810_v58, %v4655_v35  ;;  %v4658_v62 = vadd.f32 %v6774_v14, %v9446_v37  ;;  %v6843_v61 = vpop.f32.mrf.mxu0 }
 0x2f1   :  { %v4427_v50 = vpop.f32.mrf.mxu1 }
 0x2f2   :  { %5364 = vst.msk [vmem:[#allocation2 + $0x28] sm:$0xf] %vm5353_vm9, %v5948_v3  ;;  %v5946_v33 = vpack.c.bf16 %v5041_v57, %v5041_v57  ;;  %v5044_v36 = vadd.f32 %v6840_v25, %v4658_v62  ;;  %v4656_v52 = vadd.f32 %v4427_v50, %v9451_v9  ;;  %v4826_v26 = vpop.f32.mrf.mxu0 }
 0x2f3   :  { %v6777_v54 = vpop.f32.mrf.mxu1 }
 0x2f4   :  { %5362 = vst.msk [vmem:[#allocation2 + $0x20] sm:$0xf] %vm5353_vm9, %v5946_v33  ;;  %v5949_v12 = vpack.c.bf16 %v5044_v36, %v5044_v36  ;;  %v5042_v19 = vadd.f32 %v4813_v16, %v4656_v52  ;;  %v4661_v38 = vadd.f32 %v6777_v54, %v9456_v42  ;;  %v6844_v4 = vpop.f32.mrf.mxu0 }
 0x2f5   :  { %v4440_v47 = vpop.f32.mrf.mxu1 }
 0x2f6   :  { %5365 = vst.msk [vmem:[#allocation2 + $0x2c] sm:$0xf] %vm5353_vm9, %v5949_v12  ;;  %v5947_v37 = vpack.c.bf16 %v5042_v19, %v5042_v19  ;;  %v5047_v7 = vadd.f32 %v6843_v61, %v4661_v38  ;;  %v4659_v58 = vadd.f32 %v4440_v47, %v9459_v18  ;;  %v4829_v46 = vpop.f32.mrf.mxu0 }
 0x2f7   :  { %v6778_v22 = vpop.f32.mrf.mxu1 }
 0x2f8   :  { %5363 = vst.msk [vmem:[#allocation2 + $0x24] sm:$0xf] %vm5353_vm9, %v5947_v37  ;;  %v5952_v9 = vpack.c.bf16 %v5047_v7, %v5047_v7  ;;  %v5045_v23 = vadd.f32 %v4826_v26, %v4659_v58  ;;  %v4662_v20 = vadd.f32 %v6778_v22, %v9466_v60  ;;  %v6847_v25 = vpop.f32.mrf.mxu0 }
 0x2f9   :  { %v4443_v28 = vpop.f32.mrf.mxu1 }
 0x2fa   :  { %5368 = vst.msk [vmem:[#allocation2 + $0x38] sm:$0xf] %vm5353_vm9, %v5952_v9  ;;  %v5950_v42 = vpack.c.bf16 %v5045_v23, %v5045_v23  ;;  %v5048_v56 = vadd.f32 %v6844_v4, %v4662_v20  ;;  %v4660_v2 = vadd.f32 %v4443_v28, %v9474_v24  ;;  %v4842_v35 = vpop.f32.mrf.mxu0 }
 0x2fb   :  { %v6781_v16 = vpop.f32.mrf.mxu1 }
 0x2fc   :  { %5366 = vst.msk [vmem:[#allocation2 + $0x30] sm:$0xf] %vm5353_vm9, %v5950_v42  ;;  %v5953_v18 = vpack.c.bf16 %v5048_v56, %v5048_v56  ;;  %v5046_v14 = vadd.f32 %v4829_v46, %v4660_v2  ;;  %v4665_v3 = vadd.f32 %v6781_v16, %v9480_v27  ;;  %v6848_v57 = vpop.f32.mrf.mxu0 }
 0x2fd   :  { %v4456_v62 = vpop.f32.mrf.mxu1 }
 0x2fe   :  { %5369 = vst.msk [vmem:[#allocation2 + $0x3c] sm:$0xf] %vm5353_vm9, %v5953_v18  ;;  %v5951_v60 = vpack.c.bf16 %v5046_v14, %v5046_v14  ;;  %v5051_v61 = vadd.f32 %v6847_v25, %v4665_v3  ;;  %v4663_v50 = vadd.f32 %v4456_v62, %v9483_v11  ;;  %v4845_v33 = vpop.f32.mrf.mxu0 }
 0x2ff   :  { %v6782_v36 = vpop.f32.mrf.mxu1 }
 0x300   :  { %5367 = vst.msk [vmem:[#allocation2 + $0x34] sm:$0xf] %vm5353_vm9, %v5951_v60  ;;  %v5956_v24 = vpack.c.bf16 %v5051_v61, %v5051_v61  ;;  %v5049_v52 = vadd.f32 %v4842_v35, %v4663_v50  ;;  %v4666_v26 = vadd.f32 %v6782_v36, %v9494_v15  ;;  %v6851_v54 = vpop.f32.mrf.mxu0 }
 0x301   :  { %v4459_v12 = vpop.f32.mrf.mxu1 }
 0x302   :  { %5372 = vst.msk [vmem:[#allocation2 + $0x48] sm:$0xf] %vm5353_vm9, %v5956_v24  ;;  %v5954_v27 = vpack.c.bf16 %v5049_v52, %v5049_v52  ;;  %v5052_v19 = vadd.f32 %v6848_v57, %v4666_v26  ;;  %v4664_v38 = vadd.f32 %v4459_v12, %v9499_v29  ;;  %v4858_v4 = vpop.f32.mrf.mxu0 }
 0x303   :  { %v6785_v47 = vpop.f32.mrf.mxu1 }
 0x304   :  { %5370 = vst.msk [vmem:[#allocation2 + $0x40] sm:$0xf] %vm5353_vm9, %v5954_v27  ;;  %v5957_v11 = vpack.c.bf16 %v5052_v19, %v5052_v19  ;;  %v5050_v37 = vadd.f32 %v4845_v33, %v4664_v38  ;;  %v4669_v7 = vadd.f32 %v6785_v47, %v9505_v53  ;;  %v6852_v58 = vpop.f32.mrf.mxu0 }
 0x305   :  { %v4472_v46 = vpop.f32.mrf.mxu1 }
 0x306   :  { %5373 = vst.msk [vmem:[#allocation2 + $0x4c] sm:$0xf] %vm5353_vm9, %v5957_v11  ;;  %v5955_v15 = vpack.c.bf16 %v5050_v37, %v5050_v37  ;;  %v5055_v22 = vadd.f32 %v6851_v54, %v4669_v7  ;;  %v4667_v9 = vadd.f32 %v4472_v46, %v9508_v48  ;;  %v4861_v23 = vpop.f32.mrf.mxu0 }
 0x307   :  { %v6786_v20 = vpop.f32.mrf.mxu1 }
 0x308   :  { %5371 = vst.msk [vmem:[#allocation2 + $0x44] sm:$0xf] %vm5353_vm9, %v5955_v15  ;;  %v5960_v29 = vpack.c.bf16 %v5055_v22, %v5055_v22  ;;  %v5053_v25 = vadd.f32 %v4858_v4, %v4667_v9  ;;  %v4670_v28 = vadd.f32 %v6786_v20, %v9519_v17  ;;  %v6855_v42 = vpop.f32.mrf.mxu0 }
 0x309   :  { %v4475_v56 = vpop.f32.mrf.mxu1 }
 0x30a   :  { %5376 = vst.msk [vmem:[#allocation2 + $0x58] sm:$0xf] %vm5353_vm9, %v5960_v29  ;;  %v5958_v53 = vpack.c.bf16 %v5053_v25, %v5053_v25  ;;  %v5056_v2 = vadd.f32 %v6852_v58, %v4670_v28  ;;  %v4668_v35 = vadd.f32 %v4475_v56, %v9526_v6  ;;  %v4874_v16 = vpop.f32.mrf.mxu0  ;;  %v10421_v29 = vld [vmem:[#allocation121_spill] sm:$0xff] }
 0x30b   :  { %v6789_v18 = vpop.f32.mrf.mxu1 }
 0x30c   :  { %5374 = vst.msk [vmem:[#allocation2 + $0x50] sm:$0xf] %vm5353_vm9, %v5958_v53  ;;  %v5961_v48 = vpack.c.bf16 %v5056_v2, %v5056_v2  ;;  %v5054_v14 = vadd.f32 %v4861_v23, %v4668_v35  ;;  %v4673_v3 = vadd.f32 %v6789_v18, %v9533_v31  ;;  %v6856_v57 = vpop.f32.mrf.mxu0  ;;  %v10422_v53 = vld [vmem:[#allocation122_spill] sm:$0xff] }
 0x30d   :  { %v4488_v62 = vpop.f32.mrf.mxu1 }
 0x30e   :  { %5377 = vst.msk [vmem:[#allocation2 + $0x5c] sm:$0xf] %vm5353_vm9, %v5961_v48  ;;  %v5959_v17 = vpack.c.bf16 %v5054_v14, %v5054_v14  ;;  %v5059_v60 = vadd.f32 %v6855_v42, %v4673_v3  ;;  %v4671_v61 = vadd.f32 %v4488_v62, %v9536_v13  ;;  %v4877_v50 = vpop.f32.mrf.mxu0  ;;  %v10423_v48 = vld [vmem:[#allocation90_spill] sm:$0xff] }
 0x30f   :  { %v6790_v33 = vpop.f32.mrf.mxu1 }
 0x310   :  { %5375 = vst.msk [vmem:[#allocation2 + $0x54] sm:$0xf] %vm5353_vm9, %v5959_v17  ;;  %v5964_v6 = vpack.c.bf16 %v5059_v60, %v5059_v60  ;;  %v5057_v36 = vadd.f32 %v4874_v16, %v4671_v61  ;;  %v4674_v24 = vadd.f32 %v6790_v33, %v9540_v21  ;;  %v6859_v52 = vpop.f32.mrf.mxu0  ;;  %v10424_v60 = vld [vmem:[#allocation32_spill] sm:$0xff] }
 0x311   :  { %v4491_v26 = vpop.f32.mrf.mxu1 }
 0x312   :  { %5380 = vst.msk [vmem:[#allocation2 + $0x68] sm:$0xf] %vm5353_vm9, %v5964_v6  ;;  %v5962_v31 = vpack.c.bf16 %v5057_v36, %v5057_v36  ;;  %v5060_v54 = vadd.f32 %v6856_v57, %v4674_v24  ;;  %v4672_v12 = vadd.f32 %v4491_v26, %v9544_v30  ;;  %v4890_v27 = vpop.f32.mrf.mxu0  ;;  %v10425_v24 = vld [vmem:[#allocation124_spill] sm:$0xff] }
 0x313   :  { %v6793_v19 = vpop.f32.mrf.mxu1 }
 0x314   :  { %5378 = vst.msk [vmem:[#allocation2 + $0x60] sm:$0xf] %vm5353_vm9, %v5962_v31  ;;  %v5965_v13 = vpack.c.bf16 %v5060_v54, %v5060_v54  ;;  %v5058_v38 = vadd.f32 %v4877_v50, %v4672_v12  ;;  %v4677_v4 = vadd.f32 %v6793_v19, %v9547_v44  ;;  %v6860_v47 = vpop.f32.mrf.mxu0 }
 0x315   :  { %v4504_v11 = vpop.f32.mrf.mxu1 }
 0x316   :  { %5381 = vst.msk [vmem:[#allocation2 + $0x6c] sm:$0xf] %vm5353_vm9, %v5965_v13  ;;  %v5963_v21 = vpack.c.bf16 %v5058_v38, %v5058_v38  ;;  %v5063_v37 = vadd.f32 %v6859_v52, %v4677_v4  ;;  %v4675_v7 = vadd.f32 %v4504_v11, %v9550_v63  ;;  %v4893_v58 = vpop.f32.mrf.mxu0  ;;  %v10427_v11 = vld [vmem:[#allocation36_spill] sm:$0xff] }
 0x317   :  { %v6794_v46 = vpop.f32.mrf.mxu1 }
 0x318   :  { %5379 = vst.msk [vmem:[#allocation2 + $0x64] sm:$0xf] %vm5353_vm9, %v5963_v21  ;;  %v5968_v30 = vpack.c.bf16 %v5063_v37, %v5063_v37  ;;  %v5061_v15 = vadd.f32 %v4890_v27, %v4675_v7  ;;  %v4678_v22 = vadd.f32 %v6794_v46, %v9553_v8  ;;  %v6863_v9 = vpop.f32.mrf.mxu0  ;;  %v10426_v27 = vld [vmem:[#allocation38_spill] sm:$0xff] }
 0x319   :  { %v4507_v23 = vpop.f32.mrf.mxu1 }
 0x31a   :  { %5384 = vst.msk [vmem:[#allocation2 + $0x78] sm:$0xf] %vm5353_vm9, %v5968_v30  ;;  %v5966_v44 = vpack.c.bf16 %v5061_v15, %v5061_v15  ;;  %v5064_v20 = vadd.f32 %v6860_v47, %v4678_v22  ;;  %v4676_v25 = vadd.f32 %v4507_v23, %v10421_v29  ;;  %v4906_v28 = vpop.f32.mrf.mxu0  ;;  %v10428_v30 = vld [vmem:[#allocation123_spill] sm:$0xff] }
 0x31b   :  { %v6797_v42 = vpop.f32.mrf.mxu1 }
 0x31c   :  { %5382 = vst.msk [vmem:[#allocation2 + $0x70] sm:$0xf] %vm5353_vm9, %v5966_v44  ;;  %v5969_v63 = vpack.c.bf16 %v5064_v20, %v5064_v20  ;;  %v5062_v56 = vadd.f32 %v4893_v58, %v4676_v25  ;;  %v4681_v2 = vadd.f32 %v6797_v42, %v10422_v53  ;;  %v6864_v35 = vpop.f32.mrf.mxu0  ;;  %v10429_v20 = vld [vmem:[#allocation39_spill] sm:$0xff] }
 0x31d   :  { %v4520_v16 = vpop.f32.mrf.mxu1 }
 0x31e   :  { %5385 = vst.msk [vmem:[#allocation2 + $0x7c] sm:$0xf] %vm5353_vm9, %v5969_v63  ;;  %v5967_v8 = vpack.c.bf16 %v5062_v56, %v5062_v56  ;;  %v5067_v18 = vadd.f32 %v6863_v9, %v4681_v2  ;;  %v4679_v14 = vadd.f32 %v4520_v16, %v10423_v48  ;;  %v4909_v3 = vpop.f32.mrf.mxu0  ;;  %v10430_v56 = vld [vmem:[#allocation44_spill] sm:$0xff] }
 0x31f   :  { %v6798_v57 = vpop.f32.mrf.mxu1 }
 0x320   :  { %5383 = vst.msk [vmem:[#allocation2 + $0x74] sm:$0xf] %vm5353_vm9, %v5967_v8  ;;  %v5972_v62 = vpack.c.bf16 %v5067_v18, %v5067_v18  ;;  %v5065_v17 = vadd.f32 %v4906_v28, %v4679_v14  ;;  %v4682_v61 = vadd.f32 %v6798_v57, %v10424_v60  ;;  %v6867_v50 = vpop.f32.mrf.mxu0  ;;  %v10431_v18 = vld [vmem:[#allocation8_spill] sm:$0xff] }
 0x321   :  { %v4523_v33 = vpop.f32.mrf.mxu1 }
 0x322   :  { %5388 = vst.msk [vmem:[#allocation2 + $0x88] sm:$0xf] %vm5353_vm9, %v5972_v62  ;;  %v5970_v6 = vpack.c.bf16 %v5065_v17, %v5065_v17  ;;  %v5068_v36 = vadd.f32 %v6864_v35, %v4682_v61  ;;  %v4680_v52 = vadd.f32 %v4523_v33, %v10425_v24  ;;  %v4922_v26 = vpop.f32.mrf.mxu0  ;;  %v10432_v17 = vld [vmem:[#allocation50_spill] sm:$0xff] }
 0x323   :  { %v6801_v31 = vpop.f32.mrf.mxu1 }
 0x324   :  { %5386 = vst.msk [vmem:[#allocation2 + $0x80] sm:$0xf] %vm5353_vm9, %v5970_v6  ;;  %v5973_v54 = vpack.c.bf16 %v5068_v36, %v5068_v36  ;;  %v5066_v12 = vadd.f32 %v4909_v3, %v4680_v52  ;;  %v4685_v19 = vadd.f32 %v6801_v31, %v10426_v27  ;;  %v6868_v13 = vpop.f32.mrf.mxu0  ;;  %v10433_v36 = vld [vmem:[#allocation51_spill] sm:$0xff] }
 0x325   :  { %v4536_v38 = vpop.f32.mrf.mxu1 }
 0x326   :  { %5389 = vst.msk [vmem:[#allocation2 + $0x8c] sm:$0xf] %vm5353_vm9, %v5973_v54  ;;  %v5971_v4 = vpack.c.bf16 %v5066_v12, %v5066_v12  ;;  %v5071_v47 = vadd.f32 %v6867_v50, %v4685_v19  ;;  %v4683_v21 = vadd.f32 %v4536_v38, %v10427_v11  ;;  %v4925_v37 = vpop.f32.mrf.mxu0  ;;  %v10434_v12 = vld [vmem:[#allocation96_spill] sm:$0xff] }
 0x327   :  { %v6802_v7 = vpop.f32.mrf.mxu1 }
 0x328   :  { %5387 = vst.msk [vmem:[#allocation2 + $0x84] sm:$0xf] %vm5353_vm9, %v5971_v4  ;;  %v5976_v58 = vpack.c.bf16 %v5071_v47, %v5071_v47  ;;  %v5069_v46 = vadd.f32 %v4922_v26, %v4683_v21  ;;  %v4686_v15 = vadd.f32 %v6802_v7, %v10428_v30  ;;  %v6871_v22 = vpop.f32.mrf.mxu0  ;;  %v10435_v47 = vld [vmem:[#allocation10_spill] sm:$0xff] }
 0x329   :  { %v4539_v9 = vpop.f32.mrf.mxu1 }
 0x32a   :  { %5392 = vst.msk [vmem:[#allocation2 + $0x98] sm:$0xf] %vm5353_vm9, %v5976_v58  ;;  %v5974_v23 = vpack.c.bf16 %v5069_v46, %v5069_v46  ;;  %v5072_v44 = vadd.f32 %v6868_v13, %v4686_v15  ;;  %v4684_v29 = vadd.f32 %v4539_v9, %v10429_v20  ;;  %v4938_v25 = vpop.f32.mrf.mxu0  ;;  %v10436_v46 = vld [vmem:[#allocation52_spill] sm:$0xff] }
 0x32b   :  { %v6805_v28 = vpop.f32.mrf.mxu1 }
 0x32c   :  { %5390 = vst.msk [vmem:[#allocation2 + $0x90] sm:$0xf] %vm5353_vm9, %v5974_v23  ;;  %v5977_v42 = vpack.c.bf16 %v5072_v44, %v5072_v44  ;;  %v5070_v63 = vadd.f32 %v4925_v37, %v4684_v29  ;;  %v4689_v53 = vadd.f32 %v6805_v28, %v10430_v56  ;;  %v6872_v2 = vpop.f32.mrf.mxu0  ;;  %v10437_v44 = vld [vmem:[#allocation12_spill] sm:$0xff] }
 0x32d   :  { %v4552_v35 = vpop.f32.mrf.mxu1 }
 0x32e   :  { %5393 = vst.msk [vmem:[#allocation2 + $0x9c] sm:$0xf] %vm5353_vm9, %v5977_v42  ;;  %v5975_v16 = vpack.c.bf16 %v5070_v63, %v5070_v63  ;;  %v5075_v8 = vadd.f32 %v6871_v22, %v4689_v53  ;;  %v4687_v48 = vadd.f32 %v4552_v35, %v10431_v18  ;;  %v4941_v14 = vpop.f32.mrf.mxu0 }
 0x32f   :  { %v6806_v3 = vpop.f32.mrf.mxu1 }
 0x330   :  { %5391 = vst.msk [vmem:[#allocation2 + $0x94] sm:$0xf] %vm5353_vm9, %v5975_v16  ;;  %v5980_v57 = vpack.c.bf16 %v5075_v8, %v5075_v8  ;;  %v5073_v62 = vadd.f32 %v4938_v25, %v4687_v48  ;;  %v4690_v60 = vadd.f32 %v6806_v3, %v10432_v17  ;;  %v6875_v61 = vpop.f32.mrf.mxu0 }
 0x331   :  { %v4555_v50 = vpop.f32.mrf.mxu1 }
 0x332   :  { %5396 = vst.msk [vmem:[#allocation2 + $0xa8] sm:$0xf] %vm5353_vm9, %v5980_v57  ;;  %v5978_v33 = vpack.c.bf16 %v5073_v62, %v5073_v62  ;;  %v5076_v6 = vadd.f32 %v6872_v2, %v4690_v60  ;;  %v4688_v24 = vadd.f32 %v4555_v50, %v10433_v36  ;;  %v4954_v52 = vpop.f32.mrf.mxu0 }
 0x333   :  { %v6809_v26 = vpop.f32.mrf.mxu1 }
 0x334   :  { %5394 = vst.msk [vmem:[#allocation2 + $0xa0] sm:$0xf] %vm5353_vm9, %v5978_v33  ;;  %v5981_v31 = vpack.c.bf16 %v5076_v6, %v5076_v6  ;;  %v5074_v54 = vadd.f32 %v4941_v14, %v4688_v24  ;;  %v4693_v27 = vadd.f32 %v6809_v26, %v10434_v12  ;;  %v6876_v19 = vpop.f32.mrf.mxu0 }
 0x335   :  { %v4568_v13 = vpop.f32.mrf.mxu1 }
 0x336   :  { %5397 = vst.msk [vmem:[#allocation2 + $0xac] sm:$0xf] %vm5353_vm9, %v5981_v31  ;;  %v5979_v38 = vpack.c.bf16 %v5074_v54, %v5074_v54  ;;  %v5079_v4 = vadd.f32 %v6875_v61, %v4693_v27  ;;  %v4691_v11 = vadd.f32 %v4568_v13, %v10435_v47  ;;  %v4957_v21 = vpop.f32.mrf.mxu0 }
 0x337   :  { %v6810_v37 = vpop.f32.mrf.mxu1 }
 0x338   :  { %5395 = vst.msk [vmem:[#allocation2 + $0xa4] sm:$0xf] %vm5353_vm9, %v5979_v38  ;;  %v5984_v7 = vpack.c.bf16 %v5079_v4, %v5079_v4  ;;  %v5077_v58 = vadd.f32 %v4954_v52, %v4691_v11  ;;  %v4694_v30 = vadd.f32 %v6810_v37, %v10436_v46  ;;  %v6879_v15 = vpop.f32.mrf.mxu0 }
 0x339   :  { %v4571_v22 = vpop.f32.mrf.mxu1 }
 0x33a   :  { %5400 = vst.msk [vmem:[#allocation2 + $0xb8] sm:$0xf] %vm5353_vm9, %v5984_v7  ;;  %v5982_v9 = vpack.c.bf16 %v5077_v58, %v5077_v58  ;;  %v5080_v23 = vadd.f32 %v6876_v19, %v4694_v30  ;;  %v4692_v20 = vadd.f32 %v4571_v22, %v10437_v44  ;;  %v4970_v29 = vpop.f32.mrf.mxu0 }
 0x33b   :  { %v6813_v25 = vpop.f32.mrf.mxu1 }
 0x33c   :  { %5398 = vst.msk [vmem:[#allocation2 + $0xb0] sm:$0xf] %vm5353_vm9, %v5982_v9  ;;  %v5985_v28 = vpack.c.bf16 %v5080_v23, %v5080_v23  ;;  %v5078_v42 = vadd.f32 %v4957_v21, %v4692_v20  ;;  %v4697_v63 = vadd.f32 %v6813_v25, %v9607_v59  ;;  %v6880_v56 = vpop.f32.mrf.mxu0 }
 0x33d   :  { %v4584_v53 = vpop.f32.mrf.mxu1 }
 0x33e   :  { %5401 = vst.msk [vmem:[#allocation2 + $0xbc] sm:$0xf] %vm5353_vm9, %v5985_v28  ;;  %v5983_v2 = vpack.c.bf16 %v5078_v42, %v5078_v42  ;;  %v5083_v35 = vadd.f32 %v6879_v15, %v4697_v63  ;;  %v4695_v16 = vadd.f32 %v4584_v53, %v9610_v34  ;;  %v4973_v8 = vpop.f32.mrf.mxu0 }
 0x33f   :  { %v6814_v18 = vpop.f32.mrf.mxu1 }
 0x340   :  { %5399 = vst.msk [vmem:[#allocation2 + $0xb4] sm:$0xf] %vm5353_vm9, %v5983_v2  ;;  %v5988_v48 = vpack.c.bf16 %v5083_v35, %v5083_v35  ;;  %v5081_v14 = vadd.f32 %v4970_v29, %v4695_v16  ;;  %v4698_v3 = vadd.f32 %v6814_v18, %v9613_v49  ;;  %v6883_v57 = vpop.f32.mrf.mxu0  ;;  %v10438_v35 = vld [vmem:[#allocation49_spill] sm:$0xff] }
 0x341   :  { %v4587_v62 = vpop.f32.mrf.mxu1 }
 0x342   :  { %5404 = vst.msk [vmem:[#allocation2 + $0xc8] sm:$0xf] %vm5353_vm9, %v5988_v48  ;;  %v5986_v59 = vpack.c.bf16 %v5081_v14, %v5081_v14  ;;  %v5084_v17 = vadd.f32 %v6880_v56, %v4698_v3  ;;  %v4696_v60 = vadd.f32 %v4587_v62, %v9616_v0  ;;  %v4986_v61 = vpop.f32.mrf.mxu0 }
 0x343   :  { %v6817_v50 = vpop.f32.mrf.mxu1 }
 0x344   :  { %5402 = vst.msk [vmem:[#allocation2 + $0xc0] sm:$0xf] %vm5353_vm9, %v5986_v59  ;;  %v5989_v34 = vpack.c.bf16 %v5084_v17, %v5084_v17  ;;  %v5082_v33 = vadd.f32 %v4973_v8, %v4696_v60  ;;  %v4701_v6 = vadd.f32 %v6817_v50, %v9619_v51  ;;  %v6884_v36 = vpop.f32.mrf.mxu0 }
 0x345   :  { %v4600_v24 = vpop.f32.mrf.mxu1 }
 0x346   :  { %5405 = vst.msk [vmem:[#allocation2 + $0xcc] sm:$0xf] %vm5353_vm9, %v5989_v34  ;;  %v5987_v49 = vpack.c.bf16 %v5082_v33, %v5082_v33  ;;  %v5087_v52 = vadd.f32 %v6883_v57, %v4701_v6  ;;  %v4699_v26 = vadd.f32 %v4600_v24, %v9622_v40  ;;  %v4989_v31 = vpop.f32.mrf.mxu0 }
 0x347   :  { %v6818_v54 = vpop.f32.mrf.mxu1 }
 0x348   :  { %5403 = vst.msk [vmem:[#allocation2 + $0xc4] sm:$0xf] %vm5353_vm9, %v5987_v49  ;;  %v5992_v0 = vpack.c.bf16 %v5087_v52, %v5087_v52  ;;  %v5085_v12 = vadd.f32 %v4986_v61, %v4699_v26  ;;  %v4702_v27 = vadd.f32 %v6818_v54, %v9625_v10  ;;  %v6887_v19 = vpop.f32.mrf.mxu0 }
 0x349   :  { %v4603_v13 = vpop.f32.mrf.mxu1 }
 0x34a   :  { %5408 = vst.msk [vmem:[#allocation2 + $0xd8] sm:$0xf] %vm5353_vm9, %v5992_v0  ;;  %v5990_v51 = vpack.c.bf16 %v5085_v12, %v5085_v12  ;;  %v5088_v38 = vadd.f32 %v6884_v36, %v4702_v27  ;;  %v4700_v4 = vadd.f32 %v4603_v13, %v9628_v43  ;;  %v5002_v47 = vpop.f32.mrf.mxu0 }
 0x34b   :  { %v6821_v11 = vpop.f32.mrf.mxu1 }
 0x34c   :  { %5406 = vst.msk [vmem:[#allocation2 + $0xd0] sm:$0xf] %vm5353_vm9, %v5990_v51  ;;  %v5993_v40 = vpack.c.bf16 %v5088_v38, %v5088_v38  ;;  %v5086_v21 = vadd.f32 %v4989_v31, %v4700_v4  ;;  %v4705_v37 = vadd.f32 %v6821_v11, %v9631_v1  ;;  %v6888_v7 = vpop.f32.mrf.mxu0 }
 0x34d   :  { %v4616_v58 = vpop.f32.mrf.mxu1 }
 0x34e   :  { %5409 = vst.msk [vmem:[#allocation2 + $0xdc] sm:$0xf] %vm5353_vm9, %v5993_v40  ;;  %v5991_v10 = vpack.c.bf16 %v5086_v21, %v5086_v21  ;;  %v5091_v46 = vadd.f32 %v6887_v19, %v4705_v37  ;;  %v4703_v30 = vadd.f32 %v4616_v58, %v9634_v45  ;;  %v5005_v15 = vpop.f32.mrf.mxu0 }
 0x34f   :  { %v6822_v22 = vpop.f32.mrf.mxu1 }
 0x350   :  { %5407 = vst.msk [vmem:[#allocation2 + $0xd4] sm:$0xf] %vm5353_vm9, %v5991_v10  ;;  %v5996_v43 = vpack.c.bf16 %v5091_v46, %v5091_v46  ;;  %v5089_v9 = vadd.f32 %v5002_v47, %v4703_v30  ;;  %v4706_v23 = vadd.f32 %v6822_v22, %v9637_v55  ;;  %v6891_v44 = vpop.f32.mrf.mxu0 }
 0x351   :  { %v4619_v20 = vpop.f32.mrf.mxu1 }
 0x352   :  { %5412 = vst.msk [vmem:[#allocation2 + $0xe8] sm:$0xf] %vm5353_vm9, %v5996_v43  ;;  %v5994_v1 = vpack.c.bf16 %v5089_v9, %v5089_v9  ;;  %v5092_v29 = vadd.f32 %v6888_v7, %v4706_v23  ;;  %v4704_v25 = vadd.f32 %v4619_v20, %v9640_v41  ;;  %v5018_v42 = vpop.f32.mrf.mxu0 }
 0x353   :  { %v6825_v28 = vpop.f32.mrf.mxu1 }
 0x354   :  { %5410 = vst.msk [vmem:[#allocation2 + $0xe0] sm:$0xf] %vm5353_vm9, %v5994_v1  ;;  %v5997_v45 = vpack.c.bf16 %v5092_v29, %v5092_v29  ;;  %v5090_v63 = vadd.f32 %v5005_v15, %v4704_v25  ;;  %v4709_v56 = vadd.f32 %v6825_v28, %v9643_v5  ;;  %v6892_v18 = vpop.f32.mrf.mxu0 }
 0x355   :  { %v4632_v53 = vpop.f32.mrf.mxu1 }
 0x356   :  { %5413 = vst.msk [vmem:[#allocation2 + $0xec] sm:$0xf] %vm5353_vm9, %v5997_v45  ;;  %v5995_v55 = vpack.c.bf16 %v5090_v63, %v5090_v63  ;;  %v5095_v2 = vadd.f32 %v6891_v44, %v4709_v56  ;;  %v4707_v16 = vadd.f32 %v4632_v53, %v10438_v35  ;;  %v5021_v59 = vpop.f32.mrf.mxu0 }
 0x357   :  { %v6826_v8 = vpop.f32.mrf.mxu1 }
 0x358   :  { %5411 = vst.msk [vmem:[#allocation2 + $0xe4] sm:$0xf] %vm5353_vm9, %v5995_v55  ;;  %v6000_v41 = vpack.c.bf16 %v5095_v2, %v5095_v2  ;;  %v5093_v48 = vadd.f32 %v5018_v42, %v4707_v16  ;;  %v4710_v14 = vadd.f32 %v6826_v8, %v9649_v39 }
 0x359   :  { %v4635_v3 = vpop.f32.mrf.mxu1 }
 0x35a   :  { %5416 = vst.msk [vmem:[#allocation2 + $0xf8] sm:$0xf] %vm5353_vm9, %v6000_v41  ;;  %v5998_v57 = vpack.c.bf16 %v5093_v48, %v5093_v48  ;;  %v5096_v5 = vadd.f32 %v6892_v18, %v4710_v14  ;;  %v4708_v62 = vadd.f32 %v4635_v3, %v9652_v32 }
 0x35c   :  { %5414 = vst.msk [vmem:[#allocation2 + $0xf0] sm:$0xf] %vm5353_vm9, %v5998_v57  ;;  %v6001_v17 = vpack.c.bf16 %v5096_v5, %v5096_v5  ;;  %v5094_v60 = vadd.f32 %v5021_v59, %v4708_v62 }
 0x35e   :  { %5417 = vst.msk [vmem:[#allocation2 + $0xfc] sm:$0xf] %vm5353_vm9, %v6001_v17  ;;  %v5999_v61 = vpack.c.bf16 %v5094_v60, %v5094_v60 }
 0x360   :  { %5415 = vst.msk [vmem:[#allocation2 + $0xf4] sm:$0xf] %vm5353_vm9, %v5999_v61 }
 0x361   :  { %7001 = shalt.err (!%p6998_p4)
}
 0x362   :  { %s7014_s18 = smov 64   ;;  %s7015_s19 = smov 4  }
 0x363   :  { %5429 = dma.vmem_to_hbm [thread:$0]  %s5424_s16, 4096, %s9787_s2, [#allocation3], %s7014_s18, %s7014_s18, %s7015_s19  }
 0x364   :  { %7010 = dma.done.wait [#allocation3], 4096  }
 0x365   :  { %7011 = vsyncadd [#allocation3], 4294963200 }
 0x366   :  { %5433 = vsyncpa [#allocation3], 1 }

</bundles_post_ra>
